<compile_context>
chip_gen: v7x
topology: tpu7x:2x2x1
jax: 0.10.0
libtpu: 0.0.40
codegen_flags: <defaults>
</compile_context>

<pallas_src>
import functools
import math

import jax
import jax.numpy as jnp
from jax import lax
from jax.experimental import pallas as pl
from jax.experimental.pallas import tpu as pltpu

EPS = 1e-5  # PyTorch LayerNorm default


# ----------------------------------------------------------------------------
# Shared helpers (used both in-kernel and by the pure-JAX reference)
# ----------------------------------------------------------------------------
def _layer_norm(v, g, b):
    mu = jnp.mean(v, axis=-1, keepdims=True)
    var = jnp.mean(jnp.square(v - mu), axis=-1, keepdims=True)
    return (v - mu) * lax.rsqrt(var + EPS) * g + b


def _mm(a, w):
    """a @ w on the MXU: bf16 operands, f32 accumulation."""
    return lax.dot_general(
        a.astype(jnp.bfloat16), w.astype(jnp.bfloat16),
        dimension_numbers=(((a.ndim - 1,), (0,)), ((), ())),
        preferred_element_type=jnp.float32)


def _sincos_pe(seq_len, dim, base):
    pos = jnp.arange(seq_len, dtype=jnp.float32)[:, None]
    half = dim // 2
    theta = base ** (-2.0 * jnp.arange(half, dtype=jnp.float32) / dim)
    ang = pos * theta[None, :]
    return jnp.concatenate([jnp.sin(ang), jnp.cos(ang)], axis=-1)   # (seq, dim)


def _im2col(x, patch):
    B, C, Hh, Ww = x.shape
    hp, wp = Hh // patch, Ww // patch
    xp = x.reshape(B, C, hp, patch, wp, patch)
    xp = jnp.transpose(xp, (0, 2, 4, 1, 3, 5))
    return xp.reshape(B, hp * wp, C * patch * patch)                # (B, N, C*P*P)


# ----------------------------------------------------------------------------
# Fused encoder kernel (one grid step == Bt batch elements, full forward)
# ----------------------------------------------------------------------------
def _encoder_kernel(
    xp_ref,        # (Bt*CPP, N)   bf16  transposed im2col patches (row = b*CPP + c)
    w_in_ref,      # (N, D)        bf16  in_proj weight (applied first; see wrapper)
    wpt_ref,       # (D, CPP)      bf16  patch-embed weight, transposed
    eadd_ref,      # (D, D)        f32   abs PE + folded patch/in_proj biases
    lmisc_ref,     # (L, 9, D)     f32   [tn_g,tn_b,bq,bk,bv,bo,cn_g,cn_b,b3]
    wattn_ref,     # (L, D, 4D)    bf16  [wq|wk|wv|wo]
    w12_ref,       # (L, D, 2M)    bf16  [w1|w2]
    b12_ref,       # (L, 1, 2M)    f32   [b1|b2]
    w3_ref,        # (L, M, D)     bf16
    fin_ref,       # (2, D)        f32   final_norm gamma / beta
    wout_ref,      # (D, Opad)     bf16  out_proj weight padded to 128 lanes
    bout_ref,      # (1, Opad)     f32
    o_ref,         # (Bt*S, Opad)  f32   lane-dense output slab
    *, bt, num_layers, num_heads, head_dim, dim, mid, cpp,
):
    D, H, hd, M = dim, num_heads, head_dim, mid
    S = D
    R = bt * S
    bf16 = jnp.bfloat16
    f32 = jnp.float32

    # ---- patch_embed + 'b n d -> b d n' + in_proj ---------------------------
    # Reordered (exact identity) so both matmuls contract minor dims:
    #   Y = xp^T @ W_in   then   x_b = Wp^T @ Y_b  + (pe + folded biases)
    y = _mm(xp_ref[...], w_in_ref[...])                       # (bt*CPP, D) f32
    wpt = wpt_ref[...]
    eadd = eadd_ref[...]
    xs = []
    for b in range(bt):                                        # Bt small, static
        yb = y[b * cpp:(b + 1) * cpp]                          # (CPP, D)
        xs.append(_mm(wpt, yb) + eadd)                         # (D, D) == (S, D)
    x = jnp.concatenate(xs, axis=0)                            # (R, D) f32

    scale = 1.0 / math.sqrt(hd)

    def layer_body(l, x):
        lm = lmisc_ref[l]                                      # (9, D)
        wat = wattn_ref[l]                                     # (D, 4D)

        # ---- token mixer: pre-norm MHSA, fused QKV + fused out-proj ----
        xn = _layer_norm(x, lm[0:1], lm[1:2])
        qkv = _mm(xn, wat[:, :3 * D])                          # (R, 3D) f32
        q = ((qkv[:, 0:D] + lm[2:3]) * scale).reshape(bt, S, D).astype(bf16)
        k = (qkv[:, D:2 * D] + lm[3:4]).reshape(bt, S, D).astype(bf16)
        v = (qkv[:, 2 * D:3 * D] + lm[4:5]).reshape(bt, S, D).astype(bf16)
        heads = []
        # Only the batched score/PV einsums remain per head (hd < 128 lanes);
        # QKV and out-proj are already fused across heads.
        for h in range(H):
            sl = slice(h * hd, (h + 1) * hd)
            s = jnp.einsum('bqd,bkd->bqk', q[..., sl], k[..., sl],
                           preferred_element_type=f32)         # (bt, S, S)
            s = s - jnp.max(s, axis=-1, keepdims=True)
            p = jnp.exp(s)
            p = p * pl.reciprocal(jnp.sum(p, axis=-1, keepdims=True), approx=True)
            heads.append(jnp.einsum('bqk,bkd->bqd', p.astype(bf16), v[..., sl],
                                    preferred_element_type=f32))
        pv = jnp.concatenate(heads, axis=-1).reshape(R, D)      # (R, D) f32
        x = x + _mm(pv, wat[:, 3 * D:]) + lm[5:6]               # residual 1

        # ---- channel mixer: GLU  w3( silu(w1 x) * (w2 x) ), fused w1|w2 ----
        xn2 = _layer_norm(x, lm[6:7], lm[7:8])
        u12 = _mm(xn2, w12_ref[l]) + b12_ref[l]                 # (R, 2M)
        u1 = u12[:, :M]
        u2 = u12[:, M:]
        u = (u1 * jax.nn.sigmoid(u1)) * u2                      # f32 elementwise
        x = x + _mm(u, w3_ref[l]) + lm[8:9]                     # residual 2
        return x

    if num_layers <= 4:
        # short stacks: static unroll (LLO scheduler visibility)
        for l in range(num_layers):
            x = layer_body(l, x)
    else:
        # deep stacks: rolled loop bounds live ranges; dynamic first-axis ref
        # indexing into the stacked (L, ...) weight slabs.
        x = lax.fori_loop(0, num_layers, layer_body, x)

    # ---- final_norm + out_proj (lane-dense, 128-wide padded) ----
    fin = fin_ref[...]
    xn = _layer_norm(x, fin[0:1], fin[1:2])
    o_ref[...] = (_mm(xn, wout_ref[...]) + bout_ref[...]).astype(o_ref.dtype)


# ----------------------------------------------------------------------------
# Parameter packing: a few stacked slabs instead of ~28 tiny inputs
# ----------------------------------------------------------------------------
def _pack_params(params, cfg):
    D = cfg["hidden_channels"]
    O = cfg["embed_dim"]
    opad = max(128, -(-O // 128) * 128)
    bf16 = jnp.bfloat16
    f32 = jnp.float32

    w_in = params["w_in"].astype(f32)                           # (N, D)
    s_in = jnp.sum(w_in, axis=0)                                # (D,)
    pe = (_sincos_pe(D, D, cfg["theta_base"]) if cfg["use_ape"]
          else jnp.zeros((D, D), f32))
    # folded biases of the reordered embed:  b_patch ⊗ sum_n(w_in) + b_in + pe
    embed_add = (params["b_patch"][:, None] * s_in[None, :]
                 + params["b_in"][None, :] + pe)                # (D, D)

    def st(name):
        return jnp.stack([lp[name] for lp in params["layers"]], axis=0)

    lmisc = jnp.stack(
        [jnp.stack([lp[n] for n in
                    ("tn_g", "tn_b", "bq", "bk", "bv", "bo", "cn_g", "cn_b", "b3")],
                   axis=0) for lp in params["layers"]],
        axis=0).astype(f32)                                     # (L, 9, D)
    wattn = jnp.concatenate([st("wq"), st("wk"), st("wv"), st("wo")],
                            axis=-1).astype(bf16)               # (L, D, 4D)
    w12 = jnp.concatenate([st("w1"), st("w2")], axis=-1).astype(bf16)   # (L, D, 2M)
    b12 = jnp.concatenate([st("b1"), st("b2")], axis=-1)[:, None, :].astype(f32)
    w3 = st("w3").astype(bf16)                                  # (L, M, D)
    fin = jnp.stack([params["g_fn"], params["b_fn"]], axis=0).astype(f32)
    w_out = jnp.pad(params["w_out"], ((0, 0), (0, opad - O))).astype(bf16)
    b_out = jnp.pad(params["b_out"], (0, opad - O))[None, :].astype(f32)

    return dict(w_in=w_in.astype(bf16), wpt=params["w_patch"].T.astype(bf16),
                embed_add=embed_add.astype(f32), lmisc=lmisc, wattn=wattn,
                w12=w12, b12=b12, w3=w3, fin=fin, w_out=w_out, b_out=b_out,
                opad=opad)


def _choose_batch_tile(B, S):
    # Target ~128-256 MXU rows per grid step, but keep >= 2 grid steps when the
    # batch allows it so "parallel" grid semantics can use both v7x TensorCores.
    bt = max(1, min(B, max(1, 256 // max(S, 1))))
    while B % bt:
        bt -= 1
    if B // bt < 2 and B >= 2:
        bt = max(1, B // 2)
        while B % bt:
            bt -= 1
    return bt


# ----------------------------------------------------------------------------
# Full encoder forward (single pallas_call)
# ----------------------------------------------------------------------------
def feature_transformer_encoder(x, params, cfg):
    B, C, Himg, Wimg = x.shape
    P = cfg["patch_size"]
    D = cfg["hidden_channels"]
    O = cfg["embed_dim"]
    H = cfg["num_heads"]
    hd = D // H
    L = cfg["num_layers"]
    M = cfg["mid_dim"]
    N = (Himg // P) * (Wimg // P)
    CPP = C * P * P
    S = D                         # seq length after 'b n d -> b d n' + in_proj

    pk = _pack_params(params, cfg)
    opad = pk["opad"]
    Bt = _choose_batch_tile(B, S)
    grid = (B // Bt,)

    # im2col, transposed to (B*CPP, N) and cast to bf16 in the wrapper: the only
    # per-step input DMA is half-width, and both embed matmuls contract minor dims.
    xp = _im2col(x, P)                                          # (B, N, CPP)
    xp_t = jnp.transpose(xp, (0, 2, 1)).reshape(B * CPP, N).astype(jnp.bfloat16)

    weight_args = [pk["w_in"], pk["wpt"], pk["embed_add"], pk["lmisc"],
                   pk["wattn"], pk["w12"], pk["b12"], pk["w3"],
                   pk["fin"], pk["w_out"], pk["b_out"]]
    args = [xp_t] + weight_args

    def _const_spec(a):
        nd = a.ndim
        return pl.BlockSpec(a.shape, lambda g, _nd=nd: (0,) * _nd)

    in_specs = [pl.BlockSpec((Bt * CPP, N), lambda g: (g, 0))]
    in_specs += [_const_spec(a) for a in weight_args]
    out_specs = pl.BlockSpec((Bt * S, opad), lambda g: (g, 0))

    # Advisory cost estimate for XLA's scheduler.
    attn_flops = 2 * S * D * 3 * D + 4 * S * S * D + 2 * S * D * D
    glu_flops = 2 * S * D * 2 * M + 2 * S * M * D
    flops = B * (2 * CPP * N * D + 2 * D * CPP * D
                 + L * (attn_flops + glu_flops) + 2 * S * D * opad)
    transcendentals = B * (L * (H * S * S + S * M) + S * (2 * L + 1))
    bytes_accessed = sum(int(a.size) * a.dtype.itemsize for a in args)
    bytes_accessed += B * S * opad * 4

    # Explicit VMEM budget (resident weight slabs + double-buffered step blocks).
    # TODO(synk): for production-size configs (large D/M/L) stream per-layer weight
    # blocks over an extra 'arbitrary' grid axis instead of keeping all layers
    # resident (v7x has only 64 MiB VMEM per TensorCore).
    vmem_limit = int(min(112 * 2**20,
                         max(32 * 2**20, 2 * bytes_accessed + (8 << 20))))

    kernel = functools.partial(
        _encoder_kernel, bt=Bt, num_layers=L, num_heads=H, head_dim=hd,
        dim=D, mid=M, cpp=CPP)

    out = pl.pallas_call(
        kernel,
        grid=grid,
        in_specs=in_specs,
        out_specs=out_specs,
        out_shape=jax.ShapeDtypeStruct((B * S, opad), jnp.float32),
        compiler_params=pltpu.CompilerParams(
            dimension_semantics=("parallel",),
            vmem_limit_bytes=vmem_limit),
        cost_estimate=pl.CostEstimate(
            flops=int(flops), transcendentals=int(transcendentals),
            bytes_accessed=int(bytes_accessed)),
    )(*args)

    # Kernel stores a lane-dense 128-wide slab; slice back to the true out_dim.
    return out.reshape(B, S, opad)[:, :, :O]


# ----------------------------------------------------------------------------
# Pure-JAX reference (follows the PyTorch module op-for-op, f32)
# ----------------------------------------------------------------------------
def reference_forward(x, params, cfg):
    P, D, H = cfg["patch_size"], cfg["hidden_channels"], cfg["num_heads"]
    hd = D // H
    xp = _im2col(x, P)                                          # (B, N, CPP)
    patches = xp @ params["w_patch"] + params["b_patch"]        # (B, N, D)
    h = jnp.transpose(patches, (0, 2, 1))                       # 'b n d -> b d n'
    h = h @ params["w_in"] + params["b_in"]                     # (B, D, D)
    if cfg["use_ape"]:
        h = h + _sincos_pe(D, D, cfg["theta_base"])[None]
    for lp in params["layers"]:
        xn = _layer_norm(h, lp["tn_g"], lp["tn_b"])
        q = (xn @ lp["wq"] + lp["bq"]).reshape(*h.shape[:2], H, hd)
        k = (xn @ lp["wk"] + lp["bk"]).reshape(*h.shape[:2], H, hd)
        v = (xn @ lp["wv"] + lp["bv"]).reshape(*h.shape[:2], H, hd)
        s = jnp.einsum("bqhd,bkhd->bhqk", q, k) / math.sqrt(hd)
        p = jax.nn.softmax(s, axis=-1)
        pv = jnp.einsum("bhqk,bkhd->bqhd", p, v).reshape(h.shape)
        h = h + pv @ lp["wo"] + lp["bo"]
        xn2 = _layer_norm(h, lp["cn_g"], lp["cn_b"])
        u1 = xn2 @ lp["w1"] + lp["b1"]
        u2 = xn2 @ lp["w2"] + lp["b2"]
        h = h + (jax.nn.silu(u1) * u2) @ lp["w3"] + lp["b3"]
    xn = _layer_norm(h, params["g_fn"], params["b_fn"])
    return xn @ params["w_out"] + params["b_out"]


# ----------------------------------------------------------------------------
# Deterministic synthetic parameter init (matches module __init__ shapes)
# ----------------------------------------------------------------------------
def init_params(key, cfg):
    C, P = cfg["in_channels"], cfg["patch_size"]
    D = cfg["hidden_channels"]
    N = (cfg["image_size"] // P) ** 2
    M, O, L = cfg["mid_dim"], cfg["embed_dim"], cfg["num_layers"]
    keys = jax.random.split(key, 1 + L)

    def w(k, shape):
        return jax.random.normal(k, shape, jnp.float32) * 0.02

    kt = jax.random.split(keys[0], 8)
    params = {
        "w_patch": w(kt[0], (C * P * P, D)),     # Conv2d(C, D, P, P) im2col layout
        "b_patch": w(kt[1], (D,)),
        "w_in": w(kt[2], (N, D)),                # Linear(num_patch, D) weight^T
        "b_in": w(kt[3], (D,)),
        "g_fn": 1.0 + w(kt[4], (D,)),
        "b_fn": w(kt[5], (D,)),
        "w_out": w(kt[6], (D, O)),               # Linear(D, out_dim) weight^T
        "b_out": w(kt[7], (O,)),
        "layers": [],
    }
    for li in range(L):
        lk = jax.random.split(keys[1 + li], 18)
        params["layers"].append({
            "tn_g": 1.0 + w(lk[0], (D,)), "tn_b": w(lk[1], (D,)),
            "wq": w(lk[2], (D, D)), "bq": w(lk[3], (D,)),
            "wk": w(lk[4], (D, D)), "bk": w(lk[5], (D,)),
            "wv": w(lk[6], (D, D)), "bv": w(lk[7], (D,)),
            "wo": w(lk[8], (D, D)), "bo": w(lk[9], (D,)),
            "cn_g": 1.0 + w(lk[10], (D,)), "cn_b": w(lk[11], (D,)),
            "w1": w(lk[12], (D, M)), "b1": w(lk[13], (M,)),
            "w2": w(lk[14], (D, M)), "b2": w(lk[15], (M,)),
            "w3": w(lk[16], (M, D)), "b3": w(lk[17], (D,)),
        })
    return params


if __name__ == "__main__":
    cfg = dict(
        image_size=16,
        patch_size=4,
        in_channels=4,
        hidden_channels=32,   # cfg.hidden_channels (transformer embed_dim == seq len)
        embed_dim=16,         # cfg.embed_dim (encoder output dim)
        num_heads=2,
        mid_dim=64,
        num_layers=2,
        use_ape=True,
        theta_base=10000.0,
    )
    key = jax.random.PRNGKey(0)
    kx, kp = jax.random.split(key)
    B = 4
    x = jax.random.normal(
        kx, (B, cfg["in_channels"], cfg["image_size"], cfg["image_size"]),
        jnp.float32)
    params = init_params(kp, cfg)

    fwd = jax.jit(functools.partial(feature_transformer_encoder, cfg=cfg))
    out = jax.block_until_ready(fwd(x, params))
    assert out.shape == (B, cfg["hidden_channels"], cfg["embed_dim"])
    assert bool(jnp.isfinite(out).all())

    ref = reference_forward(x, params, cfg)
    err = float(jnp.max(jnp.abs(out - ref)))
    assert err < 5e-2, f"max abs error vs reference: {err}"
    print("KERNEL_OK")
</pallas_src>

<mosaic_0001>
module attributes {stable_mosaic.version = 11 : i64} {
  func.func @_encoder_kernel(%arg0: i32, %arg1: memref<128x16xbf16, #tpu.memory_space<vmem>>, %arg2: memref<16x32xbf16, #tpu.memory_space<vmem>>, %arg3: memref<32x64xbf16, #tpu.memory_space<vmem>>, %arg4: memref<32x32xf32, #tpu.memory_space<vmem>>, %arg5: memref<2x9x32xf32, #tpu.memory_space<vmem>>, %arg6: memref<2x32x128xbf16, #tpu.memory_space<vmem>>, %arg7: memref<2x32x128xbf16, #tpu.memory_space<vmem>>, %arg8: memref<2x1x128xf32, #tpu.memory_space<vmem>>, %arg9: memref<2x64x32xbf16, #tpu.memory_space<vmem>>, %arg10: memref<2x32xf32, #tpu.memory_space<vmem>>, %arg11: memref<32x128xbf16, #tpu.memory_space<vmem>>, %arg12: memref<1x128xf32, #tpu.memory_space<vmem>>, %arg13: memref<64x128xf32, #tpu.memory_space<vmem>>) attributes {dimension_semantics = [#tpu.dimension_semantics<parallel>], iteration_bounds = array<i64: 2>, scalar_prefetch = 0 : i64, scratch_operands = 0 : i64, tpu.core_type = #tpu.core_type<tc>, window_params = [{transform_indices = @transform_0, window_bounds = array<i64: 128, 16>}, {pipeline_mode = #tpu.pipeline_mode<synchronous>, transform_indices = @transform_1, window_bounds = array<i64: 16, 32>}, {pipeline_mode = #tpu.pipeline_mode<synchronous>, transform_indices = @transform_2, window_bounds = array<i64: 32, 64>}, {pipeline_mode = #tpu.pipeline_mode<synchronous>, transform_indices = @transform_3, window_bounds = array<i64: 32, 32>}, {pipeline_mode = #tpu.pipeline_mode<synchronous>, transform_indices = @transform_4, window_bounds = array<i64: 2, 9, 32>}, {pipeline_mode = #tpu.pipeline_mode<synchronous>, transform_indices = @transform_5, window_bounds = array<i64: 2, 32, 128>}, {pipeline_mode = #tpu.pipeline_mode<synchronous>, transform_indices = @transform_6, window_bounds = array<i64: 2, 32, 128>}, {pipeline_mode = #tpu.pipeline_mode<synchronous>, transform_indices = @transform_7, window_bounds = array<i64: 2, 1, 128>}, {pipeline_mode = #tpu.pipeline_mode<synchronous>, transform_indices = @transform_8, window_bounds = array<i64: 2, 64, 32>}, {pipeline_mode = #tpu.pipeline_mode<synchronous>, transform_indices = @transform_9, window_bounds = array<i64: 2, 32>}, {pipeline_mode = #tpu.pipeline_mode<synchronous>, transform_indices = @transform_10, window_bounds = array<i64: 32, 128>}, {pipeline_mode = #tpu.pipeline_mode<synchronous>, transform_indices = @transform_11, window_bounds = array<i64: 1, 128>}, {transform_indices = @transform_12, window_bounds = array<i64: 64, 128>}]} {
    %c0 = arith.constant 0 : index
    %c0_0 = arith.constant 0 : index
    %0 = vector.load %arg1[%c0, %c0_0] : memref<128x16xbf16, #tpu.memory_space<vmem>>, vector<128x16xbf16>
    %c0_1 = arith.constant 0 : index
    %c0_2 = arith.constant 0 : index
    %1 = vector.load %arg2[%c0_1, %c0_2] : memref<16x32xbf16, #tpu.memory_space<vmem>>, vector<16x32xbf16>
    %cst = arith.constant dense<0.000000e+00> : vector<128x32xf32>
    %2 = tpu.matmul %0, %1, %cst {dimension_numbers = #tpu.dot_dimension_numbers<[1], [0], [0], [1], [0, 0, 1, 1], [], []>} : vector<128x16xbf16>, vector<16x32xbf16>, vector<128x32xf32> -> vector<128x32xf32>
    %c0_3 = arith.constant 0 : index
    %c0_4 = arith.constant 0 : index
    %3 = vector.load %arg3[%c0_3, %c0_4] : memref<32x64xbf16, #tpu.memory_space<vmem>>, vector<32x64xbf16>
    %c0_5 = arith.constant 0 : index
    %c0_6 = arith.constant 0 : index
    %4 = vector.load %arg4[%c0_5, %c0_6] : memref<32x32xf32, #tpu.memory_space<vmem>>, vector<32x32xf32>
    %5 = vector.extract_strided_slice %2 {offsets = [0, 0], sizes = [64, 32], strides = [1, 1]} : vector<128x32xf32> to vector<64x32xf32>
    %6 = arith.truncf %5 : vector<64x32xf32> to vector<64x32xbf16>
    %cst_7 = arith.constant dense<0.000000e+00> : vector<32x32xf32>
    %7 = tpu.matmul %3, %6, %cst_7 {dimension_numbers = #tpu.dot_dimension_numbers<[1], [0], [0], [1], [0, 0, 1, 1], [], []>} : vector<32x64xbf16>, vector<64x32xbf16>, vector<32x32xf32> -> vector<32x32xf32>
    %8 = arith.addf %7, %4 : vector<32x32xf32>
    %9 = vector.extract_strided_slice %2 {offsets = [64, 0], sizes = [64, 32], strides = [1, 1]} : vector<128x32xf32> to vector<64x32xf32>
    %10 = arith.truncf %9 : vector<64x32xf32> to vector<64x32xbf16>
    %cst_8 = arith.constant dense<0.000000e+00> : vector<32x32xf32>
    %11 = tpu.matmul %3, %10, %cst_8 {dimension_numbers = #tpu.dot_dimension_numbers<[1], [0], [0], [1], [0, 0, 1, 1], [], []>} : vector<32x64xbf16>, vector<64x32xbf16>, vector<32x32xf32> -> vector<32x32xf32>
    %12 = arith.addf %11, %4 : vector<32x32xf32>
    %13 = tpu.concatenate %8, %12 in 0 : vector<32x32xf32>, vector<32x32xf32> -> vector<64x32xf32>
    %c0_9 = arith.constant 0 : index
    %c0_10 = arith.constant 0 : index
    %c0_11 = arith.constant 0 : index
    %14 = vector.load %arg5[%c0_9, %c0_10, %c0_11] : memref<2x9x32xf32, #tpu.memory_space<vmem>>, vector<1x9x32xf32>
    %15 = vector.shape_cast %14 : vector<1x9x32xf32> to vector<9x32xf32>
    %c0_12 = arith.constant 0 : index
    %c0_13 = arith.constant 0 : index
    %c0_14 = arith.constant 0 : index
    %16 = vector.load %arg6[%c0_12, %c0_13, %c0_14] : memref<2x32x128xbf16, #tpu.memory_space<vmem>>, vector<1x32x128xbf16>
    %17 = vector.shape_cast %16 : vector<1x32x128xbf16> to vector<32x128xbf16>
    %18 = vector.extract_strided_slice %15 {offsets = [0, 0], sizes = [1, 32], strides = [1, 1]} : vector<9x32xf32> to vector<1x32xf32>
    %19 = vector.extract_strided_slice %15 {offsets = [1, 0], sizes = [1, 32], strides = [1, 1]} : vector<9x32xf32> to vector<1x32xf32>
    %cst_15 = arith.constant dense<0.000000e+00> : vector<64xf32>
    %20 = vector.multi_reduction <add>, %13, %cst_15 [1] : vector<64x32xf32> to vector<64xf32>
    %21 = vector.shape_cast %20 : vector<64xf32> to vector<64x1xf32>
    %cst_16 = arith.constant 3.200000e+01 : f32
    %22 = vector.broadcast %cst_16 : f32 to vector<64x1xf32>
    %23 = arith.divf %21, %22 : vector<64x1xf32>
    %24 = vector.broadcast %23 : vector<64x1xf32> to vector<64x32xf32>
    %25 = arith.subf %13, %24 : vector<64x32xf32>
    %26 = arith.mulf %25, %25 : vector<64x32xf32>
    %cst_17 = arith.constant dense<0.000000e+00> : vector<64xf32>
    %27 = vector.multi_reduction <add>, %26, %cst_17 [1] : vector<64x32xf32> to vector<64xf32>
    %28 = vector.shape_cast %27 : vector<64xf32> to vector<64x1xf32>
    %cst_18 = arith.constant 3.200000e+01 : f32
    %29 = vector.broadcast %cst_18 : f32 to vector<64x1xf32>
    %30 = arith.divf %28, %29 : vector<64x1xf32>
    %31 = vector.broadcast %23 : vector<64x1xf32> to vector<64x32xf32>
    %32 = arith.subf %13, %31 : vector<64x32xf32>
    %cst_19 = arith.constant 9.99999974E-6 : f32
    %33 = vector.broadcast %cst_19 : f32 to vector<64x1xf32>
    %34 = arith.addf %30, %33 : vector<64x1xf32>
    %35 = math.rsqrt %34 : vector<64x1xf32>
    %36 = vector.broadcast %35 : vector<64x1xf32> to vector<64x32xf32>
    %37 = arith.mulf %32, %36 : vector<64x32xf32>
    %38 = vector.broadcast %18 : vector<1x32xf32> to vector<64x32xf32>
    %39 = arith.mulf %37, %38 : vector<64x32xf32>
    %40 = vector.broadcast %19 : vector<1x32xf32> to vector<64x32xf32>
    %41 = arith.addf %39, %40 : vector<64x32xf32>
    %42 = vector.extract_strided_slice %17 {offsets = [0, 0], sizes = [32, 96], strides = [1, 1]} : vector<32x128xbf16> to vector<32x96xbf16>
    %43 = arith.truncf %41 : vector<64x32xf32> to vector<64x32xbf16>
    %cst_20 = arith.constant dense<0.000000e+00> : vector<64x96xf32>
    %44 = tpu.matmul %43, %42, %cst_20 {dimension_numbers = #tpu.dot_dimension_numbers<[1], [0], [0], [1], [0, 0, 1, 1], [], []>} : vector<64x32xbf16>, vector<32x96xbf16>, vector<64x96xf32> -> vector<64x96xf32>
    %45 = vector.extract_strided_slice %44 {offsets = [0, 0], sizes = [64, 32], strides = [1, 1]} : vector<64x96xf32> to vector<64x32xf32>
    %46 = vector.extract_strided_slice %15 {offsets = [2, 0], sizes = [1, 32], strides = [1, 1]} : vector<9x32xf32> to vector<1x32xf32>
    %47 = vector.broadcast %46 : vector<1x32xf32> to vector<64x32xf32>
    %48 = arith.addf %45, %47 : vector<64x32xf32>
    %cst_21 = arith.constant 2.500000e-01 : f32
    %49 = vector.broadcast %cst_21 : f32 to vector<64x32xf32>
    %50 = arith.mulf %48, %49 : vector<64x32xf32>
    %51 = vector.shape_cast %50 : vector<64x32xf32> to vector<2x32x32xf32>
    %52 = arith.truncf %51 : vector<2x32x32xf32> to vector<2x32x32xbf16>
    %53 = vector.extract_strided_slice %44 {offsets = [0, 32], sizes = [64, 32], strides = [1, 1]} : vector<64x96xf32> to vector<64x32xf32>
    %54 = vector.extract_strided_slice %15 {offsets = [3, 0], sizes = [1, 32], strides = [1, 1]} : vector<9x32xf32> to vector<1x32xf32>
    %55 = vector.broadcast %54 : vector<1x32xf32> to vector<64x32xf32>
    %56 = arith.addf %53, %55 : vector<64x32xf32>
    %57 = vector.shape_cast %56 : vector<64x32xf32> to vector<2x32x32xf32>
    %58 = arith.truncf %57 : vector<2x32x32xf32> to vector<2x32x32xbf16>
    %59 = vector.extract_strided_slice %44 {offsets = [0, 64], sizes = [64, 32], strides = [1, 1]} : vector<64x96xf32> to vector<64x32xf32>
    %60 = vector.extract_strided_slice %15 {offsets = [4, 0], sizes = [1, 32], strides = [1, 1]} : vector<9x32xf32> to vector<1x32xf32>
    %61 = vector.broadcast %60 : vector<1x32xf32> to vector<64x32xf32>
    %62 = arith.addf %59, %61 : vector<64x32xf32>
    %63 = vector.shape_cast %62 : vector<64x32xf32> to vector<2x32x32xf32>
    %64 = arith.truncf %63 : vector<2x32x32xf32> to vector<2x32x32xbf16>
    %65 = vector.extract_strided_slice %52 {offsets = [0, 0, 0], sizes = [2, 32, 16], strides = [1, 1, 1]} : vector<2x32x32xbf16> to vector<2x32x16xbf16>
    %66 = vector.extract_strided_slice %58 {offsets = [0, 0, 0], sizes = [2, 32, 16], strides = [1, 1, 1]} : vector<2x32x32xbf16> to vector<2x32x16xbf16>
    "tpu.trace_start"() <{level = 10 : i32, message = "bqd,bkd->bqk"}> : () -> ()
    %cst_22 = arith.constant dense<0.000000e+00> : vector<2x32x32xf32>
    %67 = tpu.matmul %65, %66, %cst_22 {dimension_numbers = #tpu.dot_dimension_numbers<[2], [2], [1], [1], [0, 0, 0, 1, 1, 1], [0], [0]>} : vector<2x32x16xbf16>, vector<2x32x16xbf16>, vector<2x32x32xf32> -> vector<2x32x32xf32>
    "tpu.trace_stop"() : () -> ()
    %cst_23 = arith.constant dense<0xFF800000> : vector<2x32xf32>
    %68 = vector.multi_reduction <maximumf>, %67, %cst_23 [2] : vector<2x32x32xf32> to vector<2x32xf32>
    %69 = vector.shape_cast %68 : vector<2x32xf32> to vector<2x32x1xf32>
    %70 = vector.broadcast %69 : vector<2x32x1xf32> to vector<2x32x32xf32>
    %71 = arith.subf %67, %70 : vector<2x32x32xf32>
    %72 = math.exp %71 : vector<2x32x32xf32>
    %cst_24 = arith.constant dense<0.000000e+00> : vector<2x32xf32>
    %73 = vector.multi_reduction <add>, %72, %cst_24 [2] : vector<2x32x32xf32> to vector<2x32xf32>
    %74 = vector.shape_cast %73 : vector<2x32xf32> to vector<2x32x1xf32>
    %75 = tpu.reciprocal %74 {approx = true} : vector<2x32x1xf32> -> vector<2x32x1xf32>
    %76 = vector.broadcast %75 : vector<2x32x1xf32> to vector<2x32x32xf32>
    %77 = arith.mulf %72, %76 : vector<2x32x32xf32>
    %78 = arith.truncf %77 : vector<2x32x32xf32> to vector<2x32x32xbf16>
    %79 = vector.extract_strided_slice %64 {offsets = [0, 0, 0], sizes = [2, 32, 16], strides = [1, 1, 1]} : vector<2x32x32xbf16> to vector<2x32x16xbf16>
    "tpu.trace_start"() <{level = 10 : i32, message = "bqk,bkd->bqd"}> : () -> ()
    %cst_25 = arith.constant dense<0.000000e+00> : vector<2x32x16xf32>
    %80 = tpu.matmul %78, %79, %cst_25 {dimension_numbers = #tpu.dot_dimension_numbers<[2], [1], [1], [2], [0, 0, 0, 1, 1, 2], [0], [0]>} : vector<2x32x32xbf16>, vector<2x32x16xbf16>, vector<2x32x16xf32> -> vector<2x32x16xf32>
    "tpu.trace_stop"() : () -> ()
    %81 = vector.extract_strided_slice %52 {offsets = [0, 0, 16], sizes = [2, 32, 16], strides = [1, 1, 1]} : vector<2x32x32xbf16> to vector<2x32x16xbf16>
    %82 = vector.extract_strided_slice %58 {offsets = [0, 0, 16], sizes = [2, 32, 16], strides = [1, 1, 1]} : vector<2x32x32xbf16> to vector<2x32x16xbf16>
    "tpu.trace_start"() <{level = 10 : i32, message = "bqd,bkd->bqk"}> : () -> ()
    %cst_26 = arith.constant dense<0.000000e+00> : vector<2x32x32xf32>
    %83 = tpu.matmul %81, %82, %cst_26 {dimension_numbers = #tpu.dot_dimension_numbers<[2], [2], [1], [1], [0, 0, 0, 1, 1, 1], [0], [0]>} : vector<2x32x16xbf16>, vector<2x32x16xbf16>, vector<2x32x32xf32> -> vector<2x32x32xf32>
    "tpu.trace_stop"() : () -> ()
    %cst_27 = arith.constant dense<0xFF800000> : vector<2x32xf32>
    %84 = vector.multi_reduction <maximumf>, %83, %cst_27 [2] : vector<2x32x32xf32> to vector<2x32xf32>
    %85 = vector.shape_cast %84 : vector<2x32xf32> to vector<2x32x1xf32>
    %86 = vector.broadcast %85 : vector<2x32x1xf32> to vector<2x32x32xf32>
    %87 = arith.subf %83, %86 : vector<2x32x32xf32>
    %88 = math.exp %87 : vector<2x32x32xf32>
    %cst_28 = arith.constant dense<0.000000e+00> : vector<2x32xf32>
    %89 = vector.multi_reduction <add>, %88, %cst_28 [2] : vector<2x32x32xf32> to vector<2x32xf32>
    %90 = vector.shape_cast %89 : vector<2x32xf32> to vector<2x32x1xf32>
    %91 = tpu.reciprocal %90 {approx = true} : vector<2x32x1xf32> -> vector<2x32x1xf32>
    %92 = vector.broadcast %91 : vector<2x32x1xf32> to vector<2x32x32xf32>
    %93 = arith.mulf %88, %92 : vector<2x32x32xf32>
    %94 = arith.truncf %93 : vector<2x32x32xf32> to vector<2x32x32xbf16>
    %95 = vector.extract_strided_slice %64 {offsets = [0, 0, 16], sizes = [2, 32, 16], strides = [1, 1, 1]} : vector<2x32x32xbf16> to vector<2x32x16xbf16>
    "tpu.trace_start"() <{level = 10 : i32, message = "bqk,bkd->bqd"}> : () -> ()
    %cst_29 = arith.constant dense<0.000000e+00> : vector<2x32x16xf32>
    %96 = tpu.matmul %94, %95, %cst_29 {dimension_numbers = #tpu.dot_dimension_numbers<[2], [1], [1], [2], [0, 0, 0, 1, 1, 2], [0], [0]>} : vector<2x32x32xbf16>, vector<2x32x16xbf16>, vector<2x32x16xf32> -> vector<2x32x16xf32>
    "tpu.trace_stop"() : () -> ()
    %97 = tpu.concatenate %80, %96 in 2 : vector<2x32x16xf32>, vector<2x32x16xf32> -> vector<2x32x32xf32>
    %98 = vector.shape_cast %97 : vector<2x32x32xf32> to vector<64x32xf32>
    %99 = vector.extract_strided_slice %17 {offsets = [0, 96], sizes = [32, 32], strides = [1, 1]} : vector<32x128xbf16> to vector<32x32xbf16>
    %100 = arith.truncf %98 : vector<64x32xf32> to vector<64x32xbf16>
    %cst_30 = arith.constant dense<0.000000e+00> : vector<64x32xf32>
    %101 = tpu.matmul %100, %99, %cst_30 {dimension_numbers = #tpu.dot_dimension_numbers<[1], [0], [0], [1], [0, 0, 1, 1], [], []>} : vector<64x32xbf16>, vector<32x32xbf16>, vector<64x32xf32> -> vector<64x32xf32>
    %102 = arith.addf %13, %101 : vector<64x32xf32>
    %103 = vector.extract_strided_slice %15 {offsets = [5, 0], sizes = [1, 32], strides = [1, 1]} : vector<9x32xf32> to vector<1x32xf32>
    %104 = vector.broadcast %103 : vector<1x32xf32> to vector<64x32xf32>
    %105 = arith.addf %102, %104 : vector<64x32xf32>
    %106 = vector.extract_strided_slice %15 {offsets = [6, 0], sizes = [1, 32], strides = [1, 1]} : vector<9x32xf32> to vector<1x32xf32>
    %107 = vector.extract_strided_slice %15 {offsets = [7, 0], sizes = [1, 32], strides = [1, 1]} : vector<9x32xf32> to vector<1x32xf32>
    %cst_31 = arith.constant dense<0.000000e+00> : vector<64xf32>
    %108 = vector.multi_reduction <add>, %105, %cst_31 [1] : vector<64x32xf32> to vector<64xf32>
    %109 = vector.shape_cast %108 : vector<64xf32> to vector<64x1xf32>
    %cst_32 = arith.constant 3.200000e+01 : f32
    %110 = vector.broadcast %cst_32 : f32 to vector<64x1xf32>
    %111 = arith.divf %109, %110 : vector<64x1xf32>
    %112 = vector.broadcast %111 : vector<64x1xf32> to vector<64x32xf32>
    %113 = arith.subf %105, %112 : vector<64x32xf32>
    %114 = arith.mulf %113, %113 : vector<64x32xf32>
    %cst_33 = arith.constant dense<0.000000e+00> : vector<64xf32>
    %115 = vector.multi_reduction <add>, %114, %cst_33 [1] : vector<64x32xf32> to vector<64xf32>
    %116 = vector.shape_cast %115 : vector<64xf32> to vector<64x1xf32>
    %cst_34 = arith.constant 3.200000e+01 : f32
    %117 = vector.broadcast %cst_34 : f32 to vector<64x1xf32>
    %118 = arith.divf %116, %117 : vector<64x1xf32>
    %119 = vector.broadcast %111 : vector<64x1xf32> to vector<64x32xf32>
    %120 = arith.subf %105, %119 : vector<64x32xf32>
    %cst_35 = arith.constant 9.99999974E-6 : f32
    %121 = vector.broadcast %cst_35 : f32 to vector<64x1xf32>
    %122 = arith.addf %118, %121 : vector<64x1xf32>
    %123 = math.rsqrt %122 : vector<64x1xf32>
    %124 = vector.broadcast %123 : vector<64x1xf32> to vector<64x32xf32>
    %125 = arith.mulf %120, %124 : vector<64x32xf32>
    %126 = vector.broadcast %106 : vector<1x32xf32> to vector<64x32xf32>
    %127 = arith.mulf %125, %126 : vector<64x32xf32>
    %128 = vector.broadcast %107 : vector<1x32xf32> to vector<64x32xf32>
    %129 = arith.addf %127, %128 : vector<64x32xf32>
    %c0_36 = arith.constant 0 : index
    %c0_37 = arith.constant 0 : index
    %c0_38 = arith.constant 0 : index
    %130 = vector.load %arg7[%c0_36, %c0_37, %c0_38] : memref<2x32x128xbf16, #tpu.memory_space<vmem>>, vector<1x32x128xbf16>
    %131 = vector.shape_cast %130 : vector<1x32x128xbf16> to vector<32x128xbf16>
    %132 = arith.truncf %129 : vector<64x32xf32> to vector<64x32xbf16>
    %cst_39 = arith.constant dense<0.000000e+00> : vector<64x128xf32>
    %133 = tpu.matmul %132, %131, %cst_39 {dimension_numbers = #tpu.dot_dimension_numbers<[1], [0], [0], [1], [0, 0, 1, 1], [], []>} : vector<64x32xbf16>, vector<32x128xbf16>, vector<64x128xf32> -> vector<64x128xf32>
    %c0_40 = arith.constant 0 : index
    %c0_41 = arith.constant 0 : index
    %c0_42 = arith.constant 0 : index
    %134 = vector.load %arg8[%c0_40, %c0_41, %c0_42] : memref<2x1x128xf32, #tpu.memory_space<vmem>>, vector<1x1x128xf32>
    %135 = vector.shape_cast %134 : vector<1x1x128xf32> to vector<1x128xf32>
    %136 = vector.broadcast %135 : vector<1x128xf32> to vector<64x128xf32>
    %137 = arith.addf %133, %136 : vector<64x128xf32>
    %138 = vector.extract_strided_slice %137 {offsets = [0, 0], sizes = [64, 64], strides = [1, 1]} : vector<64x128xf32> to vector<64x64xf32>
    %139 = vector.extract_strided_slice %137 {offsets = [0, 64], sizes = [64, 64], strides = [1, 1]} : vector<64x128xf32> to vector<64x64xf32>
    %140 = arith.negf %138 : vector<64x64xf32>
    %141 = math.exp %140 : vector<64x64xf32>
    %cst_43 = arith.constant 1.000000e+00 : f32
    %142 = vector.broadcast %cst_43 : f32 to vector<64x64xf32>
    %143 = arith.addf %142, %141 : vector<64x64xf32>
    %144 = arith.divf %142, %143 : vector<64x64xf32>
    %145 = arith.mulf %138, %144 : vector<64x64xf32>
    %146 = arith.mulf %145, %139 : vector<64x64xf32>
    %c0_44 = arith.constant 0 : index
    %c0_45 = arith.constant 0 : index
    %c0_46 = arith.constant 0 : index
    %147 = vector.load %arg9[%c0_44, %c0_45, %c0_46] : memref<2x64x32xbf16, #tpu.memory_space<vmem>>, vector<1x64x32xbf16>
    %148 = vector.shape_cast %147 : vector<1x64x32xbf16> to vector<64x32xbf16>
    %149 = arith.truncf %146 : vector<64x64xf32> to vector<64x64xbf16>
    %cst_47 = arith.constant dense<0.000000e+00> : vector<64x32xf32>
    %150 = tpu.matmul %149, %148, %cst_47 {dimension_numbers = #tpu.dot_dimension_numbers<[1], [0], [0], [1], [0, 0, 1, 1], [], []>} : vector<64x64xbf16>, vector<64x32xbf16>, vector<64x32xf32> -> vector<64x32xf32>
    %151 = arith.addf %105, %150 : vector<64x32xf32>
    %152 = vector.extract_strided_slice %15 {offsets = [8, 0], sizes = [1, 32], strides = [1, 1]} : vector<9x32xf32> to vector<1x32xf32>
    %153 = vector.broadcast %152 : vector<1x32xf32> to vector<64x32xf32>
    %154 = arith.addf %151, %153 : vector<64x32xf32>
    %c1 = arith.constant 1 : index
    %c0_48 = arith.constant 0 : index
    %c0_49 = arith.constant 0 : index
    %155 = vector.load %arg5[%c1, %c0_48, %c0_49] : memref<2x9x32xf32, #tpu.memory_space<vmem>>, vector<1x9x32xf32>
    %156 = vector.shape_cast %155 : vector<1x9x32xf32> to vector<9x32xf32>
    %c1_50 = arith.constant 1 : index
    %c0_51 = arith.constant 0 : index
    %c0_52 = arith.constant 0 : index
    %157 = vector.load %arg6[%c1_50, %c0_51, %c0_52] : memref<2x32x128xbf16, #tpu.memory_space<vmem>>, vector<1x32x128xbf16>
    %158 = vector.shape_cast %157 : vector<1x32x128xbf16> to vector<32x128xbf16>
    %159 = vector.extract_strided_slice %156 {offsets = [0, 0], sizes = [1, 32], strides = [1, 1]} : vector<9x32xf32> to vector<1x32xf32>
    %160 = vector.extract_strided_slice %156 {offsets = [1, 0], sizes = [1, 32], strides = [1, 1]} : vector<9x32xf32> to vector<1x32xf32>
    %cst_53 = arith.constant dense<0.000000e+00> : vector<64xf32>
    %161 = vector.multi_reduction <add>, %154, %cst_53 [1] : vector<64x32xf32> to vector<64xf32>
    %162 = vector.shape_cast %161 : vector<64xf32> to vector<64x1xf32>
    %cst_54 = arith.constant 3.200000e+01 : f32
    %163 = vector.broadcast %cst_54 : f32 to vector<64x1xf32>
    %164 = arith.divf %162, %163 : vector<64x1xf32>
    %165 = vector.broadcast %164 : vector<64x1xf32> to vector<64x32xf32>
    %166 = arith.subf %154, %165 : vector<64x32xf32>
    %167 = arith.mulf %166, %166 : vector<64x32xf32>
    %cst_55 = arith.constant dense<0.000000e+00> : vector<64xf32>
    %168 = vector.multi_reduction <add>, %167, %cst_55 [1] : vector<64x32xf32> to vector<64xf32>
    %169 = vector.shape_cast %168 : vector<64xf32> to vector<64x1xf32>
    %cst_56 = arith.constant 3.200000e+01 : f32
    %170 = vector.broadcast %cst_56 : f32 to vector<64x1xf32>
    %171 = arith.divf %169, %170 : vector<64x1xf32>
    %172 = vector.broadcast %164 : vector<64x1xf32> to vector<64x32xf32>
    %173 = arith.subf %154, %172 : vector<64x32xf32>
    %cst_57 = arith.constant 9.99999974E-6 : f32
    %174 = vector.broadcast %cst_57 : f32 to vector<64x1xf32>
    %175 = arith.addf %171, %174 : vector<64x1xf32>
    %176 = math.rsqrt %175 : vector<64x1xf32>
    %177 = vector.broadcast %176 : vector<64x1xf32> to vector<64x32xf32>
    %178 = arith.mulf %173, %177 : vector<64x32xf32>
    %179 = vector.broadcast %159 : vector<1x32xf32> to vector<64x32xf32>
    %180 = arith.mulf %178, %179 : vector<64x32xf32>
    %181 = vector.broadcast %160 : vector<1x32xf32> to vector<64x32xf32>
    %182 = arith.addf %180, %181 : vector<64x32xf32>
    %183 = vector.extract_strided_slice %158 {offsets = [0, 0], sizes = [32, 96], strides = [1, 1]} : vector<32x128xbf16> to vector<32x96xbf16>
    %184 = arith.truncf %182 : vector<64x32xf32> to vector<64x32xbf16>
    %cst_58 = arith.constant dense<0.000000e+00> : vector<64x96xf32>
    %185 = tpu.matmul %184, %183, %cst_58 {dimension_numbers = #tpu.dot_dimension_numbers<[1], [0], [0], [1], [0, 0, 1, 1], [], []>} : vector<64x32xbf16>, vector<32x96xbf16>, vector<64x96xf32> -> vector<64x96xf32>
    %186 = vector.extract_strided_slice %185 {offsets = [0, 0], sizes = [64, 32], strides = [1, 1]} : vector<64x96xf32> to vector<64x32xf32>
    %187 = vector.extract_strided_slice %156 {offsets = [2, 0], sizes = [1, 32], strides = [1, 1]} : vector<9x32xf32> to vector<1x32xf32>
    %188 = vector.broadcast %187 : vector<1x32xf32> to vector<64x32xf32>
    %189 = arith.addf %186, %188 : vector<64x32xf32>
    %cst_59 = arith.constant 2.500000e-01 : f32
    %190 = vector.broadcast %cst_59 : f32 to vector<64x32xf32>
    %191 = arith.mulf %189, %190 : vector<64x32xf32>
    %192 = vector.shape_cast %191 : vector<64x32xf32> to vector<2x32x32xf32>
    %193 = arith.truncf %192 : vector<2x32x32xf32> to vector<2x32x32xbf16>
    %194 = vector.extract_strided_slice %185 {offsets = [0, 32], sizes = [64, 32], strides = [1, 1]} : vector<64x96xf32> to vector<64x32xf32>
    %195 = vector.extract_strided_slice %156 {offsets = [3, 0], sizes = [1, 32], strides = [1, 1]} : vector<9x32xf32> to vector<1x32xf32>
    %196 = vector.broadcast %195 : vector<1x32xf32> to vector<64x32xf32>
    %197 = arith.addf %194, %196 : vector<64x32xf32>
    %198 = vector.shape_cast %197 : vector<64x32xf32> to vector<2x32x32xf32>
    %199 = arith.truncf %198 : vector<2x32x32xf32> to vector<2x32x32xbf16>
    %200 = vector.extract_strided_slice %185 {offsets = [0, 64], sizes = [64, 32], strides = [1, 1]} : vector<64x96xf32> to vector<64x32xf32>
    %201 = vector.extract_strided_slice %156 {offsets = [4, 0], sizes = [1, 32], strides = [1, 1]} : vector<9x32xf32> to vector<1x32xf32>
    %202 = vector.broadcast %201 : vector<1x32xf32> to vector<64x32xf32>
    %203 = arith.addf %200, %202 : vector<64x32xf32>
    %204 = vector.shape_cast %203 : vector<64x32xf32> to vector<2x32x32xf32>
    %205 = arith.truncf %204 : vector<2x32x32xf32> to vector<2x32x32xbf16>
    %206 = vector.extract_strided_slice %193 {offsets = [0, 0, 0], sizes = [2, 32, 16], strides = [1, 1, 1]} : vector<2x32x32xbf16> to vector<2x32x16xbf16>
    %207 = vector.extract_strided_slice %199 {offsets = [0, 0, 0], sizes = [2, 32, 16], strides = [1, 1, 1]} : vector<2x32x32xbf16> to vector<2x32x16xbf16>
    "tpu.trace_start"() <{level = 10 : i32, message = "bqd,bkd->bqk"}> : () -> ()
    %cst_60 = arith.constant dense<0.000000e+00> : vector<2x32x32xf32>
    %208 = tpu.matmul %206, %207, %cst_60 {dimension_numbers = #tpu.dot_dimension_numbers<[2], [2], [1], [1], [0, 0, 0, 1, 1, 1], [0], [0]>} : vector<2x32x16xbf16>, vector<2x32x16xbf16>, vector<2x32x32xf32> -> vector<2x32x32xf32>
    "tpu.trace_stop"() : () -> ()
    %cst_61 = arith.constant dense<0xFF800000> : vector<2x32xf32>
    %209 = vector.multi_reduction <maximumf>, %208, %cst_61 [2] : vector<2x32x32xf32> to vector<2x32xf32>
    %210 = vector.shape_cast %209 : vector<2x32xf32> to vector<2x32x1xf32>
    %211 = vector.broadcast %210 : vector<2x32x1xf32> to vector<2x32x32xf32>
    %212 = arith.subf %208, %211 : vector<2x32x32xf32>
    %213 = math.exp %212 : vector<2x32x32xf32>
    %cst_62 = arith.constant dense<0.000000e+00> : vector<2x32xf32>
    %214 = vector.multi_reduction <add>, %213, %cst_62 [2] : vector<2x32x32xf32> to vector<2x32xf32>
    %215 = vector.shape_cast %214 : vector<2x32xf32> to vector<2x32x1xf32>
    %216 = tpu.reciprocal %215 {approx = true} : vector<2x32x1xf32> -> vector<2x32x1xf32>
    %217 = vector.broadcast %216 : vector<2x32x1xf32> to vector<2x32x32xf32>
    %218 = arith.mulf %213, %217 : vector<2x32x32xf32>
    %219 = arith.truncf %218 : vector<2x32x32xf32> to vector<2x32x32xbf16>
    %220 = vector.extract_strided_slice %205 {offsets = [0, 0, 0], sizes = [2, 32, 16], strides = [1, 1, 1]} : vector<2x32x32xbf16> to vector<2x32x16xbf16>
    "tpu.trace_start"() <{level = 10 : i32, message = "bqk,bkd->bqd"}> : () -> ()
    %cst_63 = arith.constant dense<0.000000e+00> : vector<2x32x16xf32>
    %221 = tpu.matmul %219, %220, %cst_63 {dimension_numbers = #tpu.dot_dimension_numbers<[2], [1], [1], [2], [0, 0, 0, 1, 1, 2], [0], [0]>} : vector<2x32x32xbf16>, vector<2x32x16xbf16>, vector<2x32x16xf32> -> vector<2x32x16xf32>
    "tpu.trace_stop"() : () -> ()
    %222 = vector.extract_strided_slice %193 {offsets = [0, 0, 16], sizes = [2, 32, 16], strides = [1, 1, 1]} : vector<2x32x32xbf16> to vector<2x32x16xbf16>
    %223 = vector.extract_strided_slice %199 {offsets = [0, 0, 16], sizes = [2, 32, 16], strides = [1, 1, 1]} : vector<2x32x32xbf16> to vector<2x32x16xbf16>
    "tpu.trace_start"() <{level = 10 : i32, message = "bqd,bkd->bqk"}> : () -> ()
    %cst_64 = arith.constant dense<0.000000e+00> : vector<2x32x32xf32>
    %224 = tpu.matmul %222, %223, %cst_64 {dimension_numbers = #tpu.dot_dimension_numbers<[2], [2], [1], [1], [0, 0, 0, 1, 1, 1], [0], [0]>} : vector<2x32x16xbf16>, vector<2x32x16xbf16>, vector<2x32x32xf32> -> vector<2x32x32xf32>
    "tpu.trace_stop"() : () -> ()
    %cst_65 = arith.constant dense<0xFF800000> : vector<2x32xf32>
    %225 = vector.multi_reduction <maximumf>, %224, %cst_65 [2] : vector<2x32x32xf32> to vector<2x32xf32>
    %226 = vector.shape_cast %225 : vector<2x32xf32> to vector<2x32x1xf32>
    %227 = vector.broadcast %226 : vector<2x32x1xf32> to vector<2x32x32xf32>
    %228 = arith.subf %224, %227 : vector<2x32x32xf32>
    %229 = math.exp %228 : vector<2x32x32xf32>
    %cst_66 = arith.constant dense<0.000000e+00> : vector<2x32xf32>
    %230 = vector.multi_reduction <add>, %229, %cst_66 [2] : vector<2x32x32xf32> to vector<2x32xf32>
    %231 = vector.shape_cast %230 : vector<2x32xf32> to vector<2x32x1xf32>
    %232 = tpu.reciprocal %231 {approx = true} : vector<2x32x1xf32> -> vector<2x32x1xf32>
    %233 = vector.broadcast %232 : vector<2x32x1xf32> to vector<2x32x32xf32>
    %234 = arith.mulf %229, %233 : vector<2x32x32xf32>
    %235 = arith.truncf %234 : vector<2x32x32xf32> to vector<2x32x32xbf16>
    %236 = vector.extract_strided_slice %205 {offsets = [0, 0, 16], sizes = [2, 32, 16], strides = [1, 1, 1]} : vector<2x32x32xbf16> to vector<2x32x16xbf16>
    "tpu.trace_start"() <{level = 10 : i32, message = "bqk,bkd->bqd"}> : () -> ()
    %cst_67 = arith.constant dense<0.000000e+00> : vector<2x32x16xf32>
    %237 = tpu.matmul %235, %236, %cst_67 {dimension_numbers = #tpu.dot_dimension_numbers<[2], [1], [1], [2], [0, 0, 0, 1, 1, 2], [0], [0]>} : vector<2x32x32xbf16>, vector<2x32x16xbf16>, vector<2x32x16xf32> -> vector<2x32x16xf32>
    "tpu.trace_stop"() : () -> ()
    %238 = tpu.concatenate %221, %237 in 2 : vector<2x32x16xf32>, vector<2x32x16xf32> -> vector<2x32x32xf32>
    %239 = vector.shape_cast %238 : vector<2x32x32xf32> to vector<64x32xf32>
    %240 = vector.extract_strided_slice %158 {offsets = [0, 96], sizes = [32, 32], strides = [1, 1]} : vector<32x128xbf16> to vector<32x32xbf16>
    %241 = arith.truncf %239 : vector<64x32xf32> to vector<64x32xbf16>
    %cst_68 = arith.constant dense<0.000000e+00> : vector<64x32xf32>
    %242 = tpu.matmul %241, %240, %cst_68 {dimension_numbers = #tpu.dot_dimension_numbers<[1], [0], [0], [1], [0, 0, 1, 1], [], []>} : vector<64x32xbf16>, vector<32x32xbf16>, vector<64x32xf32> -> vector<64x32xf32>
    %243 = arith.addf %154, %242 : vector<64x32xf32>
    %244 = vector.extract_strided_slice %156 {offsets = [5, 0], sizes = [1, 32], strides = [1, 1]} : vector<9x32xf32> to vector<1x32xf32>
    %245 = vector.broadcast %244 : vector<1x32xf32> to vector<64x32xf32>
    %246 = arith.addf %243, %245 : vector<64x32xf32>
    %247 = vector.extract_strided_slice %156 {offsets = [6, 0], sizes = [1, 32], strides = [1, 1]} : vector<9x32xf32> to vector<1x32xf32>
    %248 = vector.extract_strided_slice %156 {offsets = [7, 0], sizes = [1, 32], strides = [1, 1]} : vector<9x32xf32> to vector<1x32xf32>
    %cst_69 = arith.constant dense<0.000000e+00> : vector<64xf32>
    %249 = vector.multi_reduction <add>, %246, %cst_69 [1] : vector<64x32xf32> to vector<64xf32>
    %250 = vector.shape_cast %249 : vector<64xf32> to vector<64x1xf32>
    %cst_70 = arith.constant 3.200000e+01 : f32
    %251 = vector.broadcast %cst_70 : f32 to vector<64x1xf32>
    %252 = arith.divf %250, %251 : vector<64x1xf32>
    %253 = vector.broadcast %252 : vector<64x1xf32> to vector<64x32xf32>
    %254 = arith.subf %246, %253 : vector<64x32xf32>
    %255 = arith.mulf %254, %254 : vector<64x32xf32>
    %cst_71 = arith.constant dense<0.000000e+00> : vector<64xf32>
    %256 = vector.multi_reduction <add>, %255, %cst_71 [1] : vector<64x32xf32> to vector<64xf32>
    %257 = vector.shape_cast %256 : vector<64xf32> to vector<64x1xf32>
    %cst_72 = arith.constant 3.200000e+01 : f32
    %258 = vector.broadcast %cst_72 : f32 to vector<64x1xf32>
    %259 = arith.divf %257, %258 : vector<64x1xf32>
    %260 = vector.broadcast %252 : vector<64x1xf32> to vector<64x32xf32>
    %261 = arith.subf %246, %260 : vector<64x32xf32>
    %cst_73 = arith.constant 9.99999974E-6 : f32
    %262 = vector.broadcast %cst_73 : f32 to vector<64x1xf32>
    %263 = arith.addf %259, %262 : vector<64x1xf32>
    %264 = math.rsqrt %263 : vector<64x1xf32>
    %265 = vector.broadcast %264 : vector<64x1xf32> to vector<64x32xf32>
    %266 = arith.mulf %261, %265 : vector<64x32xf32>
    %267 = vector.broadcast %247 : vector<1x32xf32> to vector<64x32xf32>
    %268 = arith.mulf %266, %267 : vector<64x32xf32>
    %269 = vector.broadcast %248 : vector<1x32xf32> to vector<64x32xf32>
    %270 = arith.addf %268, %269 : vector<64x32xf32>
    %c1_74 = arith.constant 1 : index
    %c0_75 = arith.constant 0 : index
    %c0_76 = arith.constant 0 : index
    %271 = vector.load %arg7[%c1_74, %c0_75, %c0_76] : memref<2x32x128xbf16, #tpu.memory_space<vmem>>, vector<1x32x128xbf16>
    %272 = vector.shape_cast %271 : vector<1x32x128xbf16> to vector<32x128xbf16>
    %273 = arith.truncf %270 : vector<64x32xf32> to vector<64x32xbf16>
    %cst_77 = arith.constant dense<0.000000e+00> : vector<64x128xf32>
    %274 = tpu.matmul %273, %272, %cst_77 {dimension_numbers = #tpu.dot_dimension_numbers<[1], [0], [0], [1], [0, 0, 1, 1], [], []>} : vector<64x32xbf16>, vector<32x128xbf16>, vector<64x128xf32> -> vector<64x128xf32>
    %c1_78 = arith.constant 1 : index
    %c0_79 = arith.constant 0 : index
    %c0_80 = arith.constant 0 : index
    %275 = vector.load %arg8[%c1_78, %c0_79, %c0_80] : memref<2x1x128xf32, #tpu.memory_space<vmem>>, vector<1x1x128xf32>
    %276 = vector.shape_cast %275 : vector<1x1x128xf32> to vector<1x128xf32>
    %277 = vector.broadcast %276 : vector<1x128xf32> to vector<64x128xf32>
    %278 = arith.addf %274, %277 : vector<64x128xf32>
    %279 = vector.extract_strided_slice %278 {offsets = [0, 0], sizes = [64, 64], strides = [1, 1]} : vector<64x128xf32> to vector<64x64xf32>
    %280 = vector.extract_strided_slice %278 {offsets = [0, 64], sizes = [64, 64], strides = [1, 1]} : vector<64x128xf32> to vector<64x64xf32>
    %281 = arith.negf %279 : vector<64x64xf32>
    %282 = math.exp %281 : vector<64x64xf32>
    %cst_81 = arith.constant 1.000000e+00 : f32
    %283 = vector.broadcast %cst_81 : f32 to vector<64x64xf32>
    %284 = arith.addf %283, %282 : vector<64x64xf32>
    %285 = arith.divf %283, %284 : vector<64x64xf32>
    %286 = arith.mulf %279, %285 : vector<64x64xf32>
    %287 = arith.mulf %286, %280 : vector<64x64xf32>
    %c1_82 = arith.constant 1 : index
    %c0_83 = arith.constant 0 : index
    %c0_84 = arith.constant 0 : index
    %288 = vector.load %arg9[%c1_82, %c0_83, %c0_84] : memref<2x64x32xbf16, #tpu.memory_space<vmem>>, vector<1x64x32xbf16>
    %289 = vector.shape_cast %288 : vector<1x64x32xbf16> to vector<64x32xbf16>
    %290 = arith.truncf %287 : vector<64x64xf32> to vector<64x64xbf16>
    %cst_85 = arith.constant dense<0.000000e+00> : vector<64x32xf32>
    %291 = tpu.matmul %290, %289, %cst_85 {dimension_numbers = #tpu.dot_dimension_numbers<[1], [0], [0], [1], [0, 0, 1, 1], [], []>} : vector<64x64xbf16>, vector<64x32xbf16>, vector<64x32xf32> -> vector<64x32xf32>
    %292 = arith.addf %246, %291 : vector<64x32xf32>
    %293 = vector.extract_strided_slice %156 {offsets = [8, 0], sizes = [1, 32], strides = [1, 1]} : vector<9x32xf32> to vector<1x32xf32>
    %294 = vector.broadcast %293 : vector<1x32xf32> to vector<64x32xf32>
    %295 = arith.addf %292, %294 : vector<64x32xf32>
    %c0_86 = arith.constant 0 : index
    %c0_87 = arith.constant 0 : index
    %296 = vector.load %arg10[%c0_86, %c0_87] : memref<2x32xf32, #tpu.memory_space<vmem>>, vector<2x32xf32>
    %297 = vector.extract_strided_slice %296 {offsets = [0, 0], sizes = [1, 32], strides = [1, 1]} : vector<2x32xf32> to vector<1x32xf32>
    %298 = vector.extract_strided_slice %296 {offsets = [1, 0], sizes = [1, 32], strides = [1, 1]} : vector<2x32xf32> to vector<1x32xf32>
    %cst_88 = arith.constant dense<0.000000e+00> : vector<64xf32>
    %299 = vector.multi_reduction <add>, %295, %cst_88 [1] : vector<64x32xf32> to vector<64xf32>
    %300 = vector.shape_cast %299 : vector<64xf32> to vector<64x1xf32>
    %cst_89 = arith.constant 3.200000e+01 : f32
    %301 = vector.broadcast %cst_89 : f32 to vector<64x1xf32>
    %302 = arith.divf %300, %301 : vector<64x1xf32>
    %303 = vector.broadcast %302 : vector<64x1xf32> to vector<64x32xf32>
    %304 = arith.subf %295, %303 : vector<64x32xf32>
    %305 = arith.mulf %304, %304 : vector<64x32xf32>
    %cst_90 = arith.constant dense<0.000000e+00> : vector<64xf32>
    %306 = vector.multi_reduction <add>, %305, %cst_90 [1] : vector<64x32xf32> to vector<64xf32>
    %307 = vector.shape_cast %306 : vector<64xf32> to vector<64x1xf32>
    %cst_91 = arith.constant 3.200000e+01 : f32
    %308 = vector.broadcast %cst_91 : f32 to vector<64x1xf32>
    %309 = arith.divf %307, %308 : vector<64x1xf32>
    %310 = vector.broadcast %302 : vector<64x1xf32> to vector<64x32xf32>
    %311 = arith.subf %295, %310 : vector<64x32xf32>
    %cst_92 = arith.constant 9.99999974E-6 : f32
    %312 = vector.broadcast %cst_92 : f32 to vector<64x1xf32>
    %313 = arith.addf %309, %312 : vector<64x1xf32>
    %314 = math.rsqrt %313 : vector<64x1xf32>
    %315 = vector.broadcast %314 : vector<64x1xf32> to vector<64x32xf32>
    %316 = arith.mulf %311, %315 : vector<64x32xf32>
    %317 = vector.broadcast %297 : vector<1x32xf32> to vector<64x32xf32>
    %318 = arith.mulf %316, %317 : vector<64x32xf32>
    %319 = vector.broadcast %298 : vector<1x32xf32> to vector<64x32xf32>
    %320 = arith.addf %318, %319 : vector<64x32xf32>
    %c0_93 = arith.constant 0 : index
    %c0_94 = arith.constant 0 : index
    %321 = vector.load %arg11[%c0_93, %c0_94] : memref<32x128xbf16, #tpu.memory_space<vmem>>, vector<32x128xbf16>
    %322 = arith.truncf %320 : vector<64x32xf32> to vector<64x32xbf16>
    %cst_95 = arith.constant dense<0.000000e+00> : vector<64x128xf32>
    %323 = tpu.matmul %322, %321, %cst_95 {dimension_numbers = #tpu.dot_dimension_numbers<[1], [0], [0], [1], [0, 0, 1, 1], [], []>} : vector<64x32xbf16>, vector<32x128xbf16>, vector<64x128xf32> -> vector<64x128xf32>
    %c0_96 = arith.constant 0 : index
    %c0_97 = arith.constant 0 : index
    %324 = vector.load %arg12[%c0_96, %c0_97] : memref<1x128xf32, #tpu.memory_space<vmem>>, vector<1x128xf32>
    %325 = vector.broadcast %324 : vector<1x128xf32> to vector<64x128xf32>
    %326 = arith.addf %323, %325 : vector<64x128xf32>
    %c0_98 = arith.constant 0 : index
    %c0_99 = arith.constant 0 : index
    %327 = vector.load %arg13[%c0_98, %c0_99] : memref<64x128xf32, #tpu.memory_space<vmem>>, vector<64x128xf32>
    tpu.vector_store %arg13[%c0_98, %c0_99], %326 {strides = array<i32>} : memref<64x128xf32, #tpu.memory_space<vmem>>, vector<64x128xf32>,
    return
  }
  func.func @transform_0(%arg0: i32) -> (i32, i32) {
    %c0_i32 = arith.constant 0 : i32
    %c0_i32_0 = arith.constant 0 : i32
    return %arg0, %c0_i32 : i32, i32
  }
  func.func @transform_1(%arg0: i32) -> (i32, i32) {
    %c0_i32 = arith.constant 0 : i32
    %c0_i32_0 = arith.constant 0 : i32
    %c0_i32_1 = arith.constant 0 : i32
    return %c0_i32, %c0_i32_0 : i32, i32
  }
  func.func @transform_2(%arg0: i32) -> (i32, i32) {
    %c0_i32 = arith.constant 0 : i32
    %c0_i32_0 = arith.constant 0 : i32
    %c0_i32_1 = arith.constant 0 : i32
    return %c0_i32, %c0_i32_0 : i32, i32
  }
  func.func @transform_3(%arg0: i32) -> (i32, i32) {
    %c0_i32 = arith.constant 0 : i32
    %c0_i32_0 = arith.constant 0 : i32
    %c0_i32_1 = arith.constant 0 : i32
    return %c0_i32, %c0_i32_0 : i32, i32
  }
  func.func @transform_4(%arg0: i32) -> (i32, i32, i32) {
    %c0_i32 = arith.constant 0 : i32
    %c0_i32_0 = arith.constant 0 : i32
    %c0_i32_1 = arith.constant 0 : i32
    %c0_i32_2 = arith.constant 0 : i32
    return %c0_i32, %c0_i32_0, %c0_i32_1 : i32, i32, i32
  }
  func.func @transform_5(%arg0: i32) -> (i32, i32, i32) {
    %c0_i32 = arith.constant 0 : i32
    %c0_i32_0 = arith.constant 0 : i32
    %c0_i32_1 = arith.constant 0 : i32
    %c0_i32_2 = arith.constant 0 : i32
    return %c0_i32, %c0_i32_0, %c0_i32_1 : i32, i32, i32
  }
  func.func @transform_6(%arg0: i32) -> (i32, i32, i32) {
    %c0_i32 = arith.constant 0 : i32
    %c0_i32_0 = arith.constant 0 : i32
    %c0_i32_1 = arith.constant 0 : i32
    %c0_i32_2 = arith.constant 0 : i32
    return %c0_i32, %c0_i32_0, %c0_i32_1 : i32, i32, i32
  }
  func.func @transform_7(%arg0: i32) -> (i32, i32, i32) {
    %c0_i32 = arith.constant 0 : i32
    %c0_i32_0 = arith.constant 0 : i32
    %c0_i32_1 = arith.constant 0 : i32
    %c0_i32_2 = arith.constant 0 : i32
    return %c0_i32, %c0_i32_0, %c0_i32_1 : i32, i32, i32
  }
  func.func @transform_8(%arg0: i32) -> (i32, i32, i32) {
    %c0_i32 = arith.constant 0 : i32
    %c0_i32_0 = arith.constant 0 : i32
    %c0_i32_1 = arith.constant 0 : i32
    %c0_i32_2 = arith.constant 0 : i32
    return %c0_i32, %c0_i32_0, %c0_i32_1 : i32, i32, i32
  }
  func.func @transform_9(%arg0: i32) -> (i32, i32) {
    %c0_i32 = arith.constant 0 : i32
    %c0_i32_0 = arith.constant 0 : i32
    %c0_i32_1 = arith.constant 0 : i32
    return %c0_i32, %c0_i32_0 : i32, i32
  }
  func.func @transform_10(%arg0: i32) -> (i32, i32) {
    %c0_i32 = arith.constant 0 : i32
    %c0_i32_0 = arith.constant 0 : i32
    %c0_i32_1 = arith.constant 0 : i32
    return %c0_i32, %c0_i32_0 : i32, i32
  }
  func.func @transform_11(%arg0: i32) -> (i32, i32) {
    %c0_i32 = arith.constant 0 : i32
    %c0_i32_0 = arith.constant 0 : i32
    %c0_i32_1 = arith.constant 0 : i32
    return %c0_i32, %c0_i32_0 : i32, i32
  }
  func.func @transform_12(%arg0: i32) -> (i32, i32) {
    %c0_i32 = arith.constant 0 : i32
    %c0_i32_0 = arith.constant 0 : i32
    return %arg0, %c0_i32 : i32, i32
  }
}

</mosaic_0001>

<bundles_post_ra>
// kernel: feature_transformer_encoder.1
= control target key start
LH: loop header
LB: loop body
LE: loop exit
PB: predicated region body
PF: predicated region fallthrough
CT: control target
= control target key end

     0   :  { %s5296_s21 = smov 0   ;;  %s6585_s0 = inlined_call_operand.vmem [shape: bf16[256,16], index: 0, kind: input, shape index: {}]   ;;  %s6586_s1 = inlined_call_operand.vmem [shape: bf16[16,32], index: 1, kind: input, shape index: {}]   ;;  %s6587_s2 = inlined_call_operand.vmem [shape: bf16[32,64], index: 2, kind: input, shape index: {}]   ;;  %s6588_s3 = inlined_call_operand.vmem [shape: f32[32,32], index: 3, kind: input, shape index: {}]   ;;  %s6589_s4 = inlined_call_operand.vmem [shape: f32[2,9,32], index: 4, kind: input, shape index: {}]   ;;  %s6590_s5 = inlined_call_operand.vmem [shape: bf16[2,32,128], index: 5, kind: input, shape index: {}]   ;;  %s6591_s6 = inlined_call_operand.vmem [shape: bf16[2,32,128], index: 6, kind: input, shape index: {}]   ;;  %s6592_s7 = inlined_call_operand.vmem [shape: f32[2,1,128], index: 7, kind: input, shape index: {}]   ;;  %s6593_s8 = inlined_call_operand.vmem [shape: bf16[2,64,32], index: 8, kind: input, shape index: {}]   ;;  %s6594_s9 = inlined_call_operand.vmem [shape: f32[2,32], index: 9, kind: input, shape index: {}]   ;;  %s6595_s10 = inlined_call_operand.vmem [shape: bf16[32,128], index: 10, kind: input, shape index: {}]   ;;  %s6596_s11 = inlined_call_operand.vmem [shape: f32[1,128], index: 11, kind: input, shape index: {}]   ;;  %s6597_s12 = inlined_call_operand.vmem [shape: f32[128,128], index: 12, kind: output, shape index: {}]  }
   0x1 LB: > { %s4253_s22 = sadd.s32 4294967295, %s5222_s21   ;;  %p4257_p0 = scmp.ge.s32.totalorder %s5222_s21, 1  ;;  %s5222_s21 = sphi %s5296_s21, %s22_s21  }
   0x2   : > { %p363_p1 = scmp.lt.s32.totalorder %s5222_s21, 3 }
   0x4   : > { %p364_p2 = pnand %p4257_p0, %p363_p1 }
   0x5   : > { %v4913_v0 = vld [vmem:[%s6586_s1] sm:$0xff] (!%p364_p2)   ;;  %s4258_s25 = sshll.u32 (!%p364_p2), %s4253_s22, 4  ;;  %vm482_vm0 = vcmask (!%p364_p2), 130048   ;;  %vm626_vm1 = vcmask (!%p364_p2), 523264   ;;  %v4923_v25 = vld [vmem:[%s6587_s2 + $0x8] sm:$0xff] (!%p364_p2)   ;;  %v610_v35 = vld [vmem:[%s6588_s3 + $0x10] sm:$0xff] (!%p364_p2) }
   0x6   : > { %367 = sbr.rel (%p364_p2) target bundleno = 7839 (0x1e9f), region = 68  ;;  %p406_p3 = scmp.lt.s32.totalorder (!%p364_p2), %s4258_s25, 31  ;;  %4556 = vmatprep.subr.bf16.mxu0 (!%p364_p2), %v4913_v0  ;;  %v4922_v9 = vld [vmem:[%s6587_s2] sm:$0xff] (!%p364_p2)   ;;  %v611_v38 = vld [vmem:[%s6588_s3 + $0x18] sm:$0xff] (!%p364_p2)  ;;  %vm741_vm2 = vcmask (!%p364_p2), 261120   ;;  %v609_v41 = vld [vmem:[%s6588_s3 + $0x8] sm:$0xff] (!%p364_p2) }
   0x7   : > { %4557 = vmatpush3.bf16.msra.mxu0 (!%p364_p2), %v4913_v0  ;;  %4582 = vmatprep.mubr.msk.bf16.mxu1 (!%p364_p2), %vm626_vm1, %v4922_v9  ;;  %v608_v36 = vld [vmem:[%s6588_s3] sm:$0xff] (!%p364_p2)  ;;  %s5224_s14 = smov (!%p364_p2), 32   ;;  %s5225_s15 = smov (!%p364_p2), 96  }
   0x8   : > { %s5226_s16 = smov (!%p364_p2), 64   ;;  %s5227_s17 = smov (!%p364_p2), 112  }
   0x9   : > { %s5228_s18 = smov (!%p364_p2), 80   ;;  %s5229_s19 = smov (!%p364_p2), 48  }
   0xa   : > { %s5230_s20 = smov (!%p364_p2), 16   ;;  %s4260_s13 = sshll.u32 (!%p364_p2), %s4253_s22, 3 }
   0xb   : > { %p412_p4 = scmp.lt.s32.totalorder (!%p364_p2), %s4260_s13, 15 }
   0xd   : > { %s6599_s25 = smov (!%p406_p3, %s4258_s25), 31  ;;  %s6601_s13 = smov (!%p412_p4, %s4260_s13), 15 }
   0xe   : > { %s4259_s26 = sshll.u32 %s6599_s25, 2  ;;  %s4261_s23 = sshll.u32 %s6601_s13, 3 }
   0xf   : > { %s409_s29 = scalar_lea.vmem %s6585_s0, %s4259_s26  ;;  %s415_s28 = scalar_lea.vmem %s6597_s12, %s4261_s23 }
  0x10   : > { %v4914_v1 = vld [vmem:[%s409_s29] sm:$0xff]   ;;  %v4915_v2 = vld [vmem:[%s409_s29 + $0x8] sm:$0xff]   ;;  %v4916_v3 = vld [vmem:[%s409_s29 + $0x10] sm:$0xff]  }
  0x11   : > { %4558 = vmatprep.mubr.msk.bf16.mxu0 %vm482_vm0, %v4914_v1  ;;  %v4917_v4 = vld [vmem:[%s409_s29 + $0x18] sm:$0xff]   ;;  %v4918_v5 = vld [vmem:[%s409_s29 + $0x20] sm:$0xff]   ;;  %v4919_v6 = vld [vmem:[%s409_s29 + $0x28] sm:$0xff]  }
  0x12   : > { %4559 = vmatmul.mubr.msk.bf16.vlgmr.msra.gmra.mrb[0].mxu0 %vm482_vm0, %v4915_v2  ;;  %v4920_v7 = vld [vmem:[%s409_s29 + $0x30] sm:$0xff]   ;;  %v4921_v8 = vld [vmem:[%s409_s29 + $0x38] sm:$0xff]  }
  0x13   : > { %4562 = vmatprep.mubr.msk.bf16.mxu0 %vm482_vm0, %v4916_v3 }
  0x1a   : > { %4563 = vmatmul.mubr.msk.bf16.gmra.mrb[4].mxu0 %vm482_vm0, %v4917_v4 }
  0x1b   : > { %4566 = vmatprep.mubr.msk.bf16.mxu0 %vm482_vm0, %v4918_v5 }
  0x22   : > { %4567 = vmatmul.mubr.msk.bf16.gmra.mrb[8].mxu0 %vm482_vm0, %v4919_v6 }
  0x23   : > { %4570 = vmatprep.mubr.msk.bf16.mxu0 %vm482_vm0, %v4920_v7 }
  0x2a   : > { %4571 = vmatmul.mubr.msk.bf16.gmra.mrb[12].mxu0 %vm482_vm0, %v4921_v8 }
  0xe5   : > { %v4560_v10 = vpop.f32.mrb[0].mxu0 }
  0xe6   : > { %v541_v11 = vpop.f32.mrb[1].mxu0 }
  0xe7   : > { %v4561_v12 = vpop.f32.mrb[2].mxu0 }
  0xe8   : > { %v613_v13 = vpack.c.bf16 %v4561_v12, %v4560_v10  ;;  %v544_v14 = vpop.f32.mrb[3].mxu0 }
  0xe9   : > { %v612_v15 = vpack.c.bf16 %v544_v14, %v541_v11 }
  0xeb   : > { %4574 = vmatprep.subr.bf16.mxu1 %v612_v15 }
  0xec   : > { %4575 = vmatpush3.bf16.msra.mxu1 %v612_v15 }
  0xed   : > { %v4564_v16 = vpop.f32.mrb[4].mxu0  ;;  %4576 = vmatprep.subr.bf16.mxu1 %v613_v13 }
  0xee   : > { %v557_v17 = vpop.f32.mrb[5].mxu0 }
  0xef   : > { %v4565_v18 = vpop.f32.mrb[6].mxu0 }
  0xf0   : > { %v615_v19 = vpack.c.bf16 %v4565_v18, %v4564_v16  ;;  %v560_v20 = vpop.f32.mrb[7].mxu0  ;;  %4577 = vmatpush3.bf16.msra.mxu1 %v613_v13 }
  0xf1   : > { %v614_v21 = vpack.c.bf16 %v560_v20, %v557_v17 }
  0xf3   : > { %4578 = vmatprep.subr.bf16.mxu1 %v614_v21 }
  0xf4   : > { %4579 = vmatpush3.bf16.msra.mxu1 %v614_v21 }
  0xf5   : > { %v4568_v22 = vpop.f32.mrb[8].mxu0  ;;  %4580 = vmatprep.subr.bf16.mxu1 %v615_v19 }
  0xf6   : > { %v573_v23 = vpop.f32.mrb[9].mxu0 }
  0xf7   : > { %v4569_v24 = vpop.f32.mrb[10].mxu0 }
  0xf8   : > { %v683_v26 = vpack.c.bf16 %v4569_v24, %v4568_v22  ;;  %v576_v27 = vpop.f32.mrb[11].mxu0  ;;  %4581 = vmatpush3.bf16.msra.mxu1 %v615_v19 }
  0xf9   : > { %v682_v28 = vpack.c.bf16 %v576_v27, %v573_v23 }
  0xfb   : > { %4583 = vmatmul.mubr.msk.bf16.vlgmr.msra.gmra.mrb[0].mxu1 %vm626_vm1, %v4923_v25  ;;  %4586 = vmatprep.subr.bf16.mxu1 %v682_v28 }
  0xfc   : > { %4587 = vmatpush3.bf16.msra.mxu1 %v682_v28  ;;  %4594 = vmatprep.mubr.msk.bf16.mxu1 %vm626_vm1, %v4922_v9 }
  0xfd   : > { %v4572_v29 = vpop.f32.mrb[12].mxu0  ;;  %4588 = vmatprep.subr.bf16.mxu1 %v683_v26 }
  0xfe   : > { %v589_v30 = vpop.f32.mrb[13].mxu0 }
  0xff   : > { %v4573_v31 = vpop.f32.mrb[14].mxu0 }
 0x100   : > { %v685_v32 = vpack.c.bf16 %v4573_v31, %v4572_v29  ;;  %v592_v33 = vpop.f32.mrb[15].mxu0  ;;  %4589 = vmatpush3.bf16.msra.mxu1 %v683_v26 }
 0x101   : > { %v684_v34 = vpack.c.bf16 %v592_v33, %v589_v30 }
 0x103   : > { %4590 = vmatprep.subr.bf16.mxu1 %v684_v34 }
 0x104   : > { %4591 = vmatpush3.bf16.msra.mxu1 %v684_v34 }
 0x105   : > { %4592 = vmatprep.subr.bf16.mxu1 %v685_v32 }
 0x108   : > { %4593 = vmatpush3.bf16.msra.mxu1 %v685_v32 }
 0x10b   : > { %4595 = vmatmul.mubr.msk.bf16.vlgmr.msra.gmra.mrb[4].mxu1 %vm626_vm1, %v4923_v25 }
 0x1ce   : > { %v4584_v37 = vpop.f32.mrb[0].mxu1 }
 0x1cf   : > { %v5339_v39 = vadd.f32 %v4584_v37, %v610_v35  ;;  %v667_v40 = vpop.f32.mrb[1].mxu1 }
 0x1d0   : > { %v5344_v42 = vadd.f32 %v667_v40, %v608_v36  ;;  %v4585_v43 = vpop.f32.mrb[2].mxu1  ;;  %v5425_v40 = vld [vmem:[%s6590_s5] sm:$0xff]  }
 0x1d1   : > { %v5346_v44 = vadd.f32 %v4585_v43, %v611_v38  ;;  %v670_v45 = vpop.f32.mrb[3].mxu1  ;;  %v748_v46 = vsel %vm741_vm2, %v5339_v39, 0.0  ;;  %4598 = vmatprep.subr.bf16.mxu0 %v5425_v40  ;;  %v847_v43 = vlaneseq }
 0x1d2   : > { %v5350_v47 = vadd.f32 %v670_v45, %v609_v41  ;;  %749 = vadd.xlane.f32.xlu1 %v748_v46  ;;  %v742_v48 = vsel %vm741_vm2, %v5344_v42, 0.0  ;;  %4599 = vmatpush3.bf16.msra.mxu0 %v5425_v40 }
 0x1d3   : > { %743 = vadd.xlane.f32.xlu0 %v742_v48  ;;  %v751_v49 = vsel %vm741_vm2, %v5346_v44, 0.0  ;;  %v5436_v45 = vshrl.u32 %v847_v43, 7  ;;  %v5442_v48 = vld [vmem:[%s6589_s4] sm:$0xff] }
 0x1d4   : > { %v745_v50 = vsel %vm741_vm2, %v5350_v47, 0.0 }
 0x1d5   : > { %v990_v46 = vsub.s32 3, %v5436_v45 }
 0x1d6   : > { %752 = vadd.xlane.f32.xlu1 %v751_v49 }
 0x1d7   : > { %746 = vadd.xlane.f32.xlu0 %v745_v50  ;;  %v991_v49 = vrot.slane %v5442_v48, %v990_v46 }
 0x1de   : > { %v4596_v51 = vpop.f32.mrb[4].mxu1 }
 0x1df   : > { %v720_v52 = vpop.f32.mrb[5].mxu1  ;;  %v5360_v56 = vadd.f32 %v4596_v51, %v610_v35 }
 0x1e0   : > { %v5358_v53 = vadd.f32 %v720_v52, %v608_v36  ;;  %v4597_v54 = vpop.f32.mrb[6].mxu1 }
 0x1e1   : > { %v723_v55 = vpop.f32.mrb[7].mxu1  ;;  %v5366_v59 = vadd.f32 %v4597_v54, %v611_v38  ;;  %v760_v61 = vsel %vm741_vm2, %v5360_v56, 0.0 }
 0x1e2   : > { %v5362_v57 = vadd.f32 %v723_v55, %v609_v41  ;;  %v754_v58 = vsel %vm741_vm2, %v5358_v53, 0.0  ;;  %v5432_v41 = vld [vmem:[%s6590_s5 + $0x8] sm:$0xff]  }
 0x1e3   : > { %755 = vadd.xlane.f32.xlu0 %v754_v58  ;;  %v763_v62 = vsel %vm741_vm2, %v5366_v59, 0.0  ;;  %4600 = vmatprep.subr.bf16.mxu0 %v5432_v41 }
 0x1e4   : > { %v757_v60 = vsel %vm741_vm2, %v5362_v57, 0.0  ;;  %4601 = vmatpush3.bf16.msra.mxu0 %v5432_v41 }
 0x1e5   : > { %758 = vadd.xlane.f32.xlu1 %v757_v60 }
 0x1e7   : > { %761 = vadd.xlane.f32.xlu0 %v760_v61 }
 0x1e9   : > { %764 = vadd.xlane.f32.xlu1 %v763_v62 }
 0x25f   : > { %v750_v63 = vpop.xlane.xlu1 %749 }
 0x260   : > { %v769_v0 = vmul.f32 0.03125, %v750_v63  ;;  %v744_v1 = vpop.xlane.xlu0 %743 }
 0x261   : > { %v767_v2 = vmul.f32 0.03125, %v744_v1 }
 0x262   : > { %v5375_v3 = vsub.f32 %v5339_v39, %v769_v0 }
 0x263   : > { %v5378_v4 = vsub.f32 %v5344_v42, %v767_v2  ;;  %v753_v5 = vpop.xlane.xlu1 %752  ;;  %v5449_v2 = vsub.s32 0, %v5436_v45 }
 0x264   : > { %v770_v6 = vmul.f32 0.03125, %v753_v5  ;;  %v747_v7 = vpop.xlane.xlu0 %746  ;;  %v785_v13 = vmul.f32 %v5375_v3, %v5375_v3 }
 0x265   : > { %v768_v8 = vmul.f32 0.03125, %v747_v7  ;;  %v783_v9 = vmul.f32 %v5378_v4, %v5378_v4  ;;  %v5454_v7 = vsub.s32 1, %v5436_v45 }
 0x266   : > { %v5383_v10 = vsub.f32 %v5346_v44, %v770_v6  ;;  %v797_v16 = vsel %vm741_vm2, %v785_v13, 0.0  ;;  %v850_v6 = vrot.slane %v5442_v48, %v5449_v2 }
 0x267   : > { %v5386_v11 = vsub.f32 %v5350_v47, %v768_v8  ;;  %v791_v12 = vsel %vm741_vm2, %v783_v9, 0.0 }
 0x268   : > { %792 = vadd.xlane.f32.xlu0 %v791_v12  ;;  %v786_v17 = vmul.f32 %v5383_v10, %v5383_v10 }
 0x269   : > { %v784_v14 = vmul.f32 %v5386_v11, %v5386_v11 }
 0x26a   : > { %v800_v18 = vsel %vm741_vm2, %v786_v17, 0.0 }
 0x26b   : > { %v794_v15 = vsel %vm741_vm2, %v784_v14, 0.0 }
 0x26c   : > { %795 = vadd.xlane.f32.xlu1 %v794_v15  ;;  %798 = vadd.xlane.f32.xlu0 %v797_v16 }
 0x270   : > { %801 = vadd.xlane.f32.xlu1 %v800_v18  ;;  %v756_v19 = vpop.xlane.xlu0 %755  ;;  %v862_v18 = vrot.slane %v5442_v48, %v5454_v7 }
 0x271   : > { %v771_v20 = vmul.f32 0.03125, %v756_v19 }
 0x272   : > { %v759_v21 = vpop.xlane.xlu1 %758 }
 0x273   : > { %v5399_v22 = vsub.f32 %v5358_v53, %v771_v20  ;;  %v772_v23 = vmul.f32 0.03125, %v759_v21 }
 0x274   : > { %v762_v24 = vpop.xlane.xlu0 %761 }
 0x275   : > { %v5402_v25 = vsub.f32 %v5362_v57, %v772_v23  ;;  %v773_v26 = vmul.f32 0.03125, %v762_v24  ;;  %v787_v27 = vmul.f32 %v5399_v22, %v5399_v22 }
 0x276   : > { %v765_v28 = vpop.xlane.xlu1 %764 }
 0x277   : > { %v5407_v29 = vsub.f32 %v5360_v56, %v773_v26  ;;  %v774_v30 = vmul.f32 0.03125, %v765_v28  ;;  %v803_v31 = vsel %vm741_vm2, %v787_v27, 0.0  ;;  %v788_v32 = vmul.f32 %v5402_v25, %v5402_v25 }
 0x278   : > { %804 = vadd.xlane.f32.xlu0 %v803_v31 }
 0x279   : > { %v5413_v33 = vsub.f32 %v5366_v59, %v774_v30  ;;  %v806_v34 = vsel %vm741_vm2, %v788_v32, 0.0  ;;  %v789_v35 = vmul.f32 %v5407_v29, %v5407_v29 }
 0x27a   : > { %807 = vadd.xlane.f32.xlu1 %v806_v34 }
 0x27b   : > { %v809_v36 = vsel %vm741_vm2, %v789_v35, 0.0  ;;  %v790_v37 = vmul.f32 %v5413_v33, %v5413_v33 }
 0x27c   : > { %810 = vadd.xlane.f32.xlu0 %v809_v36 }
 0x27d   : > { %v812_v38 = vsel %vm741_vm2, %v790_v37, 0.0 }
 0x27e   : > { %813 = vadd.xlane.f32.xlu1 %v812_v38 }
 0x292   : > { %993 = vrot.lane.b32.xlu0 %v991_v49, %s5224_s14 }
 0x2f5   : > { %v793_v50 = vpop.xlane.xlu0 %792 }
 0x2f6   : > { %v815_v51 = vmul.f32 0.03125, %v793_v50 }
 0x2f8   : > { %v823_v52 = vadd.f32 1e-05, %v815_v51 }
 0x2f9   : > { %v796_v54 = vpop.xlane.xlu1 %795  ;;  %v799_v55 = vpop.xlane.xlu0 %798 }
 0x2fa   : > { %4942 = vrsqrt.f32 %v823_v52  ;;  %v816_v58 = vmul.f32 0.03125, %v796_v54  ;;  %v817_v60 = vmul.f32 0.03125, %v799_v55 }
 0x2fc   : > { %v824_v61 = vadd.f32 1e-05, %v816_v58  ;;  %v825_v62 = vadd.f32 1e-05, %v817_v60 }
 0x2fd   : > { %v802_v63 = vpop.xlane.xlu1 %801 }
 0x2fe   : > { %4944 = vrsqrt.f32 %v824_v61  ;;  %v818_v0 = vmul.f32 0.03125, %v802_v63 }
 0x2ff   : > { %4946 = vrsqrt.f32 %v825_v62 }
 0x300   : > { %v826_v1 = vadd.f32 1e-05, %v818_v0 }
 0x302   : > { %4948 = vrsqrt.f32 %v826_v1 }
 0x304   : > { %v4943_v5 = vpop.eup %4942 }
 0x305   : > { %v805_v8 = vpop.xlane.xlu0 %804  ;;  %v839_v9 = vmul.f32 %v4943_v5, %v5378_v4 }
 0x306   : > { %v819_v12 = vmul.f32 0.03125, %v805_v8 }
 0x307   : > { %v808_v13 = vpop.xlane.xlu1 %807  ;;  %v851_v21 = vmul.f32 %v850_v6, %v839_v9 }
 0x308   : > { %v4945_v14 = vpop.eup %4944  ;;  %v827_v15 = vadd.f32 1e-05, %v819_v12  ;;  %v820_v16 = vmul.f32 0.03125, %v808_v13 }
 0x309   : > { %v4947_v17 = vpop.eup %4946  ;;  %v811_v19 = vpop.xlane.xlu0 %810  ;;  %v840_v20 = vmul.f32 %v4945_v14, %v5386_v11  ;;  %v863_v35 = vadd.f32 %v862_v18, %v851_v21 }
 0x30a   : > { %v841_v23 = vmul.f32 %v4947_v17, %v5375_v3  ;;  %4950 = vrsqrt.f32 %v827_v15  ;;  %v828_v24 = vadd.f32 1e-05, %v820_v16  ;;  %v821_v26 = vmul.f32 0.03125, %v811_v19 }
 0x30b   : > { %v814_v27 = vpop.xlane.xlu1 %813  ;;  %v852_v4 = vmul.f32 %v850_v6, %v840_v20 }
 0x30c   : > { %v4949_v28 = vpop.eup %4948  ;;  %4952 = vrsqrt.f32 %v828_v24  ;;  %v829_v30 = vadd.f32 1e-05, %v821_v26  ;;  %v822_v31 = vmul.f32 0.03125, %v814_v27  ;;  %v853_v32 = vmul.f32 %v850_v6, %v841_v23 }
 0x30d   : > { %v842_v34 = vmul.f32 %v4949_v28, %v5383_v10  ;;  %v864_v36 = vadd.f32 %v862_v18, %v852_v4  ;;  %v994_v14 = vpop.permute.xlu0 %993 }
 0x30e   : > { %4954 = vrsqrt.f32 %v829_v30  ;;  %v830_v37 = vadd.f32 1e-05, %v822_v31  ;;  %v865_v3 = vadd.f32 %v862_v18, %v853_v32 }
 0x30f   : > { %v854_v11 = vmul.f32 %v850_v6, %v842_v34  ;;  %v871_v38 = vpack.c.bf16 %v864_v36, %v863_v35 }
 0x310   : > { %4956 = vrsqrt.f32 %v830_v37 }
 0x311   : > { %v866_v43 = vadd.f32 %v862_v18, %v854_v11  ;;  %4602 = vmatprep.mubr.msk.bf16.mxu0 %vm741_vm2, %v871_v38 }
 0x313   : > { %v872_v49 = vpack.c.bf16 %v866_v43, %v865_v3 }
 0x314   : > { %v4951_v50 = vpop.eup %4950 }
 0x315   : > { %4603 = vmatmul.mubr.msk.bf16.vlgmr.msra.gmra.mrb[16].mxu0 %vm741_vm2, %v872_v49  ;;  %v843_v51 = vmul.f32 %v4951_v50, %v5399_v22 }
 0x316   : > { %v4953_v52 = vpop.eup %4952 }
 0x317   : > { %v844_v10 = vmul.f32 %v4953_v52, %v5402_v25  ;;  %v855_v54 = vmul.f32 %v850_v6, %v843_v51  ;;  %v966_v25 = vsub.s32 2, %v5436_v45 }
 0x318   : > { %v4955_v55 = vpop.eup %4954 }
 0x319   : > { %v856_v58 = vmul.f32 %v850_v6, %v844_v10  ;;  %v845_v60 = vmul.f32 %v4955_v55, %v5407_v29  ;;  %v867_v62 = vadd.f32 %v862_v18, %v855_v54  ;;  %v967_v29 = vrot.slane %v5442_v48, %v966_v25 }
 0x31a   : > { %v4957_v61 = vpop.eup %4956 }
 0x31b   : > { %v868_v63 = vadd.f32 %v862_v18, %v856_v58  ;;  %v846_v0 = vmul.f32 %v4957_v61, %v5413_v33  ;;  %v857_v1 = vmul.f32 %v850_v6, %v845_v60 }
 0x31d   : > { %v873_v5 = vpack.c.bf16 %v868_v63, %v867_v62  ;;  %v858_v8 = vmul.f32 %v850_v6, %v846_v0  ;;  %v869_v9 = vadd.f32 %v862_v18, %v857_v1 }
 0x31f   : > { %4606 = vmatprep.mubr.msk.bf16.mxu0 %vm741_vm2, %v873_v5  ;;  %v870_v22 = vadd.f32 %v862_v18, %v858_v8 }
 0x321   : > { %v874_v12 = vpack.c.bf16 %v870_v22, %v869_v9 }
 0x323   : > { %4607 = vmatmul.mubr.msk.bf16.gmra.mrb[20].mxu0 %vm741_vm2, %v874_v12 }
 0x3e8   : > { %v5474_v13 = vpop.f32.mrb[16].mxu0 }
 0x3e9   : > { %v970_v33 = vadd.f32 %v5474_v13, %v967_v29  ;;  %v5477_v15 = vpop.f32.mrb[17].mxu0  ;;  %v998_v20 = vadd.f32 %v5474_v13, %v994_v14 }
 0x3ea   : > { %v968_v6 = vadd.f32 %v967_v29, %v5477_v15  ;;  %v5480_v16 = vpop.f32.mrb[18].mxu0  ;;  %v996_v21 = vadd.f32 %v994_v14, %v5477_v15 }
 0x3eb   : > { %v971_v17 = vadd.f32 %v5480_v16, %v967_v29  ;;  %v999_v18 = vadd.f32 %v5480_v16, %v994_v14  ;;  %v5484_v19 = vpop.f32.mrb[19].mxu0  ;;  %v978_v26 = vmul.f32 0.25, %v970_v33 }
 0x3ec   : > { %v969_v23 = vadd.f32 %v967_v29, %v5484_v19  ;;  %v997_v24 = vadd.f32 %v994_v14, %v5484_v19  ;;  %v976_v28 = vmul.f32 0.25, %v968_v6 }
 0x3ed   : > { %v979_v27 = vmul.f32 0.25, %v971_v17  ;;  %v5490_v4 = vpack.c.bf16 %v999_v18, %v998_v20 }
 0x3ee   : > { %v977_v30 = vmul.f32 0.25, %v969_v23  ;;  %v5492_v31 = vpack.c.bf16 %v997_v24, %v996_v21 }
 0x3ef   : > { %v5494_v32 = vpack.c.bf16 %v979_v27, %v978_v26 }
 0x3f0   : > { %v5496_v34 = vpack.c.bf16 %v977_v30, %v976_v28  ;;  %1030 = vrot.lane.b32.xlu1 %v5492_v31, %s5225_s15 }
 0x3f2   : > { %4614 = vmatprep.mubr.msk.bf16.mxu1 %vm482_vm0, %v5496_v34 }
 0x3f4   : > { %1032 = vrot.lane.b32.xlu1 %v5490_v4, %s5225_s15 }
 0x3f6   : > { %v5504_v35 = vpop.f32.mrb[20].mxu0 }
 0x3f7   : > { %v974_v36 = vadd.f32 %v5504_v35, %v967_v29  ;;  %v5507_v37 = vpop.f32.mrb[21].mxu0  ;;  %v1002_v3 = vadd.f32 %v5504_v35, %v994_v14 }
 0x3f8   : > { %v972_v11 = vadd.f32 %v967_v29, %v5507_v37  ;;  %v5510_v38 = vpop.f32.mrb[22].mxu0  ;;  %v1000_v51 = vadd.f32 %v994_v14, %v5507_v37 }
 0x3f9   : > { %v975_v43 = vadd.f32 %v5510_v38, %v967_v29  ;;  %v1003_v49 = vadd.f32 %v5510_v38, %v994_v14  ;;  %v5515_v50 = vpop.f32.mrb[23].mxu0  ;;  %v982_v54 = vmul.f32 0.25, %v974_v36 }
 0x3fa   : > { %v973_v52 = vadd.f32 %v967_v29, %v5515_v50  ;;  %v1001_v10 = vadd.f32 %v994_v14, %v5515_v50  ;;  %v980_v60 = vmul.f32 0.25, %v972_v11 }
 0x3fb   : > { %v983_v55 = vmul.f32 0.25, %v975_v43  ;;  %v5520_v58 = vpack.c.bf16 %v1003_v49, %v1002_v3  ;;  %v1010_v3 = vsub.s32 4, %v5436_v45 }
 0x3fc   : > { %v981_v61 = vmul.f32 0.25, %v973_v52  ;;  %v5522_v62 = vpack.c.bf16 %v1001_v10, %v1000_v51 }
 0x3fd   : > { %v5524_v63 = vpack.c.bf16 %v983_v55, %v982_v54  ;;  %1099 = vrot.lane.b32.xlu0 %v5520_v58, %s5225_s15  ;;  %v1011_v43 = vrot.slane %v5442_v48, %v1010_v3 }
 0x3fe   : > { %v5528_v0 = vpack.c.bf16 %v981_v61, %v980_v60  ;;  %1097 = vrot.lane.b32.xlu1 %v5522_v62, %s5225_s15 }
 0x400   : > { %4622 = vmatprep.mubr.msk.bf16.mxu0 %vm482_vm0, %v5528_v0 }
 0x462   : > { %v1031_v1 = vpop.permute.xlu1 %1030 }
 0x463   : > { %4842 = vmatprep.subr.msk.bf16.mxu1 %vm482_vm0, %v1031_v1  ;;  %v1041_v5 = vsel %vm482_vm0, %v1031_v1, 0 }
 0x464   : > { %4611 = vmatpush3.bf16.xpose.msra.mxu1 %v1041_v5 }
 0x466   : > { %v1033_v8 = vpop.permute.xlu1 %1032 }
 0x467   : > { %4843 = vmatprep.subr.msk.bf16.mxu1 %vm482_vm0, %v1033_v8  ;;  %v1044_v9 = vsel %vm482_vm0, %v1033_v8, 0 }
 0x46c   : > { %4613 = vmatpush3.bf16.xpose.msra.mxu1 %v1044_v9 }
 0x46f   : > { %v1100_v29 = vpop.permute.xlu0 %1099 }
 0x470   : > { %v1098_v22 = vpop.permute.xlu1 %1097  ;;  %v1111_v14 = vsel %vm482_vm0, %v1100_v29, 0 }
 0x471   : > { %4844 = vmatprep.subr.msk.bf16.mxu0 %vm482_vm0, %v1098_v22  ;;  %v1108_v12 = vsel %vm482_vm0, %v1098_v22, 0 }
 0x472   : > { %4619 = vmatpush3.bf16.xpose.msra.mxu0 %v1108_v12 }
 0x473   : > { %4615 = vmatmul.mubr.msk.bf16.vlgmr.msra.gmra.mrb[8].mxu1 %vm482_vm0, %v5494_v32  ;;  %4845 = vmatprep.subr.msk.bf16.mxu0 %vm482_vm0, %v1100_v29 }
 0x47a   : > { %4621 = vmatpush3.bf16.xpose.msra.mxu0 %v1111_v14 }
 0x481   : > { %4623 = vmatmul.mubr.msk.bf16.vlgmr.msra.gmra.mrb[24].mxu0 %vm482_vm0, %v5524_v63 }
 0x546   : > { %v5546_v33 = vpop.f32.mrb[8].mxu1 }
 0x547   : > { %v5548_v6 = vpop.f32.mrb[9].mxu1  ;;  %v1168_v17 = vsel %vm741_vm2, %v5546_v33, -inf }
 0x548   : > { %1169 = vmax.xlane.f32.xlu0 %v1168_v17  ;;  %v5552_v18 = vpop.f32.mrb[10].mxu1  ;;  %v1162_v20 = vsel %vm741_vm2, %v5548_v6, -inf }
 0x549   : > { %1163 = vmax.xlane.f32.xlu1 %v1162_v20  ;;  %v5556_v21 = vpop.f32.mrb[11].mxu1  ;;  %v1171_v23 = vsel %vm741_vm2, %v5552_v18, -inf }
 0x54a   : > { %v1165_v24 = vsel %vm741_vm2, %v5556_v21, -inf }
 0x54c   : > { %1172 = vmax.xlane.f32.xlu0 %v1171_v23 }
 0x550   : > { %1166 = vmax.xlane.f32.xlu0 %v1165_v24 }
 0x554   : > { %v5562_v26 = vpop.f32.mrb[24].mxu0 }
 0x555   : > { %v1147_v27 = vpop.f32.mrb[25].mxu0  ;;  %v1180_v28 = vsel %vm741_vm2, %v5562_v26, -inf }
 0x556   : > { %1181 = vmax.xlane.f32.xlu1 %v1180_v28  ;;  %v5566_v30 = vpop.f32.mrb[26].mxu0  ;;  %v1174_v11 = vsel %vm741_vm2, %v1147_v27, -inf }
 0x557   : > { %v5568_v36 = vpop.f32.mrb[27].mxu0 }
 0x55a   : > { %1175 = vmax.xlane.f32.xlu1 %v1174_v11 }
 0x56b   : > { %1013 = vrot.lane.b32.xlu1 %v1011_v43, %s5226_s16 }
 0x5d6   : > { %v1164_v49 = vpop.xlane.xlu1 %1163 }
 0x5d7   : > { %v1186_v14 = vsub.f32 %v5548_v6, %v1164_v49 }
 0x5d9   : > { %v1194_v17 = vmul.f32 1.442695, %v1186_v14 }
 0x5e3   : > { %v1182_v51 = vpop.xlane.xlu1 %1181 }
 0x5e7   : > { %v1176_v52 = vpop.xlane.xlu1 %1175 }
 0x5eb   : > { %v1014_v10 = vpop.permute.xlu1 %1013 }
 0x5ec   : > { %v1018_v54 = vadd.f32 %v5474_v13, %v1014_v10  ;;  %v1019_v55 = vadd.f32 %v5480_v16, %v1014_v10  ;;  %v1016_v60 = vadd.f32 %v1014_v10, %v5477_v15  ;;  %v1017_v61 = vadd.f32 %v1014_v10, %v5484_v19 }
 0x5ed   : > { %v1020_v1 = vadd.f32 %v1014_v10, %v5507_v37  ;;  %v1021_v5 = vadd.f32 %v1014_v10, %v5515_v50  ;;  %v1022_v48 = vadd.f32 %v5504_v35, %v1014_v10  ;;  %v1023_v9 = vadd.f32 %v5510_v38, %v1014_v10 }
 0x5ee   : > { %v5583_v8 = vpack.c.bf16 %v1019_v55, %v1018_v54  ;;  %v5586_v22 = vpack.c.bf16 %v1017_v61, %v1016_v60  ;;  %v1190_v15 = vsub.f32 %v1147_v27, %v1176_v52  ;;  %v1183_v19 = vsel %vm741_vm2, %v5566_v30, -inf }
 0x5ef   : > { %v5588_v12 = vpack.c.bf16 %v1021_v5, %v1020_v1  ;;  %v5592_v13 = vpack.c.bf16 %v1023_v9, %v1022_v48  ;;  %v1177_v37 = vsel %vm741_vm2, %v5568_v36, -inf }
 0x5f0   : > { %1258 = vrot.lane.b32.xlu1 %v5583_v8, %s5226_s16  ;;  %1256 = vrot.lane.b32.xlu0 %v5586_v22, %s5226_s16  ;;  %v1202_v16 = vmul.f32 1.442695, %v1190_v15 }
 0x5f2   : > { %4958 = vpow2.f32 %v1202_v16 }
 0x5fc   : > { %v5598_v35 = vpop.eup %4958 }
 0x5fd   : > { %v1222_v38 = vsel %vm741_vm2, %v5598_v35, 0.0 }
 0x60f   : > { %1184 = vmax.xlane.f32.xlu0 %v1183_v19 }
 0x613   : > { %1178 = vmax.xlane.f32.xlu0 %v1177_v37 }
 0x614   : > { %1223 = vadd.xlane.f32.xlu1 %v1222_v38 }
 0x625   : > { %1382 = vrot.lane.b32.xlu1 %v5496_v34, %s5227_s17  ;;  %v1170_v34 = vpop.xlane.xlu0 %1169 }
 0x626   : > { %v1188_v50 = vsub.f32 %v5546_v33, %v1170_v34 }
 0x629   : > { %1459 = vrot.lane.b32.xlu1 %v5520_v58, %s5228_s18  ;;  %1319 = vrot.lane.b32.xlu0 %v5588_v12, %s5226_s16  ;;  %v1173_v29 = vpop.xlane.xlu0 %1172  ;;  %v1198_v58 = vmul.f32 1.442695, %v1188_v50 }
 0x62b   : > { %4960 = vpow2.f32 %v1198_v58 }
 0x62c   : > { %4962 = vpow2.f32 %v1194_v17 }
 0x62d   : > { %1455 = vrot.lane.b32.xlu1 %v5524_v63, %s5227_s17  ;;  %1321 = vrot.lane.b32.xlu0 %v5592_v13, %s5226_s16  ;;  %v1189_v63 = vsub.f32 %v5552_v18, %v1173_v29  ;;  %v1167_v20 = vpop.xlane.xlu0 %1166 }
 0x62e   : > { %v1187_v24 = vsub.f32 %v5556_v21, %v1167_v20 }
 0x62f   : > { %v1200_v23 = vmul.f32 1.442695, %v1189_v63 }
 0x631   : > { %1386 = vrot.lane.b32.xlu0 %v5492_v31, %s5228_s18  ;;  %4964 = vpow2.f32 %v1200_v23  ;;  %v1196_v31 = vmul.f32 1.442695, %v1187_v24 }
 0x633   : > { %4966 = vpow2.f32 %v1196_v31 }
 0x635   : > { %1388 = vrot.lane.b32.xlu0 %v5490_v4, %s5228_s18  ;;  %v1192_v4 = vsub.f32 %v5562_v26, %v1182_v51  ;;  %v5623_v27 = vpop.eup %4960 }
 0x636   : > { %v1216_v6 = vsel %vm741_vm2, %v5623_v27, 0.0  ;;  %v4963_v28 = vpop.eup %4962 }
 0x637   : > { %v1206_v33 = vmul.f32 1.442695, %v1192_v4  ;;  %v1210_v18 = vsel %vm741_vm2, %v4963_v28, 0.0 }
 0x639   : > { %4968 = vpow2.f32 %v1206_v33 }
 0x63b   : > { %v4965_v11 = vpop.eup %4964 }
 0x63c   : > { %v1219_v21 = vsel %vm741_vm2, %v4965_v11, 0.0 }
 0x63d   : > { %v4967_v43 = vpop.eup %4966 }
 0x63e   : > { %v1213_v26 = vsel %vm741_vm2, %v4967_v43, 0.0 }
 0x643   : > { %v5630_v49 = vpop.eup %4968 }
 0x644   : > { %v1228_v52 = vsel %vm741_vm2, %v5630_v49, 0.0 }
 0x654   : > { %1217 = vadd.xlane.f32.xlu0 %v1216_v6 }
 0x658   : > { %1211 = vadd.xlane.f32.xlu0 %v1210_v18 }
 0x65c   : > { %1220 = vadd.xlane.f32.xlu0 %v1219_v21 }
 0x660   : > { %1214 = vadd.xlane.f32.xlu0 %v1213_v26 }
 0x662   : > { %v1257_v51 = vpop.permute.xlu0 %1256  ;;  %v1259_v10 = vpop.permute.xlu1 %1258 }
 0x663   : > { %4626 = vmatprep.subr.bf16.mxu1 %v1257_v51 }
 0x664   : > { %1229 = vadd.xlane.f32.xlu0 %v1228_v52  ;;  %4627 = vmatpush3.bf16.msra.mxu1 %v1257_v51 }
 0x665   : > { %4628 = vmatprep.subr.bf16.mxu1 %v1259_v10 }
 0x668   : > { %4629 = vmatpush3.bf16.msra.mxu1 %v1259_v10 }
 0x69c   : > { %v1185_v54 = vpop.xlane.xlu0 %1184 }
 0x69d   : > { %v1193_v55 = vsub.f32 %v5566_v30, %v1185_v54 }
 0x69f   : > { %v1208_v60 = vmul.f32 1.442695, %v1193_v55 }
 0x6a0   : > { %v1179_v61 = vpop.xlane.xlu0 %1178 }
 0x6a1   : > { %4970 = vpow2.f32 %v1208_v60  ;;  %v1191_v1 = vsub.f32 %v5568_v36, %v1179_v61 }
 0x6a3   : > { %v1204_v5 = vmul.f32 1.442695, %v1191_v1 }
 0x6a4   : > { %v1320_v48 = vpop.permute.xlu0 %1319 }
 0x6a5   : > { %4972 = vpow2.f32 %v1204_v5  ;;  %4634 = vmatprep.subr.bf16.mxu0 %v1320_v48 }
 0x6a6   : > { %4635 = vmatpush3.bf16.msra.mxu0 %v1320_v48 }
 0x6a8   : > { %v1322_v9 = vpop.permute.xlu0 %1321 }
 0x6a9   : > { %4636 = vmatprep.subr.bf16.mxu0 %v1322_v9 }
 0x6aa   : > { %4637 = vmatpush3.bf16.msra.mxu0 %v1322_v9 }
 0x6ab   : > { %v4971_v15 = vpop.eup %4970 }
 0x6ac   : > { %v1387_v16 = vpop.permute.xlu0 %1386  ;;  %v1231_v19 = vsel %vm741_vm2, %v4971_v15, 0.0 }
 0x6ad   : > { %1232 = vadd.xlane.f32.xlu0 %v1231_v19  ;;  %4846 = vmatprep.subr.msk.bf16.mxu1 %vm482_vm0, %v1387_v16  ;;  %v1397_v33 = vsel %vm482_vm0, %v1387_v16, 0 }
 0x6af   : > { %v4973_v30 = vpop.eup %4972 }
 0x6b0   : > { %v1225_v37 = vsel %vm741_vm2, %v4973_v30, 0.0  ;;  %v1389_v36 = vpop.permute.xlu0 %1388 }
 0x6b1   : > { %1226 = vadd.xlane.f32.xlu0 %v1225_v37  ;;  %v1400_v6 = vsel %vm482_vm0, %v1389_v36, 0 }
 0x6c7   : > { %1457 = vrot.lane.b32.xlu0 %v5522_v62, %s5228_s18  ;;  %v1224_v62 = vpop.xlane.xlu1 %1223 }
 0x6cb   : > { %1384 = vrot.lane.b32.xlu0 %v5494_v32, %s5227_s17  ;;  %v1383_v4 = vpop.permute.xlu1 %1382 }
 0x6cf   : > { %1453 = vrot.lane.b32.xlu0 %v5528_v0, %s5227_s17  ;;  %v1460_v9 = vpop.permute.xlu1 %1459 }
 0x6e1   : > { %v1218_v38 = vpop.xlane.xlu0 %1217 }
 0x6e5   : > { %v1212_v34 = vpop.xlane.xlu0 %1211 }
 0x6e9   : > { %v1221_v50 = vpop.xlane.xlu0 %1220 }
 0x6ea   : > { %4974 = vrcp.f32 %v1221_v50 }
 0x6eb   : > { %4976 = vrcp.f32 %v1212_v34 }
 0x6ec   : > { %4978 = vrcp.f32 %v1218_v38 }
 0x6ed   : > { %v1215_v29 = vpop.xlane.xlu0 %1214 }
 0x6ee   : > { %4980 = vrcp.f32 %v1215_v29 }
 0x6f4   : > { %v4975_v58 = vpop.eup %4974 }
 0x6f5   : > { %v4977_v14 = vpop.eup %4976  ;;  %v1245_v20 = vmul.f32 %v4975_v58, %v4965_v11 }
 0x6f6   : > { %v4979_v17 = vpop.eup %4978  ;;  %v1242_v23 = vmul.f32 %v4977_v14, %v4963_v28  ;;  %v1230_v28 = vpop.xlane.xlu0 %1229 }
 0x6f7   : > { %v1244_v24 = vmul.f32 %v4979_v17, %v5623_v27 }
 0x6f8   : > { %v4981_v63 = vpop.eup %4980 }
 0x6f9   : > { %v1243_v32 = vmul.f32 %v4981_v63, %v4967_v43  ;;  %v1251_v31 = vpack.c.bf16 %v1245_v20, %v1244_v24 }
 0x6fb   : > { %v1250_v0 = vpack.c.bf16 %v1243_v32, %v1242_v23 }
 0x6fd   : > { %4630 = vmatprep.mubr.msk.bf16.mxu1 %vm741_vm2, %v1250_v0 }
 0x6fe   : > { %4631 = vmatmul.mubr.msk.bf16.vlgmr.msra.gmra.mrb[12].mxu1 %vm741_vm2, %v1251_v31 }
 0x6ff   : > { %4643 = vmatpush3.bf16.xpose.msra.mxu1 %v1397_v33  ;;  %4646 = vmatprep.mubr.msk.bf16.mxu1 %vm482_vm0, %v1383_v4 }
 0x700   : > { %4847 = vmatprep.subr.msk.bf16.mxu1 %vm482_vm0, %v1389_v36 }
 0x707   : > { %4645 = vmatpush3.bf16.xpose.msra.mxu1 %v1400_v6 }
 0x73a   : > { %v1233_v18 = vpop.xlane.xlu0 %1232 }
 0x73b   : > { %4982 = vrcp.f32 %v1233_v18 }
 0x73c   : > { %4984 = vrcp.f32 %v1224_v62 }
 0x73d   : > { %4986 = vrcp.f32 %v1230_v28 }
 0x73e   : > { %v1227_v27 = vpop.xlane.xlu0 %1226 }
 0x73f   : > { %4988 = vrcp.f32 %v1227_v27 }
 0x742   : > { %v1458_v11 = vpop.permute.xlu0 %1457 }
 0x743   : > { %4848 = vmatprep.subr.msk.bf16.mxu0 %vm482_vm0, %v1458_v11  ;;  %v1468_v48 = vsel %vm482_vm0, %v1458_v11, 0 }
 0x745   : > { %v4983_v21 = vpop.eup %4982 }
 0x746   : > { %v1385_v43 = vpop.permute.xlu0 %1384  ;;  %v4985_v26 = vpop.eup %4984  ;;  %v1249_v10 = vmul.f32 %v4983_v21, %v4971_v15 }
 0x747   : > { %4647 = vmatmul.mubr.msk.bf16.vlgmr.msra.gmra.mrb[16].mxu1 %vm482_vm0, %v1385_v43  ;;  %v4987_v51 = vpop.eup %4986  ;;  %v1246_v54 = vmul.f32 %v4985_v26, %v5598_v35  ;;  %v1471_v35 = vsel %vm482_vm0, %v1460_v9, 0  ;;  %v1456_v15 = vpop.permute.xlu1 %1455 }
 0x748   : > { %v1248_v60 = vmul.f32 %v4987_v51, %v5630_v49 }
 0x749   : > { %v4989_v52 = vpop.eup %4988 }
 0x74a   : > { %v1247_v55 = vmul.f32 %v4989_v52, %v4973_v30  ;;  %v1253_v1 = vpack.c.bf16 %v1249_v10, %v1248_v60  ;;  %v1454_v5 = vpop.permute.xlu0 %1453 }
 0x74c   : > { %v1252_v61 = vpack.c.bf16 %v1247_v55, %v1246_v54 }
 0x74e   : > { %4638 = vmatprep.mubr.msk.bf16.mxu0 %vm741_vm2, %v1252_v61 }
 0x74f   : > { %4639 = vmatmul.mubr.msk.bf16.vlgmr.msra.gmra.mrb[28].mxu0 %vm741_vm2, %v1253_v1 }
 0x750   : > { %4651 = vmatpush3.bf16.xpose.msra.mxu0 %v1468_v48  ;;  %4654 = vmatprep.mubr.msk.bf16.mxu0 %vm482_vm0, %v1454_v5 }
 0x751   : > { %4849 = vmatprep.subr.msk.bf16.mxu0 %vm482_vm0, %v1460_v9 }
 0x758   : > { %4653 = vmatpush3.bf16.xpose.msra.mxu0 %v1471_v35 }
 0x75f   : > { %4655 = vmatmul.mubr.msk.bf16.vlgmr.msra.gmra.mrb[32].mxu0 %vm482_vm0, %v1456_v15 }
 0x7d1   : > { %v5663_v49 = vpop.f32.mrb[12].mxu1 }
 0x7d2   : > { %v5665_v16 = vpop.f32.mrb[13].mxu1 }
 0x7d3   : > { %v5667_v19 = vpop.f32.mrb[14].mxu1 }
 0x7d4   : > { %v5669_v30 = vpop.f32.mrb[15].mxu1 }
 0x81a   : > { %v4648_v37 = vpop.f32.mrb[16].mxu1 }
 0x81b   : > { %v1436_v36 = vpop.f32.mrb[17].mxu1  ;;  %v1528_v58 = vsel %vm741_vm2, %v4648_v37, -inf }
 0x81c   : > { %v4649_v38 = vpop.f32.mrb[18].mxu1  ;;  %v1522_v34 = vsel %vm741_vm2, %v1436_v36, -inf }
 0x81d   : > { %1523 = vmax.xlane.f32.xlu0 %v1522_v34  ;;  %v1439_v50 = vpop.f32.mrb[19].mxu1  ;;  %v1531_v62 = vsel %vm741_vm2, %v4649_v38, -inf }
 0x81e   : > { %v1525_v29 = vsel %vm741_vm2, %v1439_v50, -inf }
 0x81f   : > { %1526 = vmax.xlane.f32.xlu1 %v1525_v29 }
 0x821   : > { %1529 = vmax.xlane.f32.xlu0 %v1528_v58 }
 0x822   : > { %v5674_v14 = vpop.f32.mrb[28].mxu0 }
 0x823   : > { %v5676_v17 = vpop.f32.mrb[29].mxu0 }
 0x824   : > { %v5678_v63 = vpop.f32.mrb[30].mxu0 }
 0x825   : > { %v5681_v20 = vpop.f32.mrb[31].mxu0  ;;  %1532 = vmax.xlane.f32.xlu0 %v1531_v62 }
 0x832   : > { %v4656_v23 = vpop.f32.mrb[32].mxu0 }
 0x833   : > { %v1507_v32 = vpop.f32.mrb[33].mxu0  ;;  %v1540_v33 = vsel %vm741_vm2, %v4656_v23, -inf }
 0x834   : > { %v4657_v24 = vpop.f32.mrb[34].mxu0  ;;  %v1534_v0 = vsel %vm741_vm2, %v1507_v32, -inf }
 0x835   : > { %1535 = vmax.xlane.f32.xlu1 %v1534_v0  ;;  %v1510_v31 = vpop.f32.mrb[35].mxu0  ;;  %v1543_v6 = vsel %vm741_vm2, %v4657_v24, -inf }
 0x836   : > { %v1537_v4 = vsel %vm741_vm2, %v1510_v31, -inf }
 0x837   : > { %1538 = vmax.xlane.f32.xlu0 %v1537_v4 }
 0x839   : > { %1541 = vmax.xlane.f32.xlu1 %v1540_v33 }
 0x83b   : > { %1544 = vmax.xlane.f32.xlu0 %v1543_v6 }
 0x84a   : > { %1614 = vrot.lane.b32.xlu1 %v5586_v22, %s5229_s19 }
 0x8aa   : > { %v1524_v28 = vpop.xlane.xlu0 %1523 }
 0x8ab   : > { %v1546_v18 = vsub.f32 %v1436_v36, %v1524_v28 }
 0x8ac   : > { %v1527_v27 = vpop.xlane.xlu1 %1526 }
 0x8ad   : > { %v1554_v43 = vmul.f32 1.442695, %v1546_v18  ;;  %v1547_v26 = vsub.f32 %v1439_v50, %v1527_v27 }
 0x8ae   : > { %v1530_v11 = vpop.xlane.xlu0 %1529 }
 0x8af   : > { %v1548_v21 = vsub.f32 %v4648_v37, %v1530_v11  ;;  %v1556_v54 = vmul.f32 1.442695, %v1547_v26 }
 0x8b1   : > { %v1558_v51 = vmul.f32 1.442695, %v1548_v21 }
 0x8b2   : > { %v1533_v52 = vpop.xlane.xlu0 %1532 }
 0x8b3   : > { %4990 = vpow2.f32 %v1558_v51  ;;  %v1549_v10 = vsub.f32 %v4649_v38, %v1533_v52 }
 0x8b4   : > { %4992 = vpow2.f32 %v1554_v43 }
 0x8b5   : > { %v1560_v55 = vmul.f32 1.442695, %v1549_v10 }
 0x8b7   : > { %4994 = vpow2.f32 %v1560_v55 }
 0x8b8   : > { %4996 = vpow2.f32 %v1556_v54 }
 0x8bd   : > { %v5689_v60 = vpop.eup %4990 }
 0x8be   : > { %v1576_v22 = vsel %vm741_vm2, %v5689_v60, 0.0  ;;  %v4993_v61 = vpop.eup %4992 }
 0x8bf   : > { %1577 = vadd.xlane.f32.xlu1 %v1576_v22  ;;  %v1570_v48 = vsel %vm741_vm2, %v4993_v61, 0.0 }
 0x8c1   : > { %v5693_v1 = vpop.eup %4994 }
 0x8c2   : > { %v1536_v5 = vpop.xlane.xlu1 %1535  ;;  %v1579_v9 = vsel %vm741_vm2, %v5693_v1, 0.0  ;;  %v4997_v35 = vpop.eup %4996 }
 0x8c3   : > { %1571 = vadd.xlane.f32.xlu1 %v1570_v48  ;;  %1580 = vadd.xlane.f32.xlu0 %v1579_v9  ;;  %v1550_v15 = vsub.f32 %v1507_v32, %v1536_v5  ;;  %v1573_v38 = vsel %vm741_vm2, %v4997_v35, 0.0 }
 0x8c4   : > { %v1539_v37 = vpop.xlane.xlu0 %1538 }
 0x8c5   : > { %v1551_v34 = vsub.f32 %v1510_v31, %v1539_v37  ;;  %v1562_v29 = vmul.f32 1.442695, %v1550_v15 }
 0x8c6   : > { %v1542_v36 = vpop.xlane.xlu1 %1541 }
 0x8c7   : > { %v1552_v50 = vsub.f32 %v4656_v23, %v1542_v36  ;;  %1574 = vadd.xlane.f32.xlu0 %v1573_v38  ;;  %v1564_v33 = vmul.f32 1.442695, %v1551_v34 }
 0x8c8   : > { %v1545_v58 = vpop.xlane.xlu0 %1544 }
 0x8c9   : > { %v1566_v62 = vmul.f32 1.442695, %v1552_v50  ;;  %v1553_v0 = vsub.f32 %v4657_v24, %v1545_v58 }
 0x8ca   : > { %v1615_v4 = vpop.permute.xlu1 %1614 }
 0x8cb   : > { %4998 = vpow2.f32 %v1566_v62  ;;  %v1568_v6 = vmul.f32 1.442695, %v1553_v0  ;;  %4658 = vmatprep.subr.bf16.mxu1 %v1615_v4 }
 0x8cc   : > { %5000 = vpow2.f32 %v1562_v29  ;;  %4659 = vmatpush3.bf16.msra.mxu1 %v1615_v4 }
 0x8cd   : > { %5002 = vpow2.f32 %v1568_v6 }
 0x8ce   : > { %5004 = vpow2.f32 %v1564_v33 }
 0x8d5   : > { %v4999_v32 = vpop.eup %4998 }
 0x8d6   : > { %v5001_v28 = vpop.eup %5000  ;;  %v1588_v18 = vsel %vm741_vm2, %v4999_v32, 0.0 }
 0x8d7   : > { %v5003_v31 = vpop.eup %5002  ;;  %1589 = vadd.xlane.f32.xlu1 %v1588_v18  ;;  %v1582_v24 = vsel %vm741_vm2, %v5001_v28, 0.0 }
 0x8d8   : > { %v1591_v23 = vsel %vm741_vm2, %v5003_v31, 0.0  ;;  %v5005_v27 = vpop.eup %5004 }
 0x8d9   : > { %1592 = vadd.xlane.f32.xlu0 %v1591_v23  ;;  %v1585_v11 = vsel %vm741_vm2, %v5005_v27, 0.0 }
 0x8db   : > { %1583 = vadd.xlane.f32.xlu1 %v1582_v24 }
 0x8dd   : > { %1586 = vadd.xlane.f32.xlu0 %v1585_v11 }
 0x8ec   : > { %1675 = vrot.lane.b32.xlu1 %v5588_v12, %s5229_s19 }
 0x8f0   : > { %1677 = vrot.lane.b32.xlu1 %v5592_v13, %s5229_s19 }
 0x8f3   : > { %1616 = vrot.lane.b32.xlu0 %v5583_v8, %s5229_s19 }
 0x8f7   : > { %1780 = vrot.lane.b32.xlu0 %v5425_v40, %s5224_s14 }
 0x8fb   : > { %1782 = vrot.lane.b32.xlu0 %v5432_v41, %s5224_s14 }
 0x94c   : > { %v1578_v21 = vpop.xlane.xlu1 %1577 }
 0x950   : > { %v1572_v43 = vpop.xlane.xlu1 %1571  ;;  %v1581_v26 = vpop.xlane.xlu0 %1580 }
 0x951   : > { %5006 = vrcp.f32 %v1572_v43 }
 0x954   : > { %v1575_v51 = vpop.xlane.xlu0 %1574 }
 0x955   : > { %5008 = vrcp.f32 %v1575_v51 }
 0x956   : > { %5010 = vrcp.f32 %v1581_v26 }
 0x957   : > { %5012 = vrcp.f32 %v1578_v21 }
 0x95b   : > { %v5007_v52 = vpop.eup %5006 }
 0x95c   : > { %v1602_v10 = vmul.f32 %v5007_v52, %v4993_v61 }
 0x95f   : > { %v5009_v12 = vpop.eup %5008 }
 0x960   : > { %v1603_v13 = vmul.f32 %v5009_v12, %v4997_v35  ;;  %v5011_v41 = vpop.eup %5010 }
 0x961   : > { %v5013_v5 = vpop.eup %5012  ;;  %v1605_v9 = vmul.f32 %v5011_v41, %v5693_v1 }
 0x962   : > { %v1610_v54 = vpack.c.bf16 %v1603_v13, %v1602_v10  ;;  %v1604_v35 = vmul.f32 %v5013_v5, %v5689_v60 }
 0x964   : > { %v1590_v8 = vpop.xlane.xlu1 %1589  ;;  %4662 = vmatprep.mubr.msk.bf16.mxu1 %vm741_vm2, %v1610_v54  ;;  %v1611_v37 = vpack.c.bf16 %v1605_v9, %v1604_v35 }
 0x966   : > { %v1593_v40 = vpop.xlane.xlu0 %1592 }
 0x967   : > { %5014 = vrcp.f32 %v1593_v40 }
 0x968   : > { %v1584_v55 = vpop.xlane.xlu1 %1583 }
 0x969   : > { %5016 = vrcp.f32 %v1584_v55 }
 0x96a   : > { %5018 = vrcp.f32 %v1590_v8  ;;  %v1587_v22 = vpop.xlane.xlu0 %1586 }
 0x96b   : > { %5020 = vrcp.f32 %v1587_v22 }
 0x96c   : > { %v1676_v48 = vpop.permute.xlu1 %1675 }
 0x96d   : > { %4666 = vmatprep.subr.bf16.mxu0 %v1676_v48 }
 0x96e   : > { %4667 = vmatpush3.bf16.msra.mxu0 %v1676_v48  ;;  %v1617_v61 = vpop.permute.xlu0 %1616 }
 0x96f   : > { %4660 = vmatprep.subr.bf16.mxu1 %v1617_v61 }
 0x970   : > { %v1678_v15 = vpop.permute.xlu1 %1677  ;;  %4661 = vmatpush3.bf16.msra.mxu1 %v1617_v61 }
 0x971   : > { %4668 = vmatprep.subr.bf16.mxu0 %v1678_v15  ;;  %v5015_v36 = vpop.eup %5014 }
 0x972   : > { %4669 = vmatpush3.bf16.msra.mxu0 %v1678_v15  ;;  %v1609_v29 = vmul.f32 %v5015_v36, %v5003_v31  ;;  %v1781_v60 = vpop.permute.xlu0 %1780 }
 0x973   : > { %v5017_v38 = vpop.eup %5016  ;;  %4663 = vmatmul.mubr.msk.bf16.vlgmr.msra.gmra.mrb[20].mxu1 %vm741_vm2, %v1611_v37  ;;  %4674 = vmatprep.subr.bf16.mxu1 %v1781_v60 }
 0x974   : > { %v5019_v34 = vpop.eup %5018  ;;  %v1606_v58 = vmul.f32 %v5017_v38, %v5001_v28  ;;  %4675 = vmatpush3.bf16.msra.mxu1 %v1781_v60 }
 0x975   : > { %v5021_v50 = vpop.eup %5020  ;;  %v1608_v62 = vmul.f32 %v5019_v34, %v4999_v32  ;;  %v1873_v34 = vsub.s32 5, %v5436_v45 }
 0x976   : > { %v1607_v1 = vmul.f32 %v5021_v50, %v5005_v27  ;;  %v1783_v33 = vpop.permute.xlu0 %1782 }
 0x977   : > { %v1613_v4 = vpack.c.bf16 %v1609_v29, %v1608_v62  ;;  %4676 = vmatprep.subr.bf16.mxu1 %v1783_v33 }
 0x978   : > { %v1612_v0 = vpack.c.bf16 %v1607_v1, %v1606_v58  ;;  %4677 = vmatpush3.bf16.msra.mxu1 %v1783_v33 }
 0x97a   : > { %4670 = vmatprep.mubr.msk.bf16.mxu0 %vm741_vm2, %v1612_v0 }
 0x97b   : > { %4671 = vmatmul.mubr.msk.bf16.vlgmr.msra.gmra.mrb[36].mxu0 %vm741_vm2, %v1613_v4 }
 0xa46   : > { %v4664_v6 = vpop.f32.mrb[20].mxu1 }
 0xa47   : > { %v1660_v18 = vpop.f32.mrb[21].mxu1 }
 0xa48   : > { %v4665_v23 = vpop.f32.mrb[22].mxu1 }
 0xa49   : > { %v4878_v24 = vpack.i.bf16 %v4665_v23, %v4664_v6  ;;  %v1663_v31 = vpop.f32.mrb[23].mxu1 }
 0xa4a   : > { %v4873_v28 = vpack.i.bf16 %v1663_v31, %v1660_v18 }
 0xa4c   : > { %4874 = vrot.lane.b32.xlu1 %v4873_v28, %s5230_s20 }
 0xa4e   : > { %v4672_v32 = vpop.f32.mrb[36].mxu0 }
 0xa4f   : > { %v1721_v27 = vpop.f32.mrb[37].mxu0 }
 0xa50   : > { %v4673_v11 = vpop.f32.mrb[38].mxu0  ;;  %4879 = vrot.lane.b32.xlu1 %v4878_v24, %s5230_s20 }
 0xa51   : > { %v4888_v21 = vpack.i.bf16 %v4673_v11, %v4672_v32  ;;  %v1724_v43 = vpop.f32.mrb[39].mxu0 }
 0xa52   : > { %v4883_v26 = vpack.i.bf16 %v1724_v43, %v1721_v27 }
 0xa54   : > { %4884 = vrot.lane.b32.xlu0 %v4883_v26, %s5230_s20  ;;  %4889 = vrot.lane.b32.xlu1 %v4888_v21, %s5230_s20 }
 0xabe   : > { %v4875_v51 = vpop.permute.xlu1 %4874 }
 0xabf   : > { %v4877_v52 = vunpack.i.h.bf16 %v4875_v51  ;;  %v4876_v12 = vunpack.i.l.bf16 %v4875_v51 }
 0xac1   : > { %v1769_v10 = vsel %vm482_vm0, %v5669_v30, %v4877_v52  ;;  %v1768_v13 = vsel %vm482_vm0, %v5665_v16, %v4876_v12 }
 0xac2   : > { %v4880_v54 = vpop.permute.xlu1 %4879  ;;  %v1776_v8 = vpack.c.bf16 %v1769_v10, %v1768_v13 }
 0xac3   : > { %v4882_v40 = vunpack.i.h.bf16 %v4880_v54  ;;  %v4881_v55 = vunpack.i.l.bf16 %v4880_v54 }
 0xac4   : > { %4678 = vmatprep.mubr.msk.bf16.mxu1 %vm741_vm2, %v1776_v8 }
 0xac5   : > { %v1771_v41 = vsel %vm482_vm0, %v5667_v19, %v4882_v40  ;;  %v1770_v22 = vsel %vm482_vm0, %v5663_v49, %v4881_v55 }
 0xac6   : > { %v1777_v5 = vpack.c.bf16 %v1771_v41, %v1770_v22  ;;  %v4890_v48 = vpop.permute.xlu1 %4889  ;;  %v4885_v9 = vpop.permute.xlu0 %4884 }
 0xac7   : > { %v4892_v61 = vunpack.i.h.bf16 %v4890_v48  ;;  %v4891_v30 = vunpack.i.l.bf16 %v4890_v48  ;;  %v4887_v35 = vunpack.i.h.bf16 %v4885_v9  ;;  %v4886_v15 = vunpack.i.l.bf16 %v4885_v9 }
 0xac8   : > { %4679 = vmatmul.mubr.msk.bf16.vlgmr.msra.gmra.mrb[24].mxu1 %vm741_vm2, %v1777_v5 }
 0xac9   : > { %v1775_v16 = vsel %vm482_vm0, %v5678_v63, %v4892_v61  ;;  %v1774_v37 = vsel %vm482_vm0, %v5674_v14, %v4891_v30  ;;  %v1773_v19 = vsel %vm482_vm0, %v5681_v20, %v4887_v35  ;;  %v1772_v49 = vsel %vm482_vm0, %v5676_v17, %v4886_v15  ;;  %v5747_v63 = vld [vmem:[%s6589_s4] sm:$0xff] }
 0xaca   : > { %v1778_v36 = vpack.c.bf16 %v1773_v19, %v1772_v49  ;;  %v1779_v38 = vpack.c.bf16 %v1775_v16, %v1774_v37  ;;  %v1874_v14 = vrot.slane %v5747_v63, %v1873_v34 }
 0xacc   : > { %4682 = vmatprep.mubr.msk.bf16.mxu1 %vm741_vm2, %v1778_v36 }
 0xad0   : > { %4683 = vmatmul.mubr.msk.bf16.gmra.mrb[28].mxu1 %vm741_vm2, %v1779_v38 }
 0xb9b   : > { %v4680_v50 = vpop.f32.mrb[24].mxu1 }
 0xb9c   : > { %v1832_v20 = vpop.f32.mrb[25].mxu1  ;;  %v1865_v17 = vadd.f32 %v4680_v50, %v5339_v39 }
 0xb9d   : > { %v1863_v29 = vadd.f32 %v1832_v20, %v5344_v42  ;;  %v4681_v58 = vpop.f32.mrb[26].mxu1 }
 0xb9e   : > { %v1835_v1 = vpop.f32.mrb[27].mxu1  ;;  %v1866_v4 = vadd.f32 %v4681_v58, %v5346_v44  ;;  %v5758_v60 = vadd.f32 %v1874_v14, %v1865_v17 }
 0xb9f   : > { %v5754_v62 = vadd.f32 %v1874_v14, %v1863_v29  ;;  %v1864_v0 = vadd.f32 %v1835_v1, %v5350_v47 }
 0xba0   : > { %v5766_v42 = vadd.f32 %v1874_v14, %v1866_v4  ;;  %v1889_v31 = vsel %vm741_vm2, %v5758_v60, 0.0 }
 0xba1   : > { %v5760_v33 = vadd.f32 %v1874_v14, %v1864_v0  ;;  %v1883_v6 = vsel %vm741_vm2, %v5754_v62, 0.0 }
 0xba2   : > { %1884 = vadd.xlane.f32.xlu0 %v1883_v6  ;;  %v1892_v11 = vsel %vm741_vm2, %v5766_v42, 0.0 }
 0xba3   : > { %v4684_v18 = vpop.f32.mrb[28].mxu1  ;;  %v1886_v39 = vsel %vm741_vm2, %v5760_v33, 0.0 }
 0xba4   : > { %1887 = vadd.xlane.f32.xlu1 %v1886_v39  ;;  %v1848_v23 = vpop.f32.mrb[29].mxu1  ;;  %v1869_v47 = vadd.f32 %v4684_v18, %v5360_v56 }
 0xba5   : > { %v1867_v44 = vadd.f32 %v1848_v23, %v5358_v53  ;;  %v4685_v24 = vpop.f32.mrb[30].mxu1 }
 0xba6   : > { %1890 = vadd.xlane.f32.xlu0 %v1889_v31  ;;  %v1851_v28 = vpop.f32.mrb[31].mxu1  ;;  %v5777_v21 = vadd.f32 %v1874_v14, %v1869_v47  ;;  %v1870_v43 = vadd.f32 %v4685_v24, %v5366_v59 }
 0xba7   : > { %v5772_v32 = vadd.f32 %v1874_v14, %v1867_v44  ;;  %v1868_v27 = vadd.f32 %v1851_v28, %v5362_v57  ;;  %v4926_v28 = vld [vmem:[%s6591_s6] sm:$0xff]  }
 0xba8   : > { %v5784_v26 = vadd.f32 %v1874_v14, %v1870_v43  ;;  %v1901_v51 = vsel %vm741_vm2, %v5777_v21, 0.0  ;;  %4686 = vmatprep.subr.bf16.mxu0 %v4926_v28 }
 0xba9   : > { %v5780_v56 = vadd.f32 %v1874_v14, %v1868_v27  ;;  %v1895_v53 = vsel %vm741_vm2, %v5772_v32, 0.0  ;;  %4687 = vmatpush3.bf16.msra.mxu0 %v4926_v28  ;;  %v4927_v27 = vld [vmem:[%s6591_s6 + $0x8] sm:$0xff]  }
 0xbaa   : > { %1893 = vadd.xlane.f32.xlu0 %v1892_v11  ;;  %1896 = vadd.xlane.f32.xlu1 %v1895_v53  ;;  %v1904_v59 = vsel %vm741_vm2, %v5784_v26, 0.0 }
 0xbab   : > { %v1898_v57 = vsel %vm741_vm2, %v5780_v56, 0.0  ;;  %4688 = vmatprep.subr.bf16.mxu0 %v4927_v27 }
 0xbad   : > { %4689 = vmatpush3.bf16.msra.mxu0 %v4927_v27 }
 0xbae   : > { %1902 = vadd.xlane.f32.xlu1 %v1901_v51  ;;  %1899 = vadd.xlane.f32.xlu0 %v1898_v57 }
 0xbb2   : > { %1905 = vadd.xlane.f32.xlu0 %v1904_v59 }
 0xc2f   : > { %v1885_v52 = vpop.xlane.xlu0 %1884 }
 0xc30   : > { %v1907_v12 = vmul.f32 0.03125, %v1885_v52 }
 0xc31   : > { %v1888_v10 = vpop.xlane.xlu1 %1887 }
 0xc32   : > { %v5793_v13 = vsub.f32 %v5754_v62, %v1907_v12  ;;  %v1908_v54 = vmul.f32 0.03125, %v1888_v10 }
 0xc33   : > { %v1891_v8 = vpop.xlane.xlu0 %1890 }
 0xc34   : > { %v5796_v40 = vsub.f32 %v5760_v33, %v1908_v54  ;;  %v1909_v55 = vmul.f32 0.03125, %v1891_v8  ;;  %v1923_v41 = vmul.f32 %v5793_v13, %v5793_v13 }
 0xc36   : > { %v5801_v22 = vsub.f32 %v5758_v60, %v1909_v55  ;;  %v1931_v5 = vsel %vm741_vm2, %v1923_v41, 0.0  ;;  %v1924_v48 = vmul.f32 %v5796_v40, %v5796_v40 }
 0xc37   : > { %v1894_v9 = vpop.xlane.xlu0 %1893  ;;  %1932 = vadd.xlane.f32.xlu1 %v1931_v5  ;;  %v1897_v61 = vpop.xlane.xlu1 %1896  ;;  %v1989_v5 = vsub.s32 6, %v5436_v45 }
 0xc38   : > { %v1910_v30 = vmul.f32 0.03125, %v1894_v9  ;;  %v1911_v35 = vmul.f32 0.03125, %v1897_v61  ;;  %v1934_v15 = vsel %vm741_vm2, %v1924_v48, 0.0  ;;  %v1925_v16 = vmul.f32 %v5801_v22, %v5801_v22 }
 0xc39   : > { %1935 = vadd.xlane.f32.xlu0 %v1934_v15 }
 0xc3a   : > { %v5810_v37 = vsub.f32 %v5766_v42, %v1910_v30  ;;  %v5813_v19 = vsub.f32 %v5772_v32, %v1911_v35  ;;  %v1937_v49 = vsel %vm741_vm2, %v1925_v16, 0.0  ;;  %v1990_v16 = vrot.slane %v5747_v63, %v1989_v5 }
 0xc3b   : > { %1938 = vadd.xlane.f32.xlu1 %v1937_v49  ;;  %v1903_v36 = vpop.xlane.xlu1 %1902  ;;  %v1900_v38 = vpop.xlane.xlu0 %1899  ;;  %v2001_v49 = vsub.s32 7, %v5436_v45 }
 0xc3c   : > { %v1913_v50 = vmul.f32 0.03125, %v1903_v36  ;;  %v1912_v14 = vmul.f32 0.03125, %v1900_v38  ;;  %v1927_v20 = vmul.f32 %v5813_v19, %v5813_v19  ;;  %v1926_v17 = vmul.f32 %v5810_v37, %v5810_v37 }
 0xc3e   : > { %v5821_v29 = vsub.f32 %v5777_v21, %v1913_v50  ;;  %v5824_v58 = vsub.f32 %v5780_v56, %v1912_v14  ;;  %v1943_v1 = vsel %vm741_vm2, %v1927_v20, 0.0  ;;  %v1940_v0 = vsel %vm741_vm2, %v1926_v17, 0.0 }
 0xc3f   : > { %1944 = vadd.xlane.f32.xlu1 %v1943_v1  ;;  %1941 = vadd.xlane.f32.xlu0 %v1940_v0  ;;  %v1906_v4 = vpop.xlane.xlu0 %1905 }
 0xc40   : > { %v1914_v6 = vmul.f32 0.03125, %v1906_v4  ;;  %v1929_v18 = vmul.f32 %v5821_v29, %v5821_v29  ;;  %v1928_v39 = vmul.f32 %v5824_v58, %v5824_v58 }
 0xc42   : > { %v5833_v23 = vsub.f32 %v5784_v26, %v1914_v6  ;;  %v1949_v47 = vsel %vm741_vm2, %v1929_v18, 0.0  ;;  %v1946_v44 = vsel %vm741_vm2, %v1928_v39, 0.0  ;;  %v2002_v6 = vrot.slane %v5747_v63, %v2001_v49 }
 0xc43   : > { %1950 = vadd.xlane.f32.xlu1 %v1949_v47  ;;  %1947 = vadd.xlane.f32.xlu0 %v1946_v44 }
 0xc44   : > { %v1930_v24 = vmul.f32 %v5833_v23, %v5833_v23 }
 0xc46   : > { %v1952_v31 = vsel %vm741_vm2, %v1930_v24, 0.0 }
 0xc47   : > { %1953 = vadd.xlane.f32.xlu0 %v1952_v31 }
 0xcc4   : > { %v1933_v11 = vpop.xlane.xlu1 %1932 }
 0xcc5   : > { %v1955_v43 = vmul.f32 0.03125, %v1933_v11 }
 0xcc6   : > { %v1936_v53 = vpop.xlane.xlu0 %1935 }
 0xcc7   : > { %v1963_v51 = vadd.f32 1e-05, %v1955_v43  ;;  %v1956_v57 = vmul.f32 0.03125, %v1936_v53 }
 0xcc8   : > { %v1939_v59 = vpop.xlane.xlu1 %1938 }
 0xcc9   : > { %5022 = vrsqrt.f32 %v1963_v51  ;;  %v1964_v52 = vadd.f32 1e-05, %v1956_v57  ;;  %v1957_v12 = vmul.f32 0.03125, %v1939_v59 }
 0xccb   : > { %5024 = vrsqrt.f32 %v1964_v52  ;;  %v1965_v10 = vadd.f32 1e-05, %v1957_v12 }
 0xccc   : > { %v1945_v54 = vpop.xlane.xlu1 %1944  ;;  %v1942_v8 = vpop.xlane.xlu0 %1941 }
 0xccd   : > { %5026 = vrsqrt.f32 %v1965_v10  ;;  %v1959_v55 = vmul.f32 0.03125, %v1945_v54  ;;  %v1958_v41 = vmul.f32 0.03125, %v1942_v8 }
 0xccf   : > { %v1967_v48 = vadd.f32 1e-05, %v1959_v55  ;;  %v1966_v9 = vadd.f32 1e-05, %v1958_v41 }
 0xcd0   : > { %v1951_v61 = vpop.xlane.xlu1 %1950  ;;  %v1948_v30 = vpop.xlane.xlu0 %1947 }
 0xcd1   : > { %5028 = vrsqrt.f32 %v1967_v48  ;;  %v1961_v35 = vmul.f32 0.03125, %v1951_v61  ;;  %v1960_v15 = vmul.f32 0.03125, %v1948_v30 }
 0xcd2   : > { %5030 = vrsqrt.f32 %v1966_v9 }
 0xcd3   : > { %v5023_v36 = vpop.eup %5022  ;;  %v1969_v38 = vadd.f32 1e-05, %v1961_v35  ;;  %v1968_v50 = vadd.f32 1e-05, %v1960_v15  ;;  %v4930_v35 = vld [vmem:[%s6593_s8 + $0x10] sm:$0xff]   ;;  %v4931_v15 = vld [vmem:[%s6593_s8 + $0x18] sm:$0xff]  }
 0xcd4   : > { %v1954_v14 = vpop.xlane.xlu0 %1953  ;;  %v1979_v20 = vmul.f32 %v5023_v36, %v5793_v13 }
 0xcd5   : > { %v5025_v17 = vpop.eup %5024  ;;  %5032 = vrsqrt.f32 %v1969_v38  ;;  %v1962_v1 = vmul.f32 0.03125, %v1954_v14 }
 0xcd6   : > { %5034 = vrsqrt.f32 %v1968_v50  ;;  %v1980_v0 = vmul.f32 %v5025_v17, %v5796_v40  ;;  %v1991_v4 = vmul.f32 %v1990_v16, %v1979_v20 }
 0xcd7   : > { %v5027_v18 = vpop.eup %5026  ;;  %v1970_v39 = vadd.f32 1e-05, %v1962_v1 }
 0xcd8   : > { %v1992_v47 = vmul.f32 %v1990_v16, %v1980_v0  ;;  %v1981_v44 = vmul.f32 %v5027_v18, %v5801_v22  ;;  %v2003_v24 = vadd.f32 %v2002_v6, %v1991_v4 }
 0xcd9   : > { %5036 = vrsqrt.f32 %v1970_v39 }
 0xcda   : > { %v2004_v31 = vadd.f32 %v2002_v6, %v1992_v47  ;;  %v1993_v11 = vmul.f32 %v1990_v16, %v1981_v44 }
 0xcdb   : > { %v5029_v13 = vpop.eup %5028 }
 0xcdc   : > { %v5031_v28 = vpop.eup %5030  ;;  %v2015_v27 = vpack.c.bf16 %v2004_v31, %v2003_v24  ;;  %v1983_v40 = vmul.f32 %v5029_v13, %v5813_v19  ;;  %v2005_v59 = vadd.f32 %v2002_v6, %v1993_v11 }
 0xcdd   : > { %v1982_v43 = vmul.f32 %v5031_v28, %v5810_v37 }
 0xcde   : > { %4690 = vmatprep.mubr.msk.bf16.mxu0 %vm741_vm2, %v2015_v27  ;;  %v1995_v12 = vmul.f32 %v1990_v16, %v1983_v40 }
 0xcdf   : > { %v5033_v53 = vpop.eup %5032  ;;  %v1994_v63 = vmul.f32 %v1990_v16, %v1982_v43 }
 0xce0   : > { %v5035_v51 = vpop.eup %5034  ;;  %v1985_v57 = vmul.f32 %v5033_v53, %v5821_v29  ;;  %v2007_v19 = vadd.f32 %v2002_v6, %v1995_v12 }
 0xce1   : > { %v2006_v22 = vadd.f32 %v2002_v6, %v1994_v63  ;;  %v1984_v52 = vmul.f32 %v5035_v51, %v5824_v58  ;;  %v4928_v58 = vld [vmem:[%s6593_s8] sm:$0xff]  }
 0xce2   : > { %v1997_v37 = vmul.f32 %v1990_v16, %v1985_v57  ;;  %4698 = vmatprep.subr.bf16.mxu1 %v4928_v58 }
 0xce3   : > { %v5037_v10 = vpop.eup %5036  ;;  %v2016_v54 = vpack.c.bf16 %v2006_v22, %v2005_v59  ;;  %v1996_v8 = vmul.f32 %v1990_v16, %v1984_v52  ;;  %4699 = vmatpush3.bf16.msra.mxu1 %v4928_v58 }
 0xce4   : > { %v1986_v55 = vmul.f32 %v5037_v10, %v5833_v23  ;;  %v2009_v61 = vadd.f32 %v2002_v6, %v1997_v37  ;;  %v4929_v23 = vld [vmem:[%s6593_s8 + $0x8] sm:$0xff]  }
 0xce5   : > { %4691 = vmatmul.mubr.msk.bf16.vlgmr.msra.gmra.mrb[40].mxu0 %vm741_vm2, %v2016_v54  ;;  %v2008_v41 = vadd.f32 %v2002_v6, %v1996_v8  ;;  %4700 = vmatprep.subr.bf16.mxu1 %v4929_v23 }
 0xce6   : > { %v1998_v48 = vmul.f32 %v1990_v16, %v1986_v55  ;;  %v4311_v16 = vld [vmem:[%s6592_s7] ss:$0 sm:$0xff] }
 0xce7   : > { %v2017_v9 = vpack.c.bf16 %v2008_v41, %v2007_v19  ;;  %4701 = vmatpush3.bf16.msra.mxu1 %v4929_v23 }
 0xce8   : > { %v2010_v30 = vadd.f32 %v2002_v6, %v1998_v48  ;;  %4702 = vmatprep.subr.bf16.mxu1 %v4930_v35 }
 0xce9   : > { %4694 = vmatprep.mubr.msk.bf16.mxu0 %vm741_vm2, %v2017_v9 }
 0xcea   : > { %v2018_v29 = vpack.c.bf16 %v2010_v30, %v2009_v61 }
 0xceb   : > { %4703 = vmatpush3.bf16.msra.mxu1 %v4930_v35 }
 0xcec   : > { %4704 = vmatprep.subr.bf16.mxu1 %v4931_v15 }
 0xced   : > { %4695 = vmatmul.mubr.msk.bf16.gmra.mrb[44].mxu0 %vm741_vm2, %v2018_v29 }
 0xcef   : > { %4705 = vmatpush3.bf16.msra.mxu1 %v4931_v15 }
 0xdb8   : > { %v4692_v36 = vpop.f32.mrb[40].mxu0 }
 0xdb9   : > { %v2084_v38 = vpop.f32.mrb[41].mxu0  ;;  %v5885_v1 = vadd.f32 %v4692_v36, %v4311_v16 }
 0xdba   : > { %v5881_v50 = vadd.f32 %v4311_v16, %v2084_v38  ;;  %v4693_v14 = vpop.f32.mrb[42].mxu0 }
 0xdbb   : > { %v2087_v20 = vpop.f32.mrb[43].mxu0  ;;  %v5890_v6 = vadd.f32 %v4693_v14, %v4311_v16  ;;  %v4320_v27 = vmul.f32 -1.442695, %v5885_v1 }
 0xdbc   : > { %v2088_v17 = vadd.f32 %v4311_v16, %v2087_v20  ;;  %2179 = vrot.lane.b32.xlu1 %v5881_v50, %s5226_s16  ;;  %v4318_v13 = vmul.f32 -1.442695, %v5881_v50 }
 0xdbd   : > { %v4321_v11 = vmul.f32 -1.442695, %v5890_v6 }
 0xdbe   : > { %2181 = vrot.lane.b32.xlu0 %v2088_v17, %s5226_s16  ;;  %v4319_v28 = vmul.f32 -1.442695, %v2088_v17  ;;  %5038 = vpow2.f32 %v4318_v13 }
 0xdc0   : > { %2183 = vrot.lane.b32.xlu1 %v5885_v1, %s5226_s16  ;;  %v4696_v0 = vpop.f32.mrb[44].mxu0  ;;  %5040 = vpow2.f32 %v4319_v28 }
 0xdc1   : > { %v2100_v4 = vpop.f32.mrb[45].mxu0  ;;  %v5898_v44 = vadd.f32 %v4696_v0, %v4311_v16  ;;  %5042 = vpow2.f32 %v4320_v27 }
 0xdc2   : > { %v5892_v18 = vadd.f32 %v4311_v16, %v2100_v4  ;;  %v4697_v39 = vpop.f32.mrb[46].mxu0  ;;  %5044 = vpow2.f32 %v4321_v11 }
 0xdc3   : > { %v2103_v47 = vpop.f32.mrb[47].mxu0  ;;  %v5906_v31 = vadd.f32 %v4697_v39, %v4311_v16  ;;  %v4324_v63 = vmul.f32 -1.442695, %v5898_v44 }
 0xdc4   : > { %2185 = vrot.lane.b32.xlu1 %v5890_v6, %s5226_s16  ;;  %2187 = vrot.lane.b32.xlu0 %v5892_v18, %s5226_s16  ;;  %v5900_v24 = vadd.f32 %v4311_v16, %v2103_v47  ;;  %v4322_v43 = vmul.f32 -1.442695, %v5892_v18 }
 0xdc5   : > { %v4325_v57 = vmul.f32 -1.442695, %v5906_v31 }
 0xdc6   : > { %v4323_v40 = vmul.f32 -1.442695, %v5900_v24  ;;  %5046 = vpow2.f32 %v4322_v43 }
 0xdc8   : > { %2189 = vrot.lane.b32.xlu1 %v5900_v24, %s5226_s16  ;;  %2191 = vrot.lane.b32.xlu0 %v5898_v44, %s5226_s16  ;;  %v5039_v53 = vpop.eup %5038  ;;  %5048 = vpow2.f32 %v4323_v40 }
 0xdc9   : > { %v2139_v59 = vadd.f32 1.0, %v5039_v53  ;;  %5050 = vpow2.f32 %v4324_v63 }
 0xdca   : > { %v5041_v51 = vpop.eup %5040  ;;  %5052 = vpow2.f32 %v4325_v57 }
 0xdcb   : > { %v2140_v22 = vadd.f32 1.0, %v5041_v51  ;;  %v5043_v52 = vpop.eup %5042  ;;  %5054 = vrcp.f32 %v2139_v59 }
 0xdcc   : > { %2193 = vrot.lane.b32.xlu1 %v5906_v31, %s5226_s16  ;;  %v5045_v12 = vpop.eup %5044  ;;  %v2141_v10 = vadd.f32 1.0, %v5043_v52 }
 0xdcd   : > { %5056 = vrcp.f32 %v2140_v22  ;;  %v2142_v8 = vadd.f32 1.0, %v5045_v12 }
 0xdce   : > { %5058 = vrcp.f32 %v2141_v10 }
 0xdcf   : > { %5060 = vrcp.f32 %v2142_v8  ;;  %v4334_v8 = vld [vmem:[%s6589_s4 + $0x8] ss:$0 sm:$0xff] }
 0xdd0   : > { %v5047_v54 = vpop.eup %5046 }
 0xdd1   : > { %v2143_v37 = vadd.f32 1.0, %v5047_v54 }
 0xdd2   : > { %v5049_v55 = vpop.eup %5048 }
 0xdd3   : > { %v5051_v19 = vpop.eup %5050  ;;  %v2144_v41 = vadd.f32 1.0, %v5049_v55  ;;  %5062 = vrcp.f32 %v2143_v37 }
 0xdd4   : > { %v5053_v48 = vpop.eup %5052  ;;  %v2145_v61 = vadd.f32 1.0, %v5051_v19 }
 0xdd5   : > { %v5055_v9 = vpop.eup %5054  ;;  %v2146_v29 = vadd.f32 1.0, %v5053_v48  ;;  %5064 = vrcp.f32 %v2144_v41 }
 0xdd6   : > { %5066 = vrcp.f32 %v2145_v61  ;;  %v2163_v23 = vmul.f32 %v5055_v9, %v5881_v50 }
 0xdd7   : > { %v5057_v30 = vpop.eup %5056  ;;  %5068 = vrcp.f32 %v2146_v29 }
 0xdd8   : > { %v2164_v35 = vmul.f32 %v5057_v30, %v2088_v17  ;;  %v5059_v16 = vpop.eup %5058 }
 0xdd9   : > { %v5061_v14 = vpop.eup %5060  ;;  %v2165_v39 = vmul.f32 %v5059_v16, %v5885_v1 }
 0xdda   : > { %v2166_v47 = vmul.f32 %v5061_v14, %v5890_v6 }
 0xddd   : > { %v5063_v4 = vpop.eup %5062 }
 0xdde   : > { %v2167_v40 = vmul.f32 %v5063_v4, %v5892_v18 }
 0xddf   : > { %v5065_v13 = vpop.eup %5064 }
 0xde0   : > { %v5067_v11 = vpop.eup %5066  ;;  %v2168_v53 = vmul.f32 %v5065_v13, %v5900_v24 }
 0xde1   : > { %v5069_v63 = vpop.eup %5068  ;;  %v2169_v6 = vmul.f32 %v5067_v11, %v5898_v44 }
 0xde2   : > { %v2170_v52 = vmul.f32 %v5069_v63, %v5906_v31 }
 0xe2e   : > { %v2180_v58 = vpop.permute.xlu1 %2179 }
 0xe2f   : > { %v2203_v36 = vmul.f32 %v2180_v58, %v2163_v23 }
 0xe30   : > { %v2182_v15 = vpop.permute.xlu0 %2181 }
 0xe31   : > { %v2204_v38 = vmul.f32 %v2182_v15, %v2164_v35 }
 0xe32   : > { %v2184_v20 = vpop.permute.xlu1 %2183 }
 0xe33   : > { %v2219_v0 = vpack.c.bf16 %v2204_v38, %v2203_v36  ;;  %v2205_v50 = vmul.f32 %v2184_v20, %v2165_v39 }
 0xe35   : > { %4706 = vmatprep.mubr.msk.bf16.mxu1 %vm626_vm1, %v2219_v0 }
 0xe36   : > { %v2186_v28 = vpop.permute.xlu1 %2185  ;;  %v2188_v27 = vpop.permute.xlu0 %2187 }
 0xe37   : > { %v2206_v17 = vmul.f32 %v2186_v28, %v2166_v47  ;;  %v2207_v57 = vmul.f32 %v2188_v27, %v2167_v40 }
 0xe39   : > { %v2220_v43 = vpack.c.bf16 %v2206_v17, %v2205_v50 }
 0xe3a   : > { %v2190_v51 = vpop.permute.xlu1 %2189  ;;  %v2192_v1 = vpop.permute.xlu0 %2191 }
 0xe3b   : > { %v2208_v59 = vmul.f32 %v2190_v51, %v2168_v53  ;;  %4707 = vmatmul.mubr.msk.bf16.vlgmr.msra.gmra.mrb[32].mxu1 %vm626_vm1, %v2220_v43  ;;  %v2209_v10 = vmul.f32 %v2192_v1, %v2169_v6 }
 0xe3d   : > { %v2221_v22 = vpack.c.bf16 %v2208_v59, %v2207_v57 }
 0xe3e   : > { %v2194_v12 = vpop.permute.xlu1 %2193 }
 0xe3f   : > { %v2210_v54 = vmul.f32 %v2194_v12, %v2170_v52  ;;  %4710 = vmatprep.mubr.msk.bf16.mxu1 %vm626_vm1, %v2221_v22 }
 0xe41   : > { %v2222_v18 = vpack.c.bf16 %v2210_v54, %v2209_v10 }
 0xe43   : > { %4711 = vmatmul.mubr.msk.bf16.gmra.mrb[36].mxu1 %vm626_vm1, %v2222_v18 }
 0xf0e   : > { %v4708_v24 = vpop.f32.mrb[32].mxu1 }
 0xf0f   : > { %v2293_v55 = vpop.f32.mrb[33].mxu1  ;;  %v2326_v37 = vadd.f32 %v4708_v24, %v5758_v60 }
 0xf10   : > { %v2324_v44 = vadd.f32 %v2293_v55, %v5754_v62  ;;  %v4709_v19 = vpop.f32.mrb[34].mxu1 }
 0xf11   : > { %v2296_v31 = vpop.f32.mrb[35].mxu1  ;;  %v2327_v9 = vadd.f32 %v4709_v19, %v5766_v42  ;;  %v5937_v61 = vadd.f32 %v4334_v8, %v2326_v37 }
 0xf12   : > { %v5933_v41 = vadd.f32 %v4334_v8, %v2324_v44  ;;  %v2325_v48 = vadd.f32 %v2296_v31, %v5760_v33 }
 0xf13   : > { %v5945_v60 = vadd.f32 %v4334_v8, %v2327_v9  ;;  %v2358_v15 = vsel %vm741_vm2, %v5937_v61, 0.0 }
 0xf14   : > { %v5939_v30 = vadd.f32 %v4334_v8, %v2325_v48  ;;  %v2352_v29 = vsel %vm741_vm2, %v5933_v41, 0.0 }
 0xf15   : > { %2353 = vadd.xlane.f32.xlu0 %v2352_v29  ;;  %v2361_v14 = vsel %vm741_vm2, %v5945_v60, 0.0 }
 0xf16   : > { %v4712_v58 = vpop.f32.mrb[36].mxu1  ;;  %v2355_v62 = vsel %vm741_vm2, %v5939_v30, 0.0 }
 0xf17   : > { %2356 = vadd.xlane.f32.xlu1 %v2355_v62  ;;  %v2309_v23 = vpop.f32.mrb[37].mxu1  ;;  %v2330_v33 = vadd.f32 %v4712_v58, %v5777_v21 }
 0xf18   : > { %v2328_v42 = vadd.f32 %v2309_v23, %v5772_v32  ;;  %v4713_v35 = vpop.f32.mrb[38].mxu1 }
 0xf19   : > { %2359 = vadd.xlane.f32.xlu0 %v2358_v15  ;;  %v2312_v16 = vpop.f32.mrb[39].mxu1  ;;  %v5956_v20 = vadd.f32 %v4334_v8, %v2330_v33  ;;  %v2331_v0 = vadd.f32 %v4713_v35, %v5784_v26 }
 0xf1a   : > { %v5951_v36 = vadd.f32 %v4334_v8, %v2328_v42  ;;  %v2329_v38 = vadd.f32 %v2312_v16, %v5780_v56 }
 0xf1b   : > { %v5963_v4 = vadd.f32 %v4334_v8, %v2331_v0  ;;  %v2370_v39 = vsel %vm741_vm2, %v5956_v20, 0.0  ;;  %v6036_v0 = vld [vmem:[%s6589_s4 + $0x10] sm:$0xff] }
 0xf1c   : > { %v5959_v21 = vadd.f32 %v4334_v8, %v2329_v38  ;;  %v2364_v32 = vsel %vm741_vm2, %v5951_v36, 0.0  ;;  %v6022_v38 = vld [vmem:[%s6590_s5 + $0x10] sm:$0xff]  }
 0xf1d   : > { %2362 = vadd.xlane.f32.xlu0 %v2361_v14  ;;  %2365 = vadd.xlane.f32.xlu1 %v2364_v32  ;;  %v2373_v26 = vsel %vm741_vm2, %v5963_v4, 0.0  ;;  %v6029_v14 = vld [vmem:[%s6590_s5 + $0x18] sm:$0xff]   ;;  %v2600_v32 = vrot.slane %v6036_v0, %v990_v46 }
 0xf1e   : > { %v2367_v56 = vsel %vm741_vm2, %v5959_v21, 0.0  ;;  %4714 = vmatprep.subr.bf16.mxu0 %v6022_v38 }
 0xf1f   : > { %4715 = vmatpush3.bf16.msra.mxu0 %v6022_v38 }
 0xf20   : > { %4716 = vmatprep.subr.bf16.mxu0 %v6029_v14 }
 0xf21   : > { %2371 = vadd.xlane.f32.xlu1 %v2370_v39  ;;  %2368 = vadd.xlane.f32.xlu0 %v2367_v56 }
 0xf23   : > { %4717 = vmatpush3.bf16.msra.mxu0 %v6029_v14 }
 0xf25   : > { %2374 = vadd.xlane.f32.xlu0 %v2373_v26 }
 0xfa2   : > { %v2354_v47 = vpop.xlane.xlu0 %2353 }
 0xfa3   : > { %v2376_v13 = vmul.f32 0.03125, %v2354_v47 }
 0xfa4   : > { %v2357_v28 = vpop.xlane.xlu1 %2356 }
 0xfa5   : > { %v5972_v27 = vsub.f32 %v5933_v41, %v2376_v13  ;;  %v2377_v50 = vmul.f32 0.03125, %v2357_v28 }
 0xfa6   : > { %v2360_v17 = vpop.xlane.xlu0 %2359 }
 0xfa7   : > { %v5975_v11 = vsub.f32 %v5939_v30, %v2377_v50  ;;  %v2378_v43 = vmul.f32 0.03125, %v2360_v17  ;;  %v2392_v40 = vmul.f32 %v5972_v27, %v5972_v27 }
 0xfa9   : > { %v5980_v53 = vsub.f32 %v5937_v61, %v2378_v43  ;;  %v2400_v63 = vsel %vm741_vm2, %v2392_v40, 0.0  ;;  %v2393_v51 = vmul.f32 %v5975_v11, %v5975_v11 }
 0xfaa   : > { %v2366_v57 = vpop.xlane.xlu1 %2365  ;;  %2401 = vadd.xlane.f32.xlu1 %v2400_v63  ;;  %v2363_v59 = vpop.xlane.xlu0 %2362 }
 0xfab   : > { %v2380_v1 = vmul.f32 0.03125, %v2366_v57  ;;  %v2379_v22 = vmul.f32 0.03125, %v2363_v59  ;;  %v2403_v6 = vsel %vm741_vm2, %v2393_v51, 0.0  ;;  %v2394_v52 = vmul.f32 %v5980_v53, %v5980_v53 }
 0xfac   : > { %2404 = vadd.xlane.f32.xlu0 %v2403_v6 }
 0xfad   : > { %v5989_v12 = vsub.f32 %v5951_v36, %v2380_v1  ;;  %v5992_v10 = vsub.f32 %v5945_v60, %v2379_v22  ;;  %v2406_v54 = vsel %vm741_vm2, %v2394_v52, 0.0 }
 0xfae   : > { %v2372_v18 = vpop.xlane.xlu1 %2371  ;;  %2407 = vadd.xlane.f32.xlu1 %v2406_v54  ;;  %v2369_v24 = vpop.xlane.xlu0 %2368  ;;  %v2459_v54 = vrot.slane %v6036_v0, %v5449_v2 }
 0xfaf   : > { %v2382_v8 = vmul.f32 0.03125, %v2372_v18  ;;  %v2381_v55 = vmul.f32 0.03125, %v2369_v24  ;;  %v2396_v37 = vmul.f32 %v5989_v12, %v5989_v12  ;;  %v2395_v44 = vmul.f32 %v5992_v10, %v5992_v10 }
 0xfb1   : > { %v6000_v19 = vsub.f32 %v5956_v20, %v2382_v8  ;;  %v6003_v31 = vsub.f32 %v5959_v21, %v2381_v55  ;;  %v2412_v48 = vsel %vm741_vm2, %v2396_v37, 0.0  ;;  %v2409_v9 = vsel %vm741_vm2, %v2395_v44, 0.0 }
 0xfb2   : > { %2413 = vadd.xlane.f32.xlu1 %v2412_v48  ;;  %2410 = vadd.xlane.f32.xlu0 %v2409_v9  ;;  %v2375_v29 = vpop.xlane.xlu0 %2374 }
 0xfb3   : > { %v2383_v58 = vmul.f32 0.03125, %v2375_v29  ;;  %v2398_v62 = vmul.f32 %v6000_v19, %v6000_v19  ;;  %v2397_v23 = vmul.f32 %v6003_v31, %v6003_v31  ;;  %v2471_v29 = vrot.slane %v6036_v0, %v5454_v7 }
 0xfb5   : > { %v6012_v33 = vsub.f32 %v5963_v4, %v2383_v58  ;;  %v2418_v42 = vsel %vm741_vm2, %v2398_v62, 0.0  ;;  %v2415_v35 = vsel %vm741_vm2, %v2397_v23, 0.0 }
 0xfb6   : > { %2419 = vadd.xlane.f32.xlu1 %v2418_v42  ;;  %2416 = vadd.xlane.f32.xlu0 %v2415_v35 }
 0xfb7   : > { %v2399_v15 = vmul.f32 %v6012_v33, %v6012_v33 }
 0xfb9   : > { %v2421_v16 = vsel %vm741_vm2, %v2399_v15, 0.0 }
 0xfba   : > { %2422 = vadd.xlane.f32.xlu0 %v2421_v16 }
 0xfc7   : > { %2602 = vrot.lane.b32.xlu1 %v2600_v32, %s5224_s14 }
0x1037   : > { %v2402_v39 = vpop.xlane.xlu1 %2401 }
0x1038   : > { %v2424_v56 = vmul.f32 0.03125, %v2402_v39 }
0x1039   : > { %v2405_v26 = vpop.xlane.xlu0 %2404 }
0x103a   : > { %v2432_v47 = vadd.f32 1e-05, %v2424_v56  ;;  %v2425_v13 = vmul.f32 0.03125, %v2405_v26 }
0x103b   : > { %v2408_v28 = vpop.xlane.xlu1 %2407 }
0x103c   : > { %5070 = vrsqrt.f32 %v2432_v47  ;;  %v2433_v50 = vadd.f32 1e-05, %v2425_v13  ;;  %v2426_v17 = vmul.f32 0.03125, %v2408_v28 }
0x103e   : > { %5072 = vrsqrt.f32 %v2433_v50  ;;  %v2434_v43 = vadd.f32 1e-05, %v2426_v17 }
0x103f   : > { %v2414_v40 = vpop.xlane.xlu1 %2413  ;;  %v2411_v63 = vpop.xlane.xlu0 %2410 }
0x1040   : > { %5074 = vrsqrt.f32 %v2434_v43  ;;  %v2428_v51 = vmul.f32 0.03125, %v2414_v40  ;;  %v2427_v57 = vmul.f32 0.03125, %v2411_v63 }
0x1042   : > { %v2436_v59 = vadd.f32 1e-05, %v2428_v51  ;;  %v2435_v46 = vadd.f32 1e-05, %v2427_v57 }
0x1043   : > { %v2420_v1 = vpop.xlane.xlu1 %2419  ;;  %v2417_v22 = vpop.xlane.xlu0 %2416 }
0x1044   : > { %5076 = vrsqrt.f32 %v2436_v59  ;;  %v2430_v6 = vmul.f32 0.03125, %v2420_v1  ;;  %v2429_v52 = vmul.f32 0.03125, %v2417_v22 }
0x1045   : > { %5078 = vrsqrt.f32 %v2435_v46 }
0x1046   : > { %v5071_v18 = vpop.eup %5070  ;;  %v2438_v24 = vadd.f32 1e-05, %v2430_v6  ;;  %v2437_v8 = vadd.f32 1e-05, %v2429_v52 }
0x1047   : > { %v2423_v55 = vpop.xlane.xlu0 %2422  ;;  %v2448_v37 = vmul.f32 %v5071_v18, %v5972_v27  ;;  %v2603_v18 = vpop.permute.xlu1 %2602 }
0x1048   : > { %v5073_v44 = vpop.eup %5072  ;;  %5080 = vrsqrt.f32 %v2438_v24  ;;  %v2431_v48 = vmul.f32 0.03125, %v2423_v55 }
0x1049   : > { %v2449_v9 = vmul.f32 %v5073_v44, %v5975_v11  ;;  %5082 = vrsqrt.f32 %v2437_v8  ;;  %v2460_v58 = vmul.f32 %v2459_v54, %v2448_v37 }
0x104a   : > { %v5075_v62 = vpop.eup %5074  ;;  %v2439_v23 = vadd.f32 1e-05, %v2431_v48 }
0x104b   : > { %v2461_v42 = vmul.f32 %v2459_v54, %v2449_v9  ;;  %v2450_v35 = vmul.f32 %v5075_v62, %v5980_v53  ;;  %v2472_v15 = vadd.f32 %v2471_v29, %v2460_v58 }
0x104c   : > { %5084 = vrsqrt.f32 %v2439_v23 }
0x104d   : > { %v2473_v16 = vadd.f32 %v2471_v29, %v2461_v42  ;;  %v2462_v56 = vmul.f32 %v2459_v54, %v2450_v35 }
0x104e   : > { %v5077_v32 = vpop.eup %5076 }
0x104f   : > { %v5079_v27 = vpop.eup %5078  ;;  %v2480_v39 = vpack.c.bf16 %v2473_v16, %v2472_v15  ;;  %v2452_v11 = vmul.f32 %v5077_v32, %v5989_v12  ;;  %v2474_v17 = vadd.f32 %v2471_v29, %v2462_v56 }
0x1050   : > { %v2451_v26 = vmul.f32 %v5079_v27, %v5992_v10 }
0x1051   : > { %4718 = vmatprep.mubr.msk.bf16.mxu0 %vm741_vm2, %v2480_v39  ;;  %v2464_v40 = vmul.f32 %v2459_v54, %v2452_v11 }
0x1052   : > { %v5081_v47 = vpop.eup %5080  ;;  %v2463_v13 = vmul.f32 %v2459_v54, %v2451_v26 }
0x1053   : > { %v5083_v28 = vpop.eup %5082  ;;  %v2454_v50 = vmul.f32 %v5081_v47, %v6000_v19  ;;  %v2476_v12 = vadd.f32 %v2471_v29, %v2464_v40 }
0x1054   : > { %v2475_v53 = vadd.f32 %v2471_v29, %v2463_v13  ;;  %v2453_v43 = vmul.f32 %v5083_v28, %v6003_v31  ;;  %v2576_v31 = vrot.slane %v6036_v0, %v966_v25 }
0x1055   : > { %v2466_v10 = vmul.f32 %v2459_v54, %v2454_v50 }
0x1056   : > { %v5085_v63 = vpop.eup %5084  ;;  %v2481_v51 = vpack.c.bf16 %v2475_v53, %v2474_v17  ;;  %v2465_v57 = vmul.f32 %v2459_v54, %v2453_v43 }
0x1057   : > { %v2455_v59 = vmul.f32 %v5085_v63, %v6012_v33  ;;  %v2478_v6 = vadd.f32 %v2471_v29, %v2466_v10 }
0x1058   : > { %4719 = vmatmul.mubr.msk.bf16.vlgmr.msra.gmra.mrb[48].mxu0 %vm741_vm2, %v2481_v51  ;;  %v2477_v46 = vadd.f32 %v2471_v29, %v2465_v57 }
0x1059   : > { %v2467_v1 = vmul.f32 %v2459_v54, %v2455_v59 }
0x105a   : > { %v2482_v22 = vpack.c.bf16 %v2477_v46, %v2476_v12 }
0x105b   : > { %v2479_v52 = vadd.f32 %v2471_v29, %v2467_v1 }
0x105c   : > { %4722 = vmatprep.mubr.msk.bf16.mxu0 %vm741_vm2, %v2482_v22 }
0x105d   : > { %v2483_v19 = vpack.c.bf16 %v2479_v52, %v2478_v6 }
0x1060   : > { %4723 = vmatmul.mubr.msk.bf16.gmra.mrb[52].mxu0 %vm741_vm2, %v2483_v19 }
0x112b   : > { %v6061_v33 = vpop.f32.mrb[48].mxu0 }
0x112c   : > { %v2579_v24 = vadd.f32 %v6061_v33, %v2576_v31  ;;  %v6064_v8 = vpop.f32.mrb[49].mxu0  ;;  %v2607_v37 = vadd.f32 %v6061_v33, %v2603_v18 }
0x112d   : > { %v2577_v54 = vadd.f32 %v2576_v31, %v6064_v8  ;;  %v6067_v55 = vpop.f32.mrb[50].mxu0  ;;  %v2605_v25 = vadd.f32 %v2603_v18, %v6064_v8 }
0x112e   : > { %v2580_v44 = vadd.f32 %v6067_v55, %v2576_v31  ;;  %v2608_v48 = vadd.f32 %v6067_v55, %v2603_v18  ;;  %v6072_v9 = vpop.f32.mrb[51].mxu0  ;;  %v2587_v62 = vmul.f32 0.25, %v2579_v24 }
0x112f   : > { %v2578_v29 = vadd.f32 %v2576_v31, %v6072_v9  ;;  %v2606_v58 = vadd.f32 %v2603_v18, %v6072_v9  ;;  %v2585_v35 = vmul.f32 0.25, %v2577_v54 }
0x1130   : > { %v2588_v23 = vmul.f32 0.25, %v2580_v44  ;;  %v6077_v42 = vpack.c.bf16 %v2608_v48, %v2607_v37 }
0x1131   : > { %v2586_v15 = vmul.f32 0.25, %v2578_v29  ;;  %v6079_v16 = vpack.c.bf16 %v2606_v58, %v2605_v25 }
0x1132   : > { %v6081_v32 = vpack.c.bf16 %v2588_v23, %v2587_v62  ;;  %2641 = vrot.lane.b32.xlu1 %v6077_v42, %s5225_s15 }
0x1133   : > { %v6085_v27 = vpack.c.bf16 %v2586_v15, %v2585_v35  ;;  %2639 = vrot.lane.b32.xlu0 %v6079_v16, %s5225_s15  ;;  %v6089_v39 = vpop.f32.mrb[52].mxu0 }
0x1134   : > { %v2583_v56 = vadd.f32 %v6089_v39, %v2576_v31  ;;  %v6092_v26 = vpop.f32.mrb[53].mxu0  ;;  %v2611_v13 = vadd.f32 %v6089_v39, %v2603_v18 }
0x1135   : > { %v2581_v11 = vadd.f32 %v2576_v31, %v6092_v26  ;;  %v6095_v47 = vpop.f32.mrb[54].mxu0  ;;  %4730 = vmatprep.mubr.msk.bf16.mxu1 %vm482_vm0, %v6085_v27  ;;  %v2609_v53 = vadd.f32 %v2603_v18, %v6092_v26 }
0x1136   : > { %v2584_v28 = vadd.f32 %v6095_v47, %v2576_v31  ;;  %v2612_v50 = vadd.f32 %v6095_v47, %v2603_v18  ;;  %v6102_v17 = vpop.f32.mrb[55].mxu0  ;;  %v2591_v63 = vmul.f32 0.25, %v2583_v56 }
0x1137   : > { %v2582_v43 = vadd.f32 %v2576_v31, %v6102_v17  ;;  %v2610_v40 = vadd.f32 %v2603_v18, %v6102_v17  ;;  %v2589_v59 = vmul.f32 0.25, %v2581_v11 }
0x1138   : > { %v2592_v51 = vmul.f32 0.25, %v2584_v28  ;;  %v6107_v57 = vpack.c.bf16 %v2612_v50, %v2611_v13  ;;  %v2620_v50 = vrot.slane %v6036_v0, %v1010_v3 }
0x1139   : > { %v2590_v10 = vmul.f32 0.25, %v2582_v43  ;;  %v6109_v12 = vpack.c.bf16 %v2610_v40, %v2609_v53 }
0x113a   : > { %v6111_v46 = vpack.c.bf16 %v2592_v51, %v2591_v63  ;;  %2708 = vrot.lane.b32.xlu0 %v6107_v57, %s5225_s15 }
0x113b   : > { %v6115_v1 = vpack.c.bf16 %v2590_v10, %v2589_v59  ;;  %2706 = vrot.lane.b32.xlu1 %v6109_v12, %s5225_s15 }
0x113d   : > { %4738 = vmatprep.mubr.msk.bf16.mxu0 %vm482_vm0, %v6115_v1 }
0x11a4   : > { %v2642_v52 = vpop.permute.xlu1 %2641 }
0x11a5   : > { %v2640_v22 = vpop.permute.xlu0 %2639  ;;  %v2653_v31 = vsel %vm482_vm0, %v2642_v52, 0 }
0x11a6   : > { %v2650_v6 = vsel %vm482_vm0, %v2640_v22, 0  ;;  %4850 = vmatprep.subr.msk.bf16.mxu1 %vm482_vm0, %v2640_v22 }
0x11a7   : > { %4727 = vmatpush3.bf16.xpose.msra.mxu1 %v2650_v6 }
0x11a8   : > { %4851 = vmatprep.subr.msk.bf16.mxu1 %vm482_vm0, %v2642_v52 }
0x11ac   : > { %v2709_v24 = vpop.permute.xlu0 %2708 }
0x11ad   : > { %v2707_v19 = vpop.permute.xlu1 %2706  ;;  %v2720_v54 = vsel %vm482_vm0, %v2709_v24, 0 }
0x11ae   : > { %4852 = vmatprep.subr.msk.bf16.mxu0 %vm482_vm0, %v2707_v19  ;;  %v2717_v18 = vsel %vm482_vm0, %v2707_v19, 0 }
0x11af   : > { %4729 = vmatpush3.bf16.xpose.msra.mxu1 %v2653_v31  ;;  %4735 = vmatpush3.bf16.xpose.msra.mxu0 %v2717_v18 }
0x11b0   : > { %4853 = vmatprep.subr.msk.bf16.mxu0 %vm482_vm0, %v2709_v24 }
0x11b6   : > { %4731 = vmatmul.mubr.msk.bf16.vlgmr.msra.gmra.mrb[40].mxu1 %vm482_vm0, %v6081_v32 }
0x11b7   : > { %4737 = vmatpush3.bf16.xpose.msra.mxu0 %v2720_v54 }
0x11be   : > { %4739 = vmatmul.mubr.msk.bf16.vlgmr.msra.gmra.mrb[56].mxu0 %vm482_vm0, %v6111_v46 }
0x1289   : > { %v4732_v37 = vpop.f32.mrb[40].mxu1 }
0x128a   : > { %v2689_v44 = vpop.f32.mrb[41].mxu1  ;;  %v2777_v35 = vsel %vm741_vm2, %v4732_v37, -inf }
0x128b   : > { %v4733_v48 = vpop.f32.mrb[42].mxu1  ;;  %v2771_v25 = vsel %vm741_vm2, %v2689_v44, -inf }
0x128c   : > { %2772 = vmax.xlane.f32.xlu1 %v2771_v25  ;;  %v2692_v29 = vpop.f32.mrb[43].mxu1  ;;  %v2780_v62 = vsel %vm741_vm2, %v4733_v48, -inf }
0x128d   : > { %v2774_v58 = vsel %vm741_vm2, %v2692_v29, -inf }
0x128e   : > { %2775 = vmax.xlane.f32.xlu0 %v2774_v58 }
0x1290   : > { %2781 = vmax.xlane.f32.xlu1 %v2780_v62 }
0x1291   : > { %v4740_v23 = vpop.f32.mrb[56].mxu0 }
0x1292   : > { %2778 = vmax.xlane.f32.xlu0 %v2777_v35  ;;  %v6137_v15 = vpop.f32.mrb[57].mxu0  ;;  %v2789_v28 = vsel %vm741_vm2, %v4740_v23, -inf }
0x1293   : > { %v6139_v56 = vpop.f32.mrb[58].mxu0  ;;  %v2783_v13 = vsel %vm741_vm2, %v6137_v15, -inf }
0x1294   : > { %v6141_v11 = vpop.f32.mrb[59].mxu0 }
0x1296   : > { %2784 = vmax.xlane.f32.xlu0 %v2783_v13 }
0x129a   : > { %2790 = vmax.xlane.f32.xlu0 %v2789_v28 }
0x12b0   : > { %2622 = vrot.lane.b32.xlu0 %v2620_v50, %s5226_s16 }
0x131b   : > { %v2776_v53 = vpop.xlane.xlu0 %2775 }
0x131c   : > { %v2796_v43 = vsub.f32 %v2692_v29, %v2776_v53 }
0x131e   : > { %v2805_v13 = vmul.f32 1.442695, %v2796_v43 }
0x131f   : > { %v2779_v40 = vpop.xlane.xlu0 %2778 }
0x1323   : > { %v2785_v63 = vpop.xlane.xlu0 %2784 }
0x1324   : > { %v2799_v51 = vsub.f32 %v6137_v15, %v2785_v63  ;;  %v2792_v15 = vsel %vm741_vm2, %v6139_v56, -inf }
0x1326   : > { %v2811_v63 = vmul.f32 1.442695, %v2799_v51 }
0x1327   : > { %v2791_v59 = vpop.xlane.xlu0 %2790 }
0x1328   : > { %v2801_v10 = vsub.f32 %v4740_v23, %v2791_v59 }
0x132a   : > { %v2815_v22 = vmul.f32 1.442695, %v2801_v10 }
0x132b   : > { %v2623_v6 = vpop.permute.xlu0 %2622 }
0x132c   : > { %5086 = vpow2.f32 %v2815_v22  ;;  %v2625_v52 = vadd.f32 %v2623_v6, %v6064_v8  ;;  %v2626_v19 = vadd.f32 %v2623_v6, %v6072_v9  ;;  %v2627_v31 = vadd.f32 %v6061_v33, %v2623_v6  ;;  %v2773_v9 = vpop.xlane.xlu1 %2772 }
0x132d   : > { %v2628_v3 = vadd.f32 %v6067_v55, %v2623_v6  ;;  %v2629_v0 = vadd.f32 %v2623_v6, %v6092_v26  ;;  %v2630_v18 = vadd.f32 %v2623_v6, %v6102_v17  ;;  %v2631_v24 = vadd.f32 %v6089_v39, %v2623_v6 }
0x132e   : > { %v6158_v54 = vpack.c.bf16 %v2626_v19, %v2625_v52  ;;  %v2632_v25 = vadd.f32 %v6095_v47, %v2623_v6  ;;  %v2797_v39 = vsub.f32 %v4732_v37, %v2779_v40  ;;  %v2795_v26 = vsub.f32 %v2689_v44, %v2773_v9 }
0x132f   : > { %v6161_v29 = vpack.c.bf16 %v2628_v3, %v2627_v31  ;;  %v6163_v58 = vpack.c.bf16 %v2630_v18, %v2629_v0  ;;  %v2786_v37 = vsel %vm741_vm2, %v6141_v11, -inf }
0x1330   : > { %2865 = vrot.lane.b32.xlu1 %v6158_v54, %s5226_s16  ;;  %v6167_v33 = vpack.c.bf16 %v2632_v25, %v2631_v24  ;;  %v2807_v47 = vmul.f32 1.442695, %v2797_v39  ;;  %v2782_v17 = vpop.xlane.xlu1 %2781  ;;  %v2803_v62 = vmul.f32 1.442695, %v2795_v26 }
0x1331   : > { %v2798_v23 = vsub.f32 %v4733_v48, %v2782_v17 }
0x1332   : > { %5088 = vpow2.f32 %v2807_v47 }
0x1333   : > { %5090 = vpow2.f32 %v2803_v62  ;;  %v2809_v35 = vmul.f32 1.442695, %v2798_v23 }
0x1334   : > { %2867 = vrot.lane.b32.xlu1 %v6161_v29, %s5226_s16 }
0x1335   : > { %5092 = vpow2.f32 %v2809_v35 }
0x1336   : > { %v6171_v8 = vpop.eup %5086  ;;  %5094 = vpow2.f32 %v2805_v13 }
0x1337   : > { %v2837_v55 = vsel %vm741_vm2, %v6171_v8, 0.0  ;;  %5096 = vpow2.f32 %v2811_v63 }
0x1338   : > { %2838 = vadd.xlane.f32.xlu0 %v2837_v55  ;;  %2928 = vrot.lane.b32.xlu1 %v6163_v58, %s5226_s16 }
0x133c   : > { %v6185_v44 = vpop.eup %5088 }
0x133d   : > { %v6189_v48 = vpop.eup %5090 }
0x133e   : > { %v2819_v28 = vsel %vm741_vm2, %v6189_v48, 0.0 }
0x133f   : > { %v5093_v50 = vpop.eup %5092 }
0x1340   : > { %v2828_v53 = vsel %vm741_vm2, %v5093_v50, 0.0  ;;  %v5095_v43 = vpop.eup %5094 }
0x1341   : > { %v2822_v40 = vsel %vm741_vm2, %v5095_v43, 0.0 }
0x134e   : > { %2930 = vrot.lane.b32.xlu0 %v6167_v33, %s5226_s16 }
0x1352   : > { %3062 = vrot.lane.b32.xlu0 %v6115_v1, %s5227_s17  ;;  %v2825_v1 = vsel %vm741_vm2, %v6185_v44, 0.0 }
0x135c   : > { %2793 = vmax.xlane.f32.xlu1 %v2792_v15 }
0x1360   : > { %2787 = vmax.xlane.f32.xlu1 %v2786_v37 }
0x1364   : > { %2826 = vadd.xlane.f32.xlu1 %v2825_v1 }
0x1368   : > { %2820 = vadd.xlane.f32.xlu1 %v2819_v28 }
0x136c   : > { %2829 = vadd.xlane.f32.xlu1 %v2828_v53 }
0x1370   : > { %2823 = vadd.xlane.f32.xlu1 %v2822_v40 }
0x1381   : > { %2995 = vrot.lane.b32.xlu1 %v6079_v16, %s5228_s18  ;;  %v6203_v16 = vpop.eup %5096 }
0x1385   : > { %2997 = vrot.lane.b32.xlu1 %v6077_v42, %s5228_s18  ;;  %v2831_v42 = vsel %vm741_vm2, %v6203_v16, 0.0 }
0x1389   : > { %3066 = vrot.lane.b32.xlu1 %v6109_v12, %s5228_s18 }
0x138d   : > { %2991 = vrot.lane.b32.xlu1 %v6085_v27, %s5227_s17 }
0x13a2   : > { %v2866_v59 = vpop.permute.xlu1 %2865 }
0x13a3   : > { %4742 = vmatprep.subr.bf16.mxu1 %v2866_v59 }
0x13a4   : > { %4743 = vmatpush3.bf16.msra.mxu1 %v2866_v59 }
0x13a6   : > { %v2868_v10 = vpop.permute.xlu1 %2867 }
0x13a7   : > { %4744 = vmatprep.subr.bf16.mxu1 %v2868_v10 }
0x13a8   : > { %4745 = vmatpush3.bf16.msra.mxu1 %v2868_v10 }
0x13aa   : > { %v2929_v22 = vpop.permute.xlu1 %2928 }
0x13ab   : > { %4750 = vmatprep.subr.bf16.mxu0 %v2929_v22 }
0x13ac   : > { %4751 = vmatpush3.bf16.msra.mxu0 %v2929_v22 }
0x13b1   : > { %2832 = vadd.xlane.f32.xlu1 %v2831_v42 }
0x13c5   : > { %v2839_v12 = vpop.xlane.xlu0 %2838 }
0x13c9   : > { %v2931_v6 = vpop.permute.xlu0 %2930 }
0x13ca   : > { %4752 = vmatprep.subr.bf16.mxu0 %v2931_v6 }
0x13cb   : > { %4753 = vmatpush3.bf16.msra.mxu0 %v2931_v6 }
0x13e9   : > { %v2794_v27 = vpop.xlane.xlu1 %2793 }
0x13ea   : > { %v2802_v51 = vsub.f32 %v6139_v56, %v2794_v27 }
0x13ec   : > { %v2817_v52 = vmul.f32 1.442695, %v2802_v51 }
0x13ed   : > { %v2788_v19 = vpop.xlane.xlu1 %2787 }
0x13ee   : > { %5098 = vpow2.f32 %v2817_v52  ;;  %v2800_v31 = vsub.f32 %v6141_v11, %v2788_v19 }
0x13f0   : > { %v2813_v3 = vmul.f32 1.442695, %v2800_v31 }
0x13f1   : > { %v2827_v0 = vpop.xlane.xlu1 %2826 }
0x13f2   : > { %5100 = vpow2.f32 %v2813_v3 }
0x13f5   : > { %v2821_v18 = vpop.xlane.xlu1 %2820 }
0x13f8   : > { %v5099_v24 = vpop.eup %5098 }
0x13f9   : > { %v2830_v25 = vpop.xlane.xlu1 %2829  ;;  %v2840_v55 = vsel %vm741_vm2, %v5099_v24, 0.0 }
0x13fa   : > { %2841 = vadd.xlane.f32.xlu1 %v2840_v55  ;;  %5102 = vrcp.f32 %v2830_v25 }
0x13fb   : > { %5104 = vrcp.f32 %v2821_v18 }
0x13fc   : > { %v5101_v9 = vpop.eup %5100  ;;  %5106 = vrcp.f32 %v2827_v0 }
0x13fd   : > { %v2824_v39 = vpop.xlane.xlu1 %2823  ;;  %v2834_v56 = vsel %vm741_vm2, %v5101_v9, 0.0 }
0x13fe   : > { %5108 = vrcp.f32 %v2824_v39  ;;  %2835 = vadd.xlane.f32.xlu1 %v2834_v56 }
0x1401   : > { %v2996_v26 = vpop.permute.xlu1 %2995 }
0x1402   : > { %4854 = vmatprep.subr.msk.bf16.mxu1 %vm482_vm0, %v2996_v26  ;;  %v3006_v63 = vsel %vm482_vm0, %v2996_v26, 0 }
0x1404   : > { %v5103_v11 = vpop.eup %5102 }
0x1405   : > { %v2998_v47 = vpop.permute.xlu1 %2997  ;;  %v5105_v17 = vpop.eup %5104  ;;  %v2854_v35 = vmul.f32 %v5103_v11, %v5093_v50 }
0x1406   : > { %v5107_v62 = vpop.eup %5106  ;;  %v2851_v13 = vmul.f32 %v5105_v17, %v6189_v48 }
0x1407   : > { %v2853_v1 = vmul.f32 %v5107_v62, %v6185_v44  ;;  %v3009_v44 = vsel %vm482_vm0, %v2998_v47, 0 }
0x1408   : > { %v5109_v23 = vpop.eup %5108 }
0x1409   : > { %v3067_v15 = vpop.permute.xlu1 %3066  ;;  %v2852_v37 = vmul.f32 %v5109_v23, %v5095_v43  ;;  %v2860_v53 = vpack.c.bf16 %v2854_v35, %v2853_v1 }
0x140a   : > { %4856 = vmatprep.subr.msk.bf16.mxu0 %vm482_vm0, %v3067_v15  ;;  %v3077_v19 = vsel %vm482_vm0, %v3067_v15, 0 }
0x140b   : > { %v2859_v28 = vpack.c.bf16 %v2852_v37, %v2851_v13 }
0x140d   : > { %4746 = vmatprep.mubr.msk.bf16.mxu1 %vm741_vm2, %v2859_v28  ;;  %v2992_v40 = vpop.permute.xlu1 %2991 }
0x140e   : > { %4747 = vmatmul.mubr.msk.bf16.vlgmr.msra.gmra.mrb[44].mxu1 %vm741_vm2, %v2860_v53 }
0x140f   : > { %4759 = vmatpush3.bf16.xpose.msra.mxu1 %v3006_v63  ;;  %2993 = vrot.lane.b32.xlu1 %v6081_v32, %s5227_s17 }
0x1410   : > { %4855 = vmatprep.subr.msk.bf16.mxu1 %vm482_vm0, %v2998_v47  ;;  %4762 = vmatprep.mubr.msk.bf16.mxu1 %vm482_vm0, %v2992_v40 }
0x1413   : > { %3068 = vrot.lane.b32.xlu1 %v6107_v57, %s5228_s18 }
0x1417   : > { %4761 = vmatpush3.bf16.xpose.msra.mxu1 %v3009_v44  ;;  %3064 = vrot.lane.b32.xlu1 %v6111_v46, %s5227_s17 }
0x143e   : > { %v2833_v48 = vpop.xlane.xlu1 %2832 }
0x1487   : > { %v2842_v50 = vpop.xlane.xlu1 %2841 }
0x1488   : > { %5110 = vrcp.f32 %v2842_v50 }
0x1489   : > { %5112 = vrcp.f32 %v2833_v48 }
0x148a   : > { %5114 = vrcp.f32 %v2839_v12  ;;  %v3063_v12 = vpop.permute.xlu0 %3062 }
0x148b   : > { %v2836_v43 = vpop.xlane.xlu1 %2835 }
0x148c   : > { %5116 = vrcp.f32 %v2836_v43 }
0x148f   : > { %v2994_v32 = vpop.permute.xlu1 %2993 }
0x1490   : > { %4763 = vmatmul.mubr.msk.bf16.vlgmr.msra.gmra.mrb[48].mxu1 %vm482_vm0, %v2994_v32 }
0x1492   : > { %v5111_v59 = vpop.eup %5110 }
0x1493   : > { %v5113_v10 = vpop.eup %5112  ;;  %v2858_v42 = vmul.f32 %v5111_v59, %v5099_v24  ;;  %v3069_v31 = vpop.permute.xlu1 %3068 }
0x1494   : > { %v5115_v22 = vpop.eup %5114  ;;  %v2855_v6 = vmul.f32 %v5113_v10, %v6203_v16  ;;  %v3080_v16 = vsel %vm482_vm0, %v3069_v31, 0 }
0x1495   : > { %v2857_v46 = vmul.f32 %v5115_v22, %v6171_v8 }
0x1496   : > { %v5117_v57 = vpop.eup %5116 }
0x1497   : > { %v2856_v27 = vmul.f32 %v5117_v57, %v5101_v9  ;;  %v2862_v52 = vpack.c.bf16 %v2858_v42, %v2857_v46  ;;  %v3065_v3 = vpop.permute.xlu1 %3064 }
0x1499   : > { %v2861_v51 = vpack.c.bf16 %v2856_v27, %v2855_v6 }
0x149b   : > { %4754 = vmatprep.mubr.msk.bf16.mxu0 %vm741_vm2, %v2861_v51 }
0x149c   : > { %4755 = vmatmul.mubr.msk.bf16.vlgmr.msra.gmra.mrb[60].mxu0 %vm741_vm2, %v2862_v52 }
0x149d   : > { %4767 = vmatpush3.bf16.xpose.msra.mxu0 %v3077_v19  ;;  %4770 = vmatprep.mubr.msk.bf16.mxu0 %vm482_vm0, %v3063_v12 }
0x149e   : > { %4857 = vmatprep.subr.msk.bf16.mxu0 %vm482_vm0, %v3069_v31 }
0x14a5   : > { %4769 = vmatpush3.bf16.xpose.msra.mxu0 %v3080_v16 }
0x14ac   : > { %4771 = vmatmul.mubr.msk.bf16.vlgmr.msra.gmra.mrb[64].mxu0 %vm482_vm0, %v3065_v3 }
0x14e1   : > { %v6237_v8 = vpop.f32.mrb[44].mxu1 }
0x14e2   : > { %v6239_v0 = vpop.f32.mrb[45].mxu1 }
0x14e3   : > { %v6241_v18 = vpop.f32.mrb[46].mxu1 }
0x14e4   : > { %v6243_v24 = vpop.f32.mrb[47].mxu1 }
0x1563   : > { %v4764_v25 = vpop.f32.mrb[48].mxu1 }
0x1564   : > { %v3045_v55 = vpop.f32.mrb[49].mxu1  ;;  %v3137_v11 = vsel %vm741_vm2, %v4764_v25, -inf }
0x1565   : > { %v4765_v9 = vpop.f32.mrb[50].mxu1  ;;  %v3131_v39 = vsel %vm741_vm2, %v3045_v55, -inf }
0x1566   : > { %3132 = vmax.xlane.f32.xlu0 %v3131_v39  ;;  %v3048_v56 = vpop.f32.mrb[51].mxu1  ;;  %v3140_v47 = vsel %vm741_vm2, %v4765_v9, -inf }
0x1567   : > { %v3134_v26 = vsel %vm741_vm2, %v3048_v56, -inf }
0x1568   : > { %3135 = vmax.xlane.f32.xlu1 %v3134_v26 }
0x156a   : > { %3138 = vmax.xlane.f32.xlu0 %v3137_v11 }
0x156e   : > { %3141 = vmax.xlane.f32.xlu0 %v3140_v47 }
0x156f   : > { %v6249_v17 = vpop.f32.mrb[60].mxu0 }
0x1570   : > { %v6251_v62 = vpop.f32.mrb[61].mxu0 }
0x1571   : > { %v6253_v23 = vpop.f32.mrb[62].mxu0 }
0x1572   : > { %v6255_v35 = vpop.f32.mrb[63].mxu0 }
0x157f   : > { %v4772_v15 = vpop.f32.mrb[64].mxu0 }
0x1580   : > { %v3116_v13 = vpop.f32.mrb[65].mxu0  ;;  %v3149_v40 = vsel %vm741_vm2, %v4772_v15, -inf }
0x1581   : > { %v4773_v37 = vpop.f32.mrb[66].mxu0  ;;  %v3143_v1 = vsel %vm741_vm2, %v3116_v13, -inf }
0x1582   : > { %3144 = vmax.xlane.f32.xlu0 %v3143_v1  ;;  %v3119_v28 = vpop.f32.mrb[67].mxu0  ;;  %v3152_v63 = vsel %vm741_vm2, %v4773_v37, -inf }
0x1583   : > { %v3146_v53 = vsel %vm741_vm2, %v3119_v28, -inf }
0x1584   : > { %3147 = vmax.xlane.f32.xlu1 %v3146_v53 }
0x1586   : > { %3150 = vmax.xlane.f32.xlu0 %v3149_v40 }
0x1588   : > { %3153 = vmax.xlane.f32.xlu1 %v3152_v63 }
0x15f3   : > { %v3133_v44 = vpop.xlane.xlu0 %3132 }
0x15f4   : > { %v3155_v48 = vsub.f32 %v3045_v55, %v3133_v44 }
0x15f5   : > { %v3136_v50 = vpop.xlane.xlu1 %3135 }
0x15f6   : > { %v3163_v59 = vmul.f32 1.442695, %v3155_v48  ;;  %v3156_v10 = vsub.f32 %v3048_v56, %v3136_v50 }
0x15f7   : > { %v3139_v43 = vpop.xlane.xlu0 %3138 }
0x15f8   : > { %v3157_v32 = vsub.f32 %v4764_v25, %v3139_v43  ;;  %v3165_v6 = vmul.f32 1.442695, %v3156_v10 }
0x15fa   : > { %v3167_v22 = vmul.f32 1.442695, %v3157_v32 }
0x15fb   : > { %v3142_v57 = vpop.xlane.xlu0 %3141 }
0x15fc   : > { %5118 = vpow2.f32 %v3167_v22  ;;  %v3158_v42 = vsub.f32 %v4765_v9, %v3142_v57 }
0x15fd   : > { %5120 = vpow2.f32 %v3163_v59 }
0x15fe   : > { %v3169_v27 = vmul.f32 1.442695, %v3158_v42 }
0x1600   : > { %5122 = vpow2.f32 %v3169_v27 }
0x1601   : > { %5124 = vpow2.f32 %v3165_v6 }
0x1606   : > { %v6261_v46 = vpop.eup %5118 }
0x1607   : > { %v3185_v51 = vsel %vm741_vm2, %v6261_v46, 0.0  ;;  %v5121_v52 = vpop.eup %5120 }
0x1608   : > { %3186 = vadd.xlane.f32.xlu0 %v3185_v51  ;;  %v3179_v19 = vsel %vm741_vm2, %v5121_v52, 0.0 }
0x160a   : > { %v6265_v12 = vpop.eup %5122 }
0x160b   : > { %v3188_v31 = vsel %vm741_vm2, %v6265_v12, 0.0  ;;  %v5125_v16 = vpop.eup %5124 }
0x160c   : > { %3180 = vadd.xlane.f32.xlu0 %v3179_v19  ;;  %3189 = vadd.xlane.f32.xlu1 %v3188_v31  ;;  %v3182_v25 = vsel %vm741_vm2, %v5125_v16, 0.0 }
0x160f   : > { %v3145_v3 = vpop.xlane.xlu0 %3144 }
0x1610   : > { %3183 = vadd.xlane.f32.xlu1 %v3182_v25  ;;  %v3159_v55 = vsub.f32 %v3116_v13, %v3145_v3 }
0x1611   : > { %v3148_v13 = vpop.xlane.xlu1 %3147 }
0x1612   : > { %v3171_v56 = vmul.f32 1.442695, %v3159_v55  ;;  %v3160_v63 = vsub.f32 %v3119_v28, %v3148_v13 }
0x1613   : > { %v3151_v9 = vpop.xlane.xlu0 %3150 }
0x1614   : > { %v3161_v39 = vsub.f32 %v4772_v15, %v3151_v9  ;;  %v3173_v44 = vmul.f32 1.442695, %v3160_v63 }
0x1615   : > { %v3154_v53 = vpop.xlane.xlu1 %3153 }
0x1616   : > { %v3175_v26 = vmul.f32 1.442695, %v3161_v39  ;;  %v3162_v40 = vsub.f32 %v4773_v37, %v3154_v53 }
0x1618   : > { %5126 = vpow2.f32 %v3175_v26 }
0x1619   : > { %5128 = vpow2.f32 %v3171_v56 }
0x1621   : > { %3225 = vrot.lane.b32.xlu1 %v6161_v29, %s5229_s19  ;;  %v3177_v29 = vmul.f32 1.442695, %v3162_v40 }
0x1622   : > { %v6273_v11 = vpop.eup %5126 }
0x1623   : > { %v3197_v47 = vsel %vm741_vm2, %v6273_v11, 0.0  ;;  %v6277_v1 = vpop.eup %5128  ;;  %5130 = vpow2.f32 %v3177_v29 }
0x1624   : > { %3198 = vadd.xlane.f32.xlu0 %v3197_v47  ;;  %v3191_v15 = vsel %vm741_vm2, %v6277_v1, 0.0  ;;  %5132 = vpow2.f32 %v3173_v44 }
0x1625   : > { %3284 = vrot.lane.b32.xlu1 %v6163_v58, %s5229_s19 }
0x1628   : > { %3192 = vadd.xlane.f32.xlu0 %v3191_v15 }
0x162d   : > { %v5131_v48 = vpop.eup %5130 }
0x162e   : > { %v3200_v58 = vsel %vm741_vm2, %v5131_v48, 0.0  ;;  %v5133_v50 = vpop.eup %5132 }
0x162f   : > { %v3194_v37 = vsel %vm741_vm2, %v5133_v50, 0.0 }
0x163e   : > { %3223 = vrot.lane.b32.xlu0 %v6158_v54, %s5229_s19 }
0x1642   : > { %3389 = vrot.lane.b32.xlu0 %v6022_v38, %s5224_s14 }
0x1646   : > { %3391 = vrot.lane.b32.xlu0 %v6029_v14, %s5224_s14 }
0x1649   : > { %3201 = vadd.xlane.f32.xlu1 %v3200_v58 }
0x164d   : > { %3195 = vadd.xlane.f32.xlu1 %v3194_v37 }
0x165e   : > { %3286 = vrot.lane.b32.xlu1 %v6167_v33, %s5229_s19 }
0x1695   : > { %v3187_v28 = vpop.xlane.xlu0 %3186 }
0x1699   : > { %v3190_v54 = vpop.xlane.xlu1 %3189  ;;  %v3181_v43 = vpop.xlane.xlu0 %3180 }
0x169a   : > { %5134 = vrcp.f32 %v3181_v43 }
0x169d   : > { %v3184_v32 = vpop.xlane.xlu1 %3183 }
0x169e   : > { %5136 = vrcp.f32 %v3184_v32 }
0x169f   : > { %5138 = vrcp.f32 %v3190_v54 }
0x16a0   : > { %5140 = vrcp.f32 %v3187_v28 }
0x16a1   : > { %v3226_v38 = vpop.permute.xlu1 %3225 }
0x16a4   : > { %v5135_v10 = vpop.eup %5134 }
0x16a5   : > { %v3285_v59 = vpop.permute.xlu1 %3284  ;;  %v3211_v22 = vmul.f32 %v5135_v10, %v5121_v52 }
0x16a6   : > { %4782 = vmatprep.subr.bf16.mxu0 %v3285_v59 }
0x16a7   : > { %4783 = vmatpush3.bf16.msra.mxu0 %v3285_v59 }
0x16a8   : > { %v5137_v14 = vpop.eup %5136 }
0x16a9   : > { %v3212_v57 = vmul.f32 %v5137_v14, %v5125_v16  ;;  %v5139_v27 = vpop.eup %5138 }
0x16aa   : > { %v5141_v19 = vpop.eup %5140  ;;  %v3214_v31 = vmul.f32 %v5139_v27, %v6265_v12 }
0x16ab   : > { %v3219_v42 = vpack.c.bf16 %v3212_v57, %v3211_v22  ;;  %v3213_v3 = vmul.f32 %v5141_v19, %v6261_v46 }
0x16ad   : > { %4778 = vmatprep.mubr.msk.bf16.mxu1 %vm741_vm2, %v3219_v42  ;;  %v3220_v52 = vpack.c.bf16 %v3214_v31, %v3213_v3 }
0x16b1   : > { %v3199_v33 = vpop.xlane.xlu0 %3198 }
0x16b5   : > { %v3193_v6 = vpop.xlane.xlu0 %3192 }
0x16b9   : > { %v3224_v51 = vpop.permute.xlu0 %3223 }
0x16ba   : > { %4774 = vmatprep.subr.bf16.mxu1 %v3224_v51 }
0x16bb   : > { %4775 = vmatpush3.bf16.msra.mxu1 %v3224_v51 }
0x16bc   : > { %4776 = vmatprep.subr.bf16.mxu1 %v3226_v38 }
0x16bd   : > { %v3390_v40 = vpop.permute.xlu0 %3389 }
0x16bf   : > { %4777 = vmatpush3.bf16.msra.mxu1 %v3226_v38 }
0x16c0   : > { %4790 = vmatprep.subr.bf16.mxu1 %v3390_v40 }
0x16c1   : > { %v3392_v63 = vpop.permute.xlu0 %3391 }
0x16c2   : > { %4779 = vmatmul.mubr.msk.bf16.vlgmr.msra.gmra.mrb[52].mxu1 %vm741_vm2, %v3220_v52 }
0x16c3   : > { %4791 = vmatpush3.bf16.msra.mxu1 %v3390_v40 }
0x16c4   : > { %4792 = vmatprep.subr.bf16.mxu1 %v3392_v63 }
0x16c7   : > { %4793 = vmatpush3.bf16.msra.mxu1 %v3392_v63 }
0x16d6   : > { %v3202_v16 = vpop.xlane.xlu1 %3201 }
0x16d7   : > { %5142 = vrcp.f32 %v3202_v16 }
0x16d8   : > { %5144 = vrcp.f32 %v3193_v6 }
0x16d9   : > { %5146 = vrcp.f32 %v3199_v33 }
0x16da   : > { %v3196_v25 = vpop.xlane.xlu1 %3195 }
0x16db   : > { %5148 = vrcp.f32 %v3196_v25 }
0x16de   : > { %v3287_v55 = vpop.permute.xlu1 %3286 }
0x16df   : > { %4784 = vmatprep.subr.bf16.mxu0 %v3287_v55 }
0x16e0   : > { %4785 = vmatpush3.bf16.msra.mxu0 %v3287_v55 }
0x16e1   : > { %v5143_v9 = vpop.eup %5142 }
0x16e2   : > { %v5145_v39 = vpop.eup %5144  ;;  %v3218_v26 = vmul.f32 %v5143_v9, %v5131_v48 }
0x16e3   : > { %v5147_v56 = vpop.eup %5146  ;;  %v3215_v46 = vmul.f32 %v5145_v39, %v6277_v1 }
0x16e4   : > { %v3217_v15 = vmul.f32 %v5147_v56, %v6273_v11 }
0x16e5   : > { %v5149_v12 = vpop.eup %5148 }
0x16e6   : > { %v3216_v47 = vmul.f32 %v5149_v12, %v5133_v50  ;;  %v3222_v53 = vpack.c.bf16 %v3218_v26, %v3217_v15 }
0x16e8   : > { %v3221_v13 = vpack.c.bf16 %v3216_v47, %v3215_v46 }
0x16ea   : > { %4786 = vmatprep.mubr.msk.bf16.mxu0 %vm741_vm2, %v3221_v13 }
0x16eb   : > { %4787 = vmatmul.mubr.msk.bf16.vlgmr.msra.gmra.mrb[68].mxu0 %vm741_vm2, %v3222_v53 }
0x1795   : > { %v4780_v29 = vpop.f32.mrb[52].mxu1 }
0x1796   : > { %v3269_v44 = vpop.f32.mrb[53].mxu1 }
0x1797   : > { %v4781_v48 = vpop.f32.mrb[54].mxu1 }
0x1798   : > { %v4898_v58 = vpack.i.bf16 %v4781_v48, %v4780_v29  ;;  %v3272_v1 = vpop.f32.mrb[55].mxu1 }
0x1799   : > { %v4893_v50 = vpack.i.bf16 %v3272_v1, %v3269_v44 }
0x179b   : > { %4894 = vrot.lane.b32.xlu1 %v4893_v50, %s5230_s20 }
0x179f   : > { %4899 = vrot.lane.b32.xlu1 %v4898_v58, %s5230_s20 }
0x17be   : > { %v4788_v11 = vpop.f32.mrb[68].mxu0 }
0x17bf   : > { %v3330_v37 = vpop.f32.mrb[69].mxu0 }
0x17c0   : > { %v4789_v28 = vpop.f32.mrb[70].mxu0 }
0x17c1   : > { %v4908_v54 = vpack.i.bf16 %v4789_v28, %v4788_v11  ;;  %v3333_v43 = vpop.f32.mrb[71].mxu0 }
0x17c2   : > { %v4903_v32 = vpack.i.bf16 %v3333_v43, %v3330_v37 }
0x17c3   : > { %4909 = vrot.lane.b32.xlu1 %v4908_v54, %s5230_s20 }
0x17c4   : > { %4904 = vrot.lane.b32.xlu0 %v4903_v32, %s5230_s20 }
0x180d   : > { %v4895_v38 = vpop.permute.xlu1 %4894 }
0x180e   : > { %v4897_v59 = vunpack.i.h.bf16 %v4895_v38  ;;  %v4896_v10 = vunpack.i.l.bf16 %v4895_v38 }
0x1810   : > { %v3378_v14 = vsel %vm482_vm0, %v6243_v24, %v4897_v59  ;;  %v3377_v22 = vsel %vm482_vm0, %v6239_v0, %v4896_v10 }
0x1811   : > { %v3385_v57 = vpack.c.bf16 %v3378_v14, %v3377_v22  ;;  %v4900_v42 = vpop.permute.xlu1 %4899 }
0x1812   : > { %v4902_v33 = vunpack.i.h.bf16 %v4900_v42  ;;  %v4901_v6 = vunpack.i.l.bf16 %v4900_v42 }
0x1813   : > { %4794 = vmatprep.mubr.msk.bf16.mxu1 %vm741_vm2, %v3385_v57 }
0x1814   : > { %v3380_v27 = vsel %vm482_vm0, %v6241_v18, %v4902_v33  ;;  %v3379_v51 = vsel %vm482_vm0, %v6237_v8, %v4901_v6 }
0x1815   : > { %v3386_v19 = vpack.c.bf16 %v3380_v27, %v3379_v51 }
0x1817   : > { %4795 = vmatmul.mubr.msk.bf16.vlgmr.msra.gmra.mrb[56].mxu1 %vm741_vm2, %v3386_v19 }
0x1835   : > { %v4910_v31 = vpop.permute.xlu1 %4909 }
0x1836   : > { %v4912_v24 = vunpack.i.h.bf16 %v4910_v31  ;;  %v4911_v3 = vunpack.i.l.bf16 %v4910_v31  ;;  %v4905_v52 = vpop.permute.xlu0 %4904 }
0x1837   : > { %v4907_v0 = vunpack.i.h.bf16 %v4905_v52  ;;  %v4906_v16 = vunpack.i.l.bf16 %v4905_v52 }
0x1838   : > { %v3384_v25 = vsel %vm482_vm0, %v6253_v23, %v4912_v24  ;;  %v3383_v55 = vsel %vm482_vm0, %v6249_v17, %v4911_v3  ;;  %v6328_v23 = vld [vmem:[%s6589_s4 + $0x10] sm:$0xff] }
0x1839   : > { %v3388_v9 = vpack.c.bf16 %v3384_v25, %v3383_v55  ;;  %v3382_v18 = vsel %vm482_vm0, %v6255_v35, %v4907_v0  ;;  %v3381_v8 = vsel %vm482_vm0, %v6251_v62, %v4906_v16  ;;  %v3483_v17 = vrot.slane %v6328_v23, %v1873_v34 }
0x183a   : > { %v3387_v39 = vpack.c.bf16 %v3382_v18, %v3381_v8 }
0x183c   : > { %4798 = vmatprep.mubr.msk.bf16.mxu1 %vm741_vm2, %v3387_v39 }
0x183d   : > { %4799 = vmatmul.mubr.msk.bf16.gmra.mrb[60].mxu1 %vm741_vm2, %v3388_v9 }
0x18ea   : > { %v4796_v56 = vpop.f32.mrb[56].mxu1 }
0x18eb   : > { %v3441_v12 = vpop.f32.mrb[57].mxu1  ;;  %v3474_v35 = vadd.f32 %v4796_v56, %v5937_v61 }
0x18ec   : > { %v3472_v62 = vadd.f32 %v3441_v12, %v5933_v41  ;;  %v4797_v26 = vpop.f32.mrb[58].mxu1 }
0x18ed   : > { %v3444_v46 = vpop.f32.mrb[59].mxu1  ;;  %v6338_v13 = vadd.f32 %v3483_v17, %v3474_v35  ;;  %v3475_v53 = vadd.f32 %v4797_v26, %v5945_v60  ;;  %v4934_v26 = vld [vmem:[%s6591_s6 + $0x10] sm:$0xff]  }
0x18ee   : > { %v6335_v47 = vadd.f32 %v3483_v17, %v3472_v62  ;;  %v3473_v15 = vadd.f32 %v3444_v46, %v5939_v30  ;;  %4802 = vmatprep.subr.bf16.mxu0 %v4934_v26 }
0x18ef   : > { %v6347_v41 = vadd.f32 %v3483_v17, %v3475_v53  ;;  %v3498_v63 = vsel %vm741_vm2, %v6338_v13, 0.0  ;;  %4803 = vmatpush3.bf16.msra.mxu0 %v4934_v26 }
0x18f0   : > { %v6341_v40 = vadd.f32 %v3483_v17, %v3473_v15  ;;  %v3492_v34 = vsel %vm741_vm2, %v6335_v47, 0.0 }
0x18f1   : > { %3493 = vadd.xlane.f32.xlu0 %v3492_v34  ;;  %v3501_v30 = vsel %vm741_vm2, %v6347_v41, 0.0 }
0x18f2   : > { %v3495_v61 = vsel %vm741_vm2, %v6341_v40, 0.0 }
0x18f3   : > { %3496 = vadd.xlane.f32.xlu1 %v3495_v61 }
0x18f5   : > { %3499 = vadd.xlane.f32.xlu0 %v3498_v63 }
0x18f9   : > { %3502 = vadd.xlane.f32.xlu0 %v3501_v30 }
0x1910   : > { %v4800_v60 = vpop.f32.mrb[60].mxu1 }
0x1911   : > { %v3457_v29 = vpop.f32.mrb[61].mxu1  ;;  %v3478_v44 = vadd.f32 %v4800_v60, %v5956_v20  ;;  %v4935_v60 = vld [vmem:[%s6591_s6 + $0x18] sm:$0xff]  }
0x1912   : > { %v3476_v48 = vadd.f32 %v3457_v29, %v5951_v36  ;;  %v4801_v58 = vpop.f32.mrb[62].mxu1  ;;  %4804 = vmatprep.subr.bf16.mxu0 %v4935_v60 }
0x1913   : > { %v3460_v1 = vpop.f32.mrb[63].mxu1  ;;  %v3479_v11 = vadd.f32 %v4801_v58, %v5963_v4  ;;  %v6359_v28 = vadd.f32 %v3483_v17, %v3478_v44  ;;  %4805 = vmatpush3.bf16.msra.mxu0 %v4935_v60 }
0x1914   : > { %v6355_v50 = vadd.f32 %v3483_v17, %v3476_v48  ;;  %v3477_v37 = vadd.f32 %v3460_v1, %v5959_v21 }
0x1915   : > { %v6365_v32 = vadd.f32 %v3483_v17, %v3479_v11  ;;  %v3510_v20 = vsel %vm741_vm2, %v6359_v28, 0.0 }
0x1916   : > { %v6361_v54 = vadd.f32 %v3483_v17, %v3477_v37  ;;  %v3504_v43 = vsel %vm741_vm2, %v6355_v50, 0.0 }
0x1917   : > { %3505 = vadd.xlane.f32.xlu0 %v3504_v43  ;;  %v3513_v21 = vsel %vm741_vm2, %v6365_v32, 0.0 }
0x1918   : > { %v3507_v36 = vsel %vm741_vm2, %v6361_v54, 0.0 }
0x1919   : > { %3508 = vadd.xlane.f32.xlu1 %v3507_v36 }
0x191b   : > { %3511 = vadd.xlane.f32.xlu0 %v3510_v20 }
0x191d   : > { %3514 = vadd.xlane.f32.xlu1 %v3513_v21 }
0x197e   : > { %v3494_v4 = vpop.xlane.xlu0 %3493 }
0x197f   : > { %v3516_v38 = vmul.f32 0.03125, %v3494_v4 }
0x1980   : > { %v3497_v59 = vpop.xlane.xlu1 %3496 }
0x1981   : > { %v6374_v10 = vsub.f32 %v6335_v47, %v3516_v38  ;;  %v3517_v14 = vmul.f32 0.03125, %v3497_v59 }
0x1982   : > { %v3500_v22 = vpop.xlane.xlu0 %3499 }
0x1983   : > { %v6377_v57 = vsub.f32 %v6341_v40, %v3517_v14  ;;  %v3518_v42 = vmul.f32 0.03125, %v3500_v22  ;;  %v3532_v33 = vmul.f32 %v6374_v10, %v6374_v10  ;;  %v3599_v22 = vrot.slane %v6328_v23, %v1989_v5 }
0x1985   : > { %v6382_v6 = vsub.f32 %v6338_v13, %v3518_v42  ;;  %v3540_v27 = vsel %vm741_vm2, %v3532_v33, 0.0  ;;  %v3533_v51 = vmul.f32 %v6377_v57, %v6377_v57 }
0x1986   : > { %v3503_v19 = vpop.xlane.xlu0 %3502  ;;  %3541 = vadd.xlane.f32.xlu0 %v3540_v27 }
0x1987   : > { %v3519_v31 = vmul.f32 0.03125, %v3503_v19  ;;  %v3543_v24 = vsel %vm741_vm2, %v3533_v51, 0.0  ;;  %v3534_v3 = vmul.f32 %v6382_v6, %v6382_v6 }
0x1988   : > { %3544 = vadd.xlane.f32.xlu1 %v3543_v24 }
0x1989   : > { %v6391_v52 = vsub.f32 %v6347_v41, %v3519_v31  ;;  %v3546_v0 = vsel %vm741_vm2, %v3534_v3, 0.0  ;;  %v3611_v31 = vrot.slane %v6328_v23, %v2001_v49 }
0x198a   : > { %3547 = vadd.xlane.f32.xlu0 %v3546_v0 }
0x198b   : > { %v3535_v16 = vmul.f32 %v6391_v52, %v6391_v52 }
0x198d   : > { %v3549_v25 = vsel %vm741_vm2, %v3535_v16, 0.0 }
0x198e   : > { %3550 = vadd.xlane.f32.xlu1 %v3549_v25 }
0x19a4   : > { %v3506_v55 = vpop.xlane.xlu0 %3505 }
0x19a5   : > { %v3520_v9 = vmul.f32 0.03125, %v3506_v55 }
0x19a6   : > { %v3509_v18 = vpop.xlane.xlu1 %3508 }
0x19a7   : > { %v6398_v8 = vsub.f32 %v6355_v50, %v3520_v9  ;;  %v3521_v39 = vmul.f32 0.03125, %v3509_v18 }
0x19a8   : > { %v3512_v56 = vpop.xlane.xlu0 %3511 }
0x19a9   : > { %v6401_v17 = vsub.f32 %v6361_v54, %v3521_v39  ;;  %v3522_v12 = vmul.f32 0.03125, %v3512_v56  ;;  %v3536_v35 = vmul.f32 %v6398_v8, %v6398_v8 }
0x19aa   : > { %v3515_v62 = vpop.xlane.xlu1 %3514 }
0x19ab   : > { %v6409_v46 = vsub.f32 %v6359_v28, %v3522_v12  ;;  %v3523_v15 = vmul.f32 0.03125, %v3515_v62  ;;  %v3552_v53 = vsel %vm741_vm2, %v3536_v35, 0.0  ;;  %v3537_v34 = vmul.f32 %v6401_v17, %v6401_v17 }
0x19ac   : > { %3553 = vadd.xlane.f32.xlu0 %v3552_v53 }
0x19ad   : > { %v6415_v61 = vsub.f32 %v6365_v32, %v3523_v15  ;;  %v3555_v63 = vsel %vm741_vm2, %v3537_v34, 0.0  ;;  %v3538_v30 = vmul.f32 %v6409_v46, %v6409_v46 }
0x19ae   : > { %3556 = vadd.xlane.f32.xlu1 %v3555_v63 }
0x19af   : > { %v3558_v29 = vsel %vm741_vm2, %v3538_v30, 0.0  ;;  %v3539_v44 = vmul.f32 %v6415_v61, %v6415_v61 }
0x19b0   : > { %3559 = vadd.xlane.f32.xlu0 %v3558_v29 }
0x19b1   : > { %v3561_v48 = vsel %vm741_vm2, %v3539_v44, 0.0 }
0x19b2   : > { %3562 = vadd.xlane.f32.xlu1 %v3561_v48 }
0x1a13   : > { %v3542_v58 = vpop.xlane.xlu0 %3541 }
0x1a14   : > { %v3564_v1 = vmul.f32 0.03125, %v3542_v58 }
0x1a15   : > { %v3545_v11 = vpop.xlane.xlu1 %3544 }
0x1a16   : > { %v3572_v37 = vadd.f32 1e-05, %v3564_v1  ;;  %v3565_v43 = vmul.f32 0.03125, %v3545_v11 }
0x1a17   : > { %v3548_v36 = vpop.xlane.xlu0 %3547 }
0x1a18   : > { %5150 = vrsqrt.f32 %v3572_v37  ;;  %v3573_v20 = vadd.f32 1e-05, %v3565_v43  ;;  %v3566_v21 = vmul.f32 0.03125, %v3548_v36 }
0x1a1a   : > { %5152 = vrsqrt.f32 %v3573_v20  ;;  %v3574_v4 = vadd.f32 1e-05, %v3566_v21 }
0x1a1b   : > { %v3551_v38 = vpop.xlane.xlu1 %3550 }
0x1a1c   : > { %5154 = vrsqrt.f32 %v3574_v4  ;;  %v3567_v59 = vmul.f32 0.03125, %v3551_v38 }
0x1a1e   : > { %v3575_v14 = vadd.f32 1e-05, %v3567_v59 }
0x1a20   : > { %5156 = vrsqrt.f32 %v3575_v14  ;;  %v4939_v14 = vld [vmem:[%s6593_s8 + $0x38] sm:$0xff]  }
0x1a22   : > { %v5151_v42 = vpop.eup %5150 }
0x1a23   : > { %v3588_v33 = vmul.f32 %v5151_v42, %v6374_v10 }
0x1a24   : > { %v5153_v27 = vpop.eup %5152 }
0x1a25   : > { %v3589_v51 = vmul.f32 %v5153_v27, %v6377_v57  ;;  %v3600_v19 = vmul.f32 %v3599_v22, %v3588_v33 }
0x1a26   : > { %v5155_v24 = vpop.eup %5154 }
0x1a27   : > { %v3590_v3 = vmul.f32 %v5155_v24, %v6382_v6  ;;  %v3601_v0 = vmul.f32 %v3599_v22, %v3589_v51  ;;  %v3612_v16 = vadd.f32 %v3611_v31, %v3600_v19 }
0x1a29   : > { %v3613_v25 = vadd.f32 %v3611_v31, %v3601_v0  ;;  %v3602_v9 = vmul.f32 %v3599_v22, %v3590_v3 }
0x1a2a   : > { %v5157_v55 = vpop.eup %5156 }
0x1a2b   : > { %v3591_v5 = vmul.f32 %v5157_v55, %v6391_v52  ;;  %v3625_v18 = vpack.c.bf16 %v3613_v25, %v3612_v16  ;;  %v3614_v57 = vadd.f32 %v3611_v31, %v3602_v9 }
0x1a2d   : > { %v3603_v10 = vmul.f32 %v3599_v22, %v3591_v5  ;;  %4806 = vmatprep.mubr.msk.bf16.mxu0 %vm741_vm2, %v3625_v18 }
0x1a2f   : > { %v3615_v39 = vadd.f32 %v3611_v31, %v3603_v10 }
0x1a31   : > { %v3626_v56 = vpack.c.bf16 %v3615_v39, %v3614_v57 }
0x1a33   : > { %4807 = vmatmul.mubr.msk.bf16.vlgmr.msra.gmra.mrb[72].mxu0 %vm741_vm2, %v3626_v56 }
0x1a39   : > { %v3554_v45 = vpop.xlane.xlu0 %3553 }
0x1a3a   : > { %v3568_v49 = vmul.f32 0.03125, %v3554_v45 }
0x1a3b   : > { %v3557_v23 = vpop.xlane.xlu1 %3556 }
0x1a3c   : > { %v3576_v6 = vadd.f32 1e-05, %v3568_v49  ;;  %v3569_v12 = vmul.f32 0.03125, %v3557_v23 }
0x1a3d   : > { %v3560_v35 = vpop.xlane.xlu0 %3559 }
0x1a3e   : > { %5158 = vrsqrt.f32 %v3576_v6  ;;  %v3577_v62 = vadd.f32 1e-05, %v3569_v12  ;;  %v3570_v26 = vmul.f32 0.03125, %v3560_v35 }
0x1a3f   : > { %v3563_v15 = vpop.xlane.xlu1 %3562 }
0x1a40   : > { %5160 = vrsqrt.f32 %v3577_v62  ;;  %v3578_v52 = vadd.f32 1e-05, %v3570_v26  ;;  %v3571_v53 = vmul.f32 0.03125, %v3563_v15 }
0x1a42   : > { %5162 = vrsqrt.f32 %v3578_v52  ;;  %v3579_v34 = vadd.f32 1e-05, %v3571_v53 }
0x1a44   : > { %5164 = vrsqrt.f32 %v3579_v34 }
0x1a48   : > { %v5159_v63 = vpop.eup %5158 }
0x1a49   : > { %v3592_v30 = vmul.f32 %v5159_v63, %v6398_v8 }
0x1a4a   : > { %v5161_v60 = vpop.eup %5160 }
0x1a4b   : > { %v3593_v29 = vmul.f32 %v5161_v60, %v6401_v17  ;;  %v3604_v44 = vmul.f32 %v3599_v22, %v3592_v30  ;;  %v4936_v17 = vld [vmem:[%s6593_s8 + $0x20] sm:$0xff]  }
0x1a4c   : > { %v5163_v48 = vpop.eup %5162  ;;  %4814 = vmatprep.subr.bf16.mxu1 %v4936_v17 }
0x1a4d   : > { %v3594_v58 = vmul.f32 %v5163_v48, %v6409_v46  ;;  %v3605_v1 = vmul.f32 %v3599_v22, %v3593_v29  ;;  %v3616_v43 = vadd.f32 %v3611_v31, %v3604_v44  ;;  %4815 = vmatpush3.bf16.msra.mxu1 %v4936_v17  ;;  %v4937_v46 = vld [vmem:[%s6593_s8 + $0x28] sm:$0xff]  }
0x1a4e   : > { %v5165_v11 = vpop.eup %5164  ;;  %4816 = vmatprep.subr.bf16.mxu1 %v4937_v46 }
0x1a4f   : > { %v3595_v37 = vmul.f32 %v5165_v11, %v6415_v61  ;;  %v3617_v36 = vadd.f32 %v3611_v31, %v3605_v1  ;;  %v3606_v20 = vmul.f32 %v3599_v22, %v3594_v58  ;;  %v4938_v61 = vld [vmem:[%s6593_s8 + $0x30] sm:$0xff]  }
0x1a51   : > { %v3627_v21 = vpack.c.bf16 %v3617_v36, %v3616_v43  ;;  %v3607_v4 = vmul.f32 %v3599_v22, %v3595_v37  ;;  %v3618_v38 = vadd.f32 %v3611_v31, %v3606_v20  ;;  %4817 = vmatpush3.bf16.msra.mxu1 %v4937_v46  ;;  %v4372_v22 = vld [vmem:[%s6592_s7 + $0x1] ss:$0 sm:$0xff] }
0x1a52   : > { %4818 = vmatprep.subr.bf16.mxu1 %v4938_v61 }
0x1a53   : > { %4810 = vmatprep.mubr.msk.bf16.mxu0 %vm741_vm2, %v3627_v21  ;;  %v3619_v8 = vadd.f32 %v3611_v31, %v3607_v4 }
0x1a55   : > { %v3628_v59 = vpack.c.bf16 %v3619_v8, %v3618_v38  ;;  %4819 = vmatpush3.bf16.msra.mxu1 %v4938_v61 }
0x1a56   : > { %4820 = vmatprep.subr.bf16.mxu1 %v4939_v14 }
0x1a57   : > { %4811 = vmatmul.mubr.msk.bf16.gmra.mrb[76].mxu0 %vm741_vm2, %v3628_v59 }
0x1a59   : > { %4821 = vmatpush3.bf16.msra.mxu1 %v4939_v14 }
0x1b06   : > { %v4808_v42 = vpop.f32.mrb[72].mxu0 }
0x1b07   : > { %v3704_v33 = vadd.f32 %v4808_v42, %v4372_v22  ;;  %v3695_v27 = vpop.f32.mrb[73].mxu0 }
0x1b08   : > { %v3696_v51 = vadd.f32 %v4372_v22, %v3695_v27  ;;  %v4809_v19 = vpop.f32.mrb[74].mxu0 }
0x1b09   : > { %3794 = vrot.lane.b32.xlu1 %v3704_v33, %s5226_s16  ;;  %v3698_v31 = vpop.f32.mrb[75].mxu0  ;;  %v3707_v3 = vadd.f32 %v4809_v19, %v4372_v22  ;;  %v4381_v56 = vmul.f32 -1.442695, %v3704_v33 }
0x1b0a   : > { %v3699_v24 = vadd.f32 %v4372_v22, %v3698_v31  ;;  %3790 = vrot.lane.b32.xlu0 %v3696_v51, %s5226_s16  ;;  %v4379_v57 = vmul.f32 -1.442695, %v3696_v51 }
0x1b0b   : > { %v4382_v45 = vmul.f32 -1.442695, %v3707_v3 }
0x1b0c   : > { %v4380_v39 = vmul.f32 -1.442695, %v3699_v24  ;;  %5166 = vpow2.f32 %v4379_v57 }
0x1b0d   : > { %3792 = vrot.lane.b32.xlu1 %v3699_v24, %s5226_s16 }
0x1b0e   : > { %5168 = vpow2.f32 %v4380_v39 }
0x1b0f   : > { %5170 = vpow2.f32 %v4381_v56 }
0x1b10   : > { %5172 = vpow2.f32 %v4382_v45 }
0x1b11   : > { %3796 = vrot.lane.b32.xlu1 %v3707_v3, %s5226_s16 }
0x1b16   : > { %v5167_v49 = vpop.eup %5166 }
0x1b17   : > { %v3750_v6 = vadd.f32 1.0, %v5167_v49 }
0x1b18   : > { %v5169_v23 = vpop.eup %5168 }
0x1b19   : > { %v5171_v12 = vpop.eup %5170  ;;  %v3751_v35 = vadd.f32 1.0, %v5169_v23  ;;  %5174 = vrcp.f32 %v3750_v6 }
0x1b1a   : > { %v5173_v62 = vpop.eup %5172  ;;  %v3752_v26 = vadd.f32 1.0, %v5171_v12 }
0x1b1b   : > { %v3753_v15 = vadd.f32 1.0, %v5173_v62  ;;  %5176 = vrcp.f32 %v3751_v35 }
0x1b1c   : > { %5178 = vrcp.f32 %v3752_v26 }
0x1b1d   : > { %5180 = vrcp.f32 %v3753_v15 }
0x1b23   : > { %v5175_v52 = vpop.eup %5174 }
0x1b24   : > { %v3774_v29 = vmul.f32 %v5175_v52, %v3696_v51 }
0x1b25   : > { %v5177_v53 = vpop.eup %5176 }
0x1b26   : > { %v5179_v30 = vpop.eup %5178  ;;  %v3775_v44 = vmul.f32 %v5177_v53, %v3699_v24 }
0x1b27   : > { %v5181_v48 = vpop.eup %5180  ;;  %v3776_v43 = vmul.f32 %v5179_v30, %v3704_v33 }
0x1b28   : > { %v3777_v21 = vmul.f32 %v5181_v48, %v3707_v3 }
0x1b2a   : > { %v4812_v0 = vpop.f32.mrb[76].mxu0 }
0x1b2b   : > { %v3711_v16 = vpop.f32.mrb[77].mxu0  ;;  %v6470_v18 = vadd.f32 %v4812_v0, %v4372_v22 }
0x1b2c   : > { %v6464_v25 = vadd.f32 %v4372_v22, %v3711_v16  ;;  %v4813_v55 = vpop.f32.mrb[78].mxu0 }
0x1b2d   : > { %v3714_v9 = vpop.f32.mrb[79].mxu0  ;;  %v6474_v10 = vadd.f32 %v4813_v55, %v4372_v22  ;;  %v4385_v36 = vmul.f32 -1.442695, %v6470_v18 }
0x1b2e   : > { %v6466_v5 = vadd.f32 %v4372_v22, %v3714_v9  ;;  %3798 = vrot.lane.b32.xlu0 %v6464_v25, %s5226_s16  ;;  %v4383_v60 = vmul.f32 -1.442695, %v6464_v25 }
0x1b2f   : > { %v4386_v4 = vmul.f32 -1.442695, %v6474_v10 }
0x1b30   : > { %3800 = vrot.lane.b32.xlu1 %v6466_v5, %s5226_s16  ;;  %v4384_v58 = vmul.f32 -1.442695, %v6466_v5  ;;  %5182 = vpow2.f32 %v4383_v60 }
0x1b32   : > { %3802 = vrot.lane.b32.xlu0 %v6470_v18, %s5226_s16  ;;  %5184 = vpow2.f32 %v4384_v58 }
0x1b33   : > { %5186 = vpow2.f32 %v4385_v36 }
0x1b34   : > { %3804 = vrot.lane.b32.xlu1 %v6474_v10, %s5226_s16  ;;  %5188 = vpow2.f32 %v4386_v4 }
0x1b3a   : > { %v5183_v46 = vpop.eup %5182 }
0x1b3b   : > { %v3754_v14 = vadd.f32 1.0, %v5183_v46 }
0x1b3c   : > { %v5185_v61 = vpop.eup %5184 }
0x1b3d   : > { %v5187_v22 = vpop.eup %5186  ;;  %v3755_v42 = vadd.f32 1.0, %v5185_v61  ;;  %5190 = vrcp.f32 %v3754_v14 }
0x1b3e   : > { %v5189_v33 = vpop.eup %5188  ;;  %v3756_v27 = vadd.f32 1.0, %v5187_v22 }
0x1b3f   : > { %v3757_v51 = vadd.f32 1.0, %v5189_v33  ;;  %5192 = vrcp.f32 %v3755_v42 }
0x1b40   : > { %5194 = vrcp.f32 %v3756_v27 }
0x1b41   : > { %5196 = vrcp.f32 %v3757_v51 }
0x1b47   : > { %v5191_v19 = vpop.eup %5190 }
0x1b48   : > { %v3778_v0 = vmul.f32 %v5191_v19, %v6464_v25 }
0x1b49   : > { %v5193_v31 = vpop.eup %5192 }
0x1b4a   : > { %v5195_v3 = vpop.eup %5194  ;;  %v3779_v16 = vmul.f32 %v5193_v31, %v6466_v5  ;;  %v4403_v5 = vld [vmem:[%s6589_s4 + $0x18] ss:$0 sm:$0xff] }
0x1b4b   : > { %v5197_v55 = vpop.eup %5196  ;;  %v3780_v49 = vmul.f32 %v5195_v3, %v6470_v18 }
0x1b4c   : > { %v3781_v23 = vmul.f32 %v5197_v55, %v6474_v10 }
0x1b7b   : > { %v3795_v34 = vpop.permute.xlu1 %3794 }
0x1b7c   : > { %v3791_v63 = vpop.permute.xlu0 %3790  ;;  %v3816_v8 = vmul.f32 %v3795_v34, %v3776_v43 }
0x1b7d   : > { %v3814_v11 = vmul.f32 %v3791_v63, %v3774_v29 }
0x1b7f   : > { %v3793_v1 = vpop.permute.xlu1 %3792 }
0x1b80   : > { %v3815_v37 = vmul.f32 %v3793_v1, %v3775_v44 }
0x1b82   : > { %v3831_v20 = vpack.c.bf16 %v3815_v37, %v3814_v11 }
0x1b83   : > { %v3797_v38 = vpop.permute.xlu1 %3796 }
0x1b84   : > { %v3817_v59 = vmul.f32 %v3797_v38, %v3777_v21  ;;  %4822 = vmatprep.mubr.msk.bf16.mxu1 %vm626_vm1, %v3831_v20 }
0x1b86   : > { %v3832_v17 = vpack.c.bf16 %v3817_v59, %v3816_v8 }
0x1b88   : > { %4823 = vmatmul.mubr.msk.bf16.vlgmr.msra.gmra.mrb[64].mxu1 %vm626_vm1, %v3832_v17 }
0x1ba0   : > { %v3799_v24 = vpop.permute.xlu0 %3798 }
0x1ba1   : > { %v3818_v57 = vmul.f32 %v3799_v24, %v3778_v0 }
0x1ba2   : > { %v3801_v9 = vpop.permute.xlu1 %3800 }
0x1ba3   : > { %v3819_v39 = vmul.f32 %v3801_v9, %v3779_v16 }
0x1ba4   : > { %v3803_v56 = vpop.permute.xlu0 %3802 }
0x1ba5   : > { %v3833_v45 = vpack.c.bf16 %v3819_v39, %v3818_v57  ;;  %v3820_v12 = vmul.f32 %v3803_v56, %v3780_v49 }
0x1ba6   : > { %v3805_v6 = vpop.permute.xlu1 %3804 }
0x1ba7   : > { %v3821_v35 = vmul.f32 %v3805_v6, %v3781_v23  ;;  %4826 = vmatprep.mubr.msk.bf16.mxu1 %vm626_vm1, %v3833_v45 }
0x1ba9   : > { %v3834_v62 = vpack.c.bf16 %v3821_v35, %v3820_v12 }
0x1bab   : > { %4827 = vmatmul.mubr.msk.bf16.gmra.mrb[68].mxu1 %vm626_vm1, %v3834_v62 }
0x1c5b   : > { %v4824_v25 = vpop.f32.mrb[64].mxu1 }
0x1c5c   : > { %v3905_v26 = vpop.f32.mrb[65].mxu1  ;;  %v3938_v15 = vadd.f32 %v4824_v25, %v6338_v13 }
0x1c5d   : > { %v3936_v18 = vadd.f32 %v3905_v26, %v6335_v47  ;;  %v4825_v52 = vpop.f32.mrb[66].mxu1 }
0x1c5e   : > { %v3908_v10 = vpop.f32.mrb[67].mxu1  ;;  %v3950_v63 = vadd.f32 %v4403_v5, %v3938_v15  ;;  %v3939_v30 = vadd.f32 %v4825_v52, %v6347_v41 }
0x1c5f   : > { %v3948_v53 = vadd.f32 %v4403_v5, %v3936_v18  ;;  %v3937_v34 = vadd.f32 %v3908_v10, %v6341_v40 }
0x1c60   : > { %v3951_v48 = vadd.f32 %v4403_v5, %v3939_v30  ;;  %v3963_v13 = vsel %vm741_vm2, %v3950_v63, 0.0 }
0x1c61   : > { %v3949_v60 = vadd.f32 %v4403_v5, %v3937_v34  ;;  %v3957_v29 = vsel %vm741_vm2, %v3948_v53, 0.0  ;;  %v4940_v34 = vld [vmem:[%s6595_s10] sm:$0xff]  }
0x1c62   : > { %3958 = vadd.xlane.f32.xlu0 %v3957_v29  ;;  %v3966_v47 = vsel %vm741_vm2, %v3951_v48, 0.0  ;;  %4830 = vmatprep.subr.bf16.mxu0 %v4940_v34  ;;  %v4941_v29 = vld [vmem:[%s6595_s10 + $0x8] sm:$0xff]  }
0x1c63   : > { %v3960_v44 = vsel %vm741_vm2, %v3949_v60, 0.0  ;;  %4831 = vmatpush3.bf16.msra.mxu0 %v4940_v34 }
0x1c64   : > { %3961 = vadd.xlane.f32.xlu1 %v3960_v44  ;;  %4832 = vmatprep.subr.bf16.mxu0 %v4941_v29 }
0x1c66   : > { %3964 = vadd.xlane.f32.xlu0 %v3963_v13 }
0x1c67   : > { %4833 = vmatpush3.bf16.msra.mxu0 %v4941_v29 }
0x1c6a   : > { %3967 = vadd.xlane.f32.xlu0 %v3966_v47 }
0x1c7e   : > { %v4828_v58 = vpop.f32.mrb[68].mxu1 }
0x1c7f   : > { %v3921_v1 = vpop.f32.mrb[69].mxu1  ;;  %v3942_v40 = vadd.f32 %v4828_v58, %v6359_v28 }
0x1c80   : > { %v3940_v41 = vadd.f32 %v3921_v1, %v6355_v50  ;;  %v4829_v11 = vpop.f32.mrb[70].mxu1 }
0x1c81   : > { %v3924_v37 = vpop.f32.mrb[71].mxu1  ;;  %v3943_v36 = vadd.f32 %v4829_v11, %v6365_v32  ;;  %v3954_v21 = vadd.f32 %v4403_v5, %v3942_v40 }
0x1c82   : > { %v3952_v43 = vadd.f32 %v4403_v5, %v3940_v41  ;;  %v3941_v20 = vadd.f32 %v3924_v37, %v6361_v54 }
0x1c83   : > { %v3955_v8 = vadd.f32 %v4403_v5, %v3943_v36  ;;  %v3975_v28 = vsel %vm741_vm2, %v3954_v21, 0.0  ;;  %v3956_v36 = vld [vmem:[%s6594_s9] sm:$0x3] }
0x1c84   : > { %v3953_v4 = vadd.f32 %v4403_v5, %v3941_v20  ;;  %v3969_v38 = vsel %vm741_vm2, %v3952_v43, 0.0 }
0x1c85   : > { %3970 = vadd.xlane.f32.xlu0 %v3969_v38  ;;  %v3978_v50 = vsel %vm741_vm2, %v3955_v8, 0.0 }
0x1c86   : > { %v3972_v59 = vsel %vm741_vm2, %v3953_v4, 0.0 }
0x1c87   : > { %3973 = vadd.xlane.f32.xlu1 %v3972_v59 }
0x1c89   : > { %3976 = vadd.xlane.f32.xlu0 %v3975_v28  ;;  %v4076_v28 = vrot.slane %v3956_v36, %v5454_v7 }
0x1c8b   : > { %3979 = vadd.xlane.f32.xlu1 %v3978_v50 }
0x1cef   : > { %v3959_v17 = vpop.xlane.xlu0 %3958 }
0x1cf0   : > { %v3981_v46 = vmul.f32 0.03125, %v3959_v17 }
0x1cf1   : > { %v3962_v32 = vpop.xlane.xlu1 %3961 }
0x1cf2   : > { %v6511_v61 = vsub.f32 %v3948_v53, %v3981_v46  ;;  %v3982_v54 = vmul.f32 0.03125, %v3962_v32 }
0x1cf3   : > { %v3965_v14 = vpop.xlane.xlu0 %3964 }
0x1cf4   : > { %v6513_v22 = vsub.f32 %v3949_v60, %v3982_v54  ;;  %v3983_v42 = vmul.f32 0.03125, %v3965_v14  ;;  %v3997_v33 = vmul.f32 %v6511_v61, %v6511_v61 }
0x1cf6   : > { %v6517_v27 = vsub.f32 %v3950_v63, %v3983_v42  ;;  %v4005_v51 = vsel %vm741_vm2, %v3997_v33, 0.0  ;;  %v3998_v19 = vmul.f32 %v6513_v22, %v6513_v22 }
0x1cf7   : > { %v3968_v31 = vpop.xlane.xlu0 %3967  ;;  %4006 = vadd.xlane.f32.xlu0 %v4005_v51 }
0x1cf8   : > { %v3984_v24 = vmul.f32 0.03125, %v3968_v31  ;;  %v4008_v3 = vsel %vm741_vm2, %v3998_v19, 0.0  ;;  %v3999_v0 = vmul.f32 %v6517_v27, %v6517_v27 }
0x1cf9   : > { %4009 = vadd.xlane.f32.xlu1 %v4008_v3 }
0x1cfa   : > { %v6525_v16 = vsub.f32 %v3951_v48, %v3984_v24  ;;  %v4011_v55 = vsel %vm741_vm2, %v3999_v0, 0.0 }
0x1cfb   : > { %4012 = vadd.xlane.f32.xlu0 %v4011_v55 }
0x1cfc   : > { %v4000_v9 = vmul.f32 %v6525_v16, %v6525_v16 }
0x1cfe   : > { %v4014_v57 = vsel %vm741_vm2, %v4000_v9, 0.0 }
0x1cff   : > { %4015 = vadd.xlane.f32.xlu1 %v4014_v57 }
0x1d12   : > { %v3971_v39 = vpop.xlane.xlu0 %3970 }
0x1d13   : > { %v3985_v56 = vmul.f32 0.03125, %v3971_v39 }
0x1d14   : > { %v3974_v45 = vpop.xlane.xlu1 %3973 }
0x1d15   : > { %v6531_v49 = vsub.f32 %v3952_v43, %v3985_v56  ;;  %v3986_v23 = vmul.f32 0.03125, %v3974_v45 }
0x1d16   : > { %v3977_v6 = vpop.xlane.xlu0 %3976 }
0x1d17   : > { %v6533_v12 = vsub.f32 %v3953_v4, %v3986_v23  ;;  %v3987_v35 = vmul.f32 0.03125, %v3977_v6  ;;  %v4001_v62 = vmul.f32 %v6531_v49, %v6531_v49 }
0x1d18   : > { %v3980_v25 = vpop.xlane.xlu1 %3979 }
0x1d19   : > { %v6537_v5 = vsub.f32 %v3954_v21, %v3987_v35  ;;  %v3988_v26 = vmul.f32 0.03125, %v3980_v25  ;;  %v4017_v15 = vsel %vm741_vm2, %v4001_v62, 0.0  ;;  %v4002_v18 = vmul.f32 %v6533_v12, %v6533_v12 }
0x1d1a   : > { %4018 = vadd.xlane.f32.xlu0 %v4017_v15  ;;  %v4064_v21 = vrot.slane %v3956_v36, %v5449_v2 }
0x1d1b   : > { %v6542_v52 = vsub.f32 %v3955_v8, %v3988_v26  ;;  %v4020_v10 = vsel %vm741_vm2, %v4002_v18, 0.0  ;;  %v4003_v53 = vmul.f32 %v6537_v5, %v6537_v5 }
0x1d1c   : > { %4021 = vadd.xlane.f32.xlu1 %v4020_v10 }
0x1d1d   : > { %v4023_v63 = vsel %vm741_vm2, %v4003_v53, 0.0  ;;  %v4004_v30 = vmul.f32 %v6542_v52, %v6542_v52 }
0x1d1e   : > { %4024 = vadd.xlane.f32.xlu0 %v4023_v63 }
0x1d1f   : > { %v4026_v60 = vsel %vm741_vm2, %v4004_v30, 0.0 }
0x1d20   : > { %4027 = vadd.xlane.f32.xlu1 %v4026_v60 }
0x1d84   : > { %v4007_v44 = vpop.xlane.xlu0 %4006 }
0x1d85   : > { %v4029_v48 = vmul.f32 0.03125, %v4007_v44 }
0x1d86   : > { %v4010_v13 = vpop.xlane.xlu1 %4009 }
0x1d87   : > { %v4037_v47 = vadd.f32 1e-05, %v4029_v48  ;;  %v4030_v58 = vmul.f32 0.03125, %v4010_v13 }
0x1d88   : > { %v4013_v1 = vpop.xlane.xlu0 %4012 }
0x1d89   : > { %5198 = vrsqrt.f32 %v4037_v47  ;;  %v4038_v40 = vadd.f32 1e-05, %v4030_v58  ;;  %v4031_v41 = vmul.f32 0.03125, %v4013_v1 }
0x1d8b   : > { %5200 = vrsqrt.f32 %v4038_v40  ;;  %v4039_v11 = vadd.f32 1e-05, %v4031_v41 }
0x1d8c   : > { %v4016_v37 = vpop.xlane.xlu1 %4015 }
0x1d8d   : > { %5202 = vrsqrt.f32 %v4039_v11  ;;  %v4032_v43 = vmul.f32 0.03125, %v4016_v37 }
0x1d8f   : > { %v4040_v20 = vadd.f32 1e-05, %v4032_v43 }
0x1d91   : > { %5204 = vrsqrt.f32 %v4040_v20 }
0x1d93   : > { %v5199_v4 = vpop.eup %5198 }
0x1d94   : > { %v4053_v38 = vmul.f32 %v5199_v4, %v6511_v61 }
0x1d95   : > { %v5201_v8 = vpop.eup %5200 }
0x1d96   : > { %v4054_v59 = vmul.f32 %v5201_v8, %v6513_v22  ;;  %v4065_v50 = vmul.f32 %v4064_v21, %v4053_v38 }
0x1d97   : > { %v5203_v17 = vpop.eup %5202 }
0x1d98   : > { %v4055_v46 = vmul.f32 %v5203_v17, %v6517_v27  ;;  %v4066_v32 = vmul.f32 %v4064_v21, %v4054_v59  ;;  %v4077_v54 = vadd.f32 %v4076_v28, %v4065_v50 }
0x1d9a   : > { %v4078_v14 = vadd.f32 %v4076_v28, %v4066_v32  ;;  %v4067_v33 = vmul.f32 %v4064_v21, %v4055_v46 }
0x1d9b   : > { %v5205_v42 = vpop.eup %5204 }
0x1d9c   : > { %v4056_v51 = vmul.f32 %v5205_v42, %v6525_v16  ;;  %v4089_v2 = vpack.c.bf16 %v4078_v14, %v4077_v54  ;;  %v4079_v61 = vadd.f32 %v4076_v28, %v4067_v33 }
0x1d9e   : > { %v4068_v19 = vmul.f32 %v4064_v21, %v4056_v51  ;;  %4834 = vmatprep.mubr.msk.bf16.mxu0 %vm741_vm2, %v4089_v2 }
0x1da0   : > { %v4080_v31 = vadd.f32 %v4076_v28, %v4068_v19 }
0x1da2   : > { %v4090_v22 = vpack.c.bf16 %v4080_v31, %v4079_v61 }
0x1da4   : > { %4835 = vmatmul.mubr.msk.bf16.vlgmr.msra.gmra.mrb[80].mxu0 %vm741_vm2, %v4090_v22 }
0x1da7   : > { %v4019_v7 = vpop.xlane.xlu0 %4018 }
0x1da8   : > { %v4033_v24 = vmul.f32 0.03125, %v4019_v7 }
0x1da9   : > { %v4022_v3 = vpop.xlane.xlu1 %4021 }
0x1daa   : > { %v4041_v27 = vadd.f32 1e-05, %v4033_v24  ;;  %v4034_v0 = vmul.f32 0.03125, %v4022_v3 }
0x1dab   : > { %v4025_v55 = vpop.xlane.xlu0 %4024 }
0x1dac   : > { %5206 = vrsqrt.f32 %v4041_v27  ;;  %v4042_v9 = vadd.f32 1e-05, %v4034_v0  ;;  %v4035_v57 = vmul.f32 0.03125, %v4025_v55 }
0x1dad   : > { %v4028_v39 = vpop.xlane.xlu1 %4027 }
0x1dae   : > { %5208 = vrsqrt.f32 %v4042_v9  ;;  %v4043_v16 = vadd.f32 1e-05, %v4035_v57  ;;  %v4036_v56 = vmul.f32 0.03125, %v4028_v39 }
0x1db0   : > { %5210 = vrsqrt.f32 %v4043_v16  ;;  %v4044_v45 = vadd.f32 1e-05, %v4036_v56 }
0x1db2   : > { %5212 = vrsqrt.f32 %v4044_v45 }
0x1db6   : > { %v5207_v23 = vpop.eup %5206 }
0x1db7   : > { %v4057_v6 = vmul.f32 %v5207_v23, %v6531_v49 }
0x1db8   : > { %v5209_v35 = vpop.eup %5208 }
0x1db9   : > { %v4058_v62 = vmul.f32 %v5209_v35, %v6533_v12  ;;  %v4069_v25 = vmul.f32 %v4064_v21, %v4057_v6  ;;  %v4404_v12 = vld [vmem:[%s6596_s11] ss:$0 sm:$0xff] }
0x1dba   : > { %v5211_v26 = vpop.eup %5210 }
0x1dbb   : > { %v4059_v15 = vmul.f32 %v5211_v26, %v6537_v5  ;;  %v4070_v18 = vmul.f32 %v4064_v21, %v4058_v62  ;;  %v4081_v34 = vadd.f32 %v4076_v28, %v4069_v25 }
0x1dbc   : > { %v5213_v10 = vpop.eup %5212 }
0x1dbd   : > { %v4060_v53 = vmul.f32 %v5213_v10, %v6542_v52  ;;  %v4082_v63 = vadd.f32 %v4076_v28, %v4070_v18  ;;  %v4071_v30 = vmul.f32 %v4064_v21, %v4059_v15 }
0x1dbf   : > { %v4091_v60 = vpack.c.bf16 %v4082_v63, %v4081_v34  ;;  %v4072_v29 = vmul.f32 %v4064_v21, %v4060_v53  ;;  %v4083_v49 = vadd.f32 %v4076_v28, %v4071_v30 }
0x1dc1   : > { %4838 = vmatprep.mubr.msk.bf16.mxu0 %vm741_vm2, %v4091_v60  ;;  %v4084_v44 = vadd.f32 %v4076_v28, %v4072_v29 }
0x1dc3   : > { %v4092_v48 = vpack.c.bf16 %v4084_v44, %v4083_v49 }
0x1dc5   : > { %4839 = vmatmul.mubr.msk.bf16.gmra.mrb[84].mxu0 %vm741_vm2, %v4092_v48 }
0x1e77   : > { %v4836_v5 = vpop.f32.mrb[80].mxu0 }
0x1e78   : > { %v4167_v52 = vadd.f32 %v4836_v5, %v4404_v12  ;;  %v4158_v13 = vpop.f32.mrb[81].mxu0 }
0x1e79   : > { %v4159_v47 = vadd.f32 %v4404_v12, %v4158_v13  ;;  %v4837_v58 = vpop.f32.mrb[82].mxu0 }
0x1e7a   : > { %4191 = vst [vmem:[%s415_s28 + $0x10] sm:$0xff] %v4167_v52  ;;  %v4170_v1 = vadd.f32 %v4837_v58, %v4404_v12  ;;  %v4161_v40 = vpop.f32.mrb[83].mxu0 }
0x1e7b   : > { %4189 = vst [vmem:[%s415_s28] sm:$0xff] %v4159_v47  ;;  %v4162_v41 = vadd.f32 %v4404_v12, %v4161_v40 }
0x1e7c   : > { %4192 = vst [vmem:[%s415_s28 + $0x18] sm:$0xff] %v4170_v1 }
0x1e7d   : > { %4190 = vst [vmem:[%s415_s28 + $0x8] sm:$0xff] %v4162_v41 }
0x1e98   : > { %v4840_v11 = vpop.f32.mrb[84].mxu0 }
0x1e99   : > { %v4183_v37 = vadd.f32 %v4840_v11, %v4404_v12  ;;  %v4174_v43 = vpop.f32.mrb[85].mxu0 }
0x1e9a   : > { %v4175_v36 = vadd.f32 %v4404_v12, %v4174_v43  ;;  %v4841_v20 = vpop.f32.mrb[86].mxu0 }
0x1e9b   : > { %4195 = vst [vmem:[%s415_s28 + $0x30] sm:$0xff] %v4183_v37  ;;  %v4186_v21 = vadd.f32 %v4841_v20, %v4404_v12  ;;  %v4177_v4 = vpop.f32.mrb[87].mxu0 }
0x1e9c   : > { %4193 = vst [vmem:[%s415_s28 + $0x20] sm:$0xff] %v4175_v36  ;;  %v4178_v38 = vadd.f32 %v4404_v12, %v4177_v4 }
0x1e9d   : > { %4196 = vst [vmem:[%s415_s28 + $0x38] sm:$0xff] %v4186_v21 }
0x1e9e   : > { %4194 = vst [vmem:[%s415_s28 + $0x28] sm:$0xff] %v4178_v38 }
0x1e9f PF: > { %s22_s21 = sadd.s32 1, %s5222_s21  }
0x1ea0   : > { %p19_p5 = scmp.ge.s32.totalorder %s22_s21, 4  }
0x1ea2   :  { %21 = sbr.rel (!%p19_p5) target bundleno = 1 (0x1), region = 103 }

</bundles_post_ra>
